<compile_context>
chip_gen: v7x
topology: tpu7x:2x2x1
jax: 0.10.0
libtpu: 0.0.40
codegen_flags: <defaults>
</compile_context>

<pallas_src>
import math

import jax
import jax.numpy as jnp
from jax import lax
from jax.experimental import pallas as pl
from jax.experimental.pallas import tpu as pltpu

LANE = 128                       # lane-dense output width multiple
VMEM_LIMIT = 32 * 1024 * 1024    # safe on v5e/v6e (128 MiB) and v7x (64 MiB physical)


def _round_up(v, m):
    return (v + m - 1) // m * m


# --------------------------- p_conv: 3x3 offset conv -------------------------
# One Pallas grid step per batch image: 9 shifted (P, C) @ (C, 2N_pad) matmuls over the
# flattened padded pixel rows (no host-side im2col, patches built by in-VMEM row shifts).

def _p_conv_offsets(xp_nhwc, p_w, p_b, H, W):
    B, Hp, Wp, C = xp_nhwc.shape
    nout = p_w.shape[0]                           # 2 * ks * ks
    nout_pad = _round_up(nout, LANE)              # lane-dense output (18 -> 128)
    P = Hp * Wp
    halo = _round_up(Wp + 1, 8)                   # zero rows so every shifted read is in-bounds

    xp_flat = jnp.pad(xp_nhwc.reshape(B, P, C), ((0, 0), (halo, halo), (0, 0)))

    # per-tap 1x1 weights: tap d=(kh,kw) -> (C, nout_pad); flat-row offset (kh-1)*Wp+(kw-1)
    w_taps = jnp.transpose(p_w, (2, 3, 1, 0)).reshape(9, C, nout)
    w_taps = jnp.pad(w_taps, ((0, 0), (0, 0), (0, nout_pad - nout)))
    bias = jnp.pad(p_b, (0, nout_pad - nout)).reshape(1, nout_pad)
    offs = [(kh - 1) * Wp + (kw - 1) for kh in range(3) for kw in range(3)]

    def kernel(xp_ref, w_ref, b_ref, o_ref):
        # accumulate directly into the VMEM output block (keeps register pressure low)
        tap0 = xp_ref[0, pl.ds(halo + offs[0], P), :]             # (P, C) shifted rows
        o_ref[0] = b_ref[...] + jnp.dot(tap0, w_ref[0],
                                        preferred_element_type=jnp.float32)
        for d in range(1, 9):                                     # static unroll over taps
            tap = xp_ref[0, pl.ds(halo + offs[d], P), :]
            o_ref[0] += jnp.dot(tap, w_ref[d], preferred_element_type=jnp.float32)

    out = pl.pallas_call(
        kernel,
        out_shape=jax.ShapeDtypeStruct((B, P, nout_pad), jnp.float32),
        grid=(B,),
        in_specs=[
            pl.BlockSpec((1, P + 2 * halo, C), lambda b: (b, 0, 0)),
            pl.BlockSpec((9, C, nout_pad), lambda b: (0, 0, 0)),
            pl.BlockSpec((1, nout_pad), lambda b: (0, 0)),
        ],
        out_specs=pl.BlockSpec((1, P, nout_pad), lambda b: (b, 0, 0)),
        compiler_params=pltpu.CompilerParams(
            dimension_semantics=("parallel",),
            vmem_limit_bytes=VMEM_LIMIT),
    )(xp_flat, w_taps, bias)

    # keep real output channels, and only the interior (unpadded) pixels
    out = out[:, :, :nout].reshape(B, Hp, Wp, nout)
    return out[:, 1:1 + H, 1:1 + W, :]            # (B, H, W, 2N), float32


# ------------------ sampling locations / gates / gather indices --------------
# Host glue: mirrors the module's _get_p / clamp / bilinear-weight math exactly.

def _sampling_indices_and_gates(offset, ks, Hp, Wp, stride):
    B, h, w, twoN = offset.shape
    N = twoN // 2
    half = (ks - 1) // 2
    rng = jnp.arange(-half, half + 1, dtype=jnp.float32)
    pn = jnp.concatenate([jnp.repeat(rng, ks), jnp.tile(rng, ks)])        # (2N,)
    ii = jnp.arange(1, h * stride + 1, stride, dtype=jnp.float32)
    jj = jnp.arange(1, w * stride + 1, stride, dtype=jnp.float32)
    p0 = jnp.concatenate([jnp.broadcast_to(ii[:, None, None], (h, w, N)),
                          jnp.broadcast_to(jj[None, :, None], (h, w, N))], axis=-1)
    p = p0[None] + pn[None, None, None, :] + offset                       # (B,h,w,2N)

    def clamp_xy(q):
        return jnp.concatenate([jnp.clip(q[..., :N], 0, Hp - 1),
                                jnp.clip(q[..., N:], 0, Wp - 1)], axis=-1)

    q_lt = clamp_xy(jnp.floor(p)).astype(jnp.int32)
    q_rb = clamp_xy(jnp.floor(p) + 1.0).astype(jnp.int32)
    q_lb = jnp.concatenate([q_lt[..., :N], q_rb[..., N:]], axis=-1)
    q_rt = jnp.concatenate([q_rb[..., :N], q_lt[..., N:]], axis=-1)
    p = clamp_xy(p)

    def gate(q, sx, sy):
        qf = q.astype(jnp.float32)
        return ((1.0 + sx * (qf[..., :N] - p[..., :N]))
                * (1.0 + sy * (qf[..., N:] - p[..., N:])))

    gates = jnp.stack([gate(q_lt, 1., 1.), gate(q_rb, -1., -1.),
                       gate(q_lb, 1., -1.), gate(q_rt, -1., 1.)], axis=1)  # (B,4,h,w,N)

    def flat_idx(q):
        return (q[..., :N] * Wp + q[..., N:]).reshape(B, h * w * N)

    idx = jnp.stack([flat_idx(q_lt), flat_idx(q_rb), flat_idx(q_lb), flat_idx(q_rt)],
                    axis=1).reshape(B, 4 * h * w * N)                      # one fused gather
    return idx, gates.reshape(B, 4, h * w, N)


# ------------- fused bilinear combine + ks-strided output conv (Pallas) -------
# x_offset = sum_q g_q * x_q ; out = x_offset @ W  (the ks-strided conv over the
# reshaped x_offset is exactly this matmul with W flattened in [n][c] order).

def _deform_combine(xq_all, g_all, w_pad, tm):
    B, _, rows, K = xq_all.shape                  # xq_all: (B, 4, h*w, N*C)  bf16
    N = g_all.shape[-1]                           # g_all : (B, 4, h*w, N)    f32
    nout_pad = w_pad.shape[1]                     # w_pad : (N*C, nout_pad)   bf16
    C = K // N
    assert rows % tm == 0

    # 0/1 expansion matrix E[n, n*C + c] = 1: broadcasts a (TM, N) gate block across the
    # C sub-axis with one tiny MXU matmul (avoids unsupported lane reshapes/repeats).
    col = lax.broadcasted_iota(jnp.int32, (N, K), 1)
    row = lax.broadcasted_iota(jnp.int32, (N, K), 0)
    expand = (col // C == row).astype(jnp.float32)                 # host-side constant

    def kernel(xq_ref, g_ref, e_ref, w_ref, o_ref):
        def term(q):
            gq = jnp.dot(g_ref[0, q], e_ref[...], preferred_element_type=jnp.float32)
            return gq * xq_ref[0, q].astype(jnp.float32)      # bilinear combine in f32

        x_off = term(0) + term(1) + term(2) + term(3)
        o_ref[0] = jnp.dot(x_off.astype(w_ref.dtype), w_ref[...],
                           preferred_element_type=jnp.float32).astype(o_ref.dtype)

    return pl.pallas_call(
        kernel,
        out_shape=jax.ShapeDtypeStruct((B, rows, nout_pad), jnp.float32),
        grid=(B, rows // tm),
        in_specs=[
            pl.BlockSpec((1, 4, tm, K), lambda b, r: (b, 0, r, 0)),
            pl.BlockSpec((1, 4, tm, N), lambda b, r: (b, 0, r, 0)),
            pl.BlockSpec((N, K), lambda b, r: (0, 0)),
            pl.BlockSpec((K, nout_pad), lambda b, r: (0, 0)),
        ],
        out_specs=pl.BlockSpec((1, tm, nout_pad), lambda b, r: (b, r, 0)),
        compiler_params=pltpu.CompilerParams(
            dimension_semantics=("parallel", "parallel"),
            vmem_limit_bytes=VMEM_LIMIT),
    )(xq_all, g_all, expand, w_pad)


# ------------------------------ Pallas forward --------------------------------

def deform_conv2d_forward(x, p_w, p_b, c_w, *, kernel_size=3, padding=1, stride=1):
    B, C, H, W = x.shape
    ks = kernel_size
    N = ks * ks
    outc = c_w.shape[0]
    # TODO(synk): only the module-default stride=1 / padding=1 configuration is wired up.
    assert stride == 1 and padding == 1
    h, w = H, W

    # single NHWC zero-pad, reused by the offset conv AND as the bilinear gather source
    xp = jnp.pad(x.transpose(0, 2, 3, 1),
                 ((0, 0), (padding, padding), (padding, padding), (0, 0)))
    Hp, Wp = H + 2 * padding, W + 2 * padding

    # ---- p_conv (3x3, pad=1): Pallas kernel, no host im2col ----
    offset = _p_conv_offsets(xp, p_w, p_b, H, W)          # (B, h, w, 2N) f32

    # ---- sampling locations -> gather indices + bilinear gates (host glue) ----
    idx, gates = _sampling_indices_and_gates(offset, ks, Hp, Wp, stride)

    # ---- single fused gather of all 4 neighbours, NHWC so rows come out [n][c] ----
    # TODO(synk): the data-dependent per-pixel gather (torch.gather) has no clean
    # BlockSpec equivalent; it stays as one XLA take_along_axis feeding the kernel.
    xp_b16 = xp.astype(jnp.bfloat16)                      # cast before gather: same values,
    xq = jnp.take_along_axis(xp_b16.reshape(B, Hp * Wp, C),  # half the gather traffic
                             idx[:, :, None], axis=1)
    xq = xq.reshape(B, 4, h * w, N * C)

    # ---- fused bilinear combine + ks-strided output conv (Pallas) ----
    wc = jnp.transpose(c_w, (0, 2, 3, 1)).reshape(outc, N * C).T          # (N*C, outc), [n][c]
    outc_pad = _round_up(outc, LANE)
    wc = jnp.pad(wc, ((0, 0), (0, outc_pad - outc))).astype(jnp.bfloat16)

    tm = max(8, math.gcd(h * w, 512))              # big row tile, keeps grid >= B parallel steps
    out = _deform_combine(xq, gates, wc, tm)       # (B, h*w, outc_pad) f32
    return out[:, :, :outc].reshape(B, h, w, outc).transpose(0, 3, 1, 2)  # NCHW


# ------------------------- pure-JAX reference (check) -------------------------

def _reshape_x_offset(x_off, ks):
    b, c, h, w, N = x_off.shape
    x_off = jnp.concatenate([x_off[..., s:s + ks].reshape(b, c, h, w * ks)
                             for s in range(0, N, ks)], axis=-1)
    return x_off.reshape(b, c, h * ks, w * ks)


def deform_conv2d_reference(x, p_w, p_b, c_w, *, kernel_size=3, padding=1, stride=1):
    ks = kernel_size
    N = ks * ks
    B, C, H, W = x.shape
    dn = ('NCHW', 'OIHW', 'NCHW')
    offset = lax.conv_general_dilated(x, p_w, (stride, stride), [(1, 1), (1, 1)],
                                      dimension_numbers=dn) + p_b[None, :, None, None]
    offset = offset.transpose(0, 2, 3, 1)                      # (B, h, w, 2N)
    h, w = offset.shape[1], offset.shape[2]
    Hp, Wp = H + 2 * padding, W + 2 * padding
    xp = jnp.pad(x, ((0, 0), (0, 0), (padding, padding), (padding, padding)))

    idx, gates = _sampling_indices_and_gates(offset, ks, Hp, Wp, stride)
    x_flat = xp.reshape(B, C, Hp * Wp)
    idxc = jnp.broadcast_to(idx[:, None, :], (B, C, idx.shape[1]))
    xq = jnp.take_along_axis(x_flat, idxc, axis=2).reshape(B, C, 4, h, w, N)
    g = gates.reshape(B, 4, h, w, N)[:, None]                  # (B, 1, 4, h, w, N)
    x_off = (g * xq).sum(axis=2)                               # (B, C, h, w, N)
    x_off = _reshape_x_offset(x_off, ks)
    return lax.conv_general_dilated(x_off, c_w, (ks, ks), 'VALID', dimension_numbers=dn)


# ----------------------------------- main --------------------------------------

if __name__ == "__main__":
    key = jax.random.PRNGKey(0)
    k1, k2, k3, k4 = jax.random.split(key, 4)

    B, C, H, W = 2, 4, 16, 16
    outc, ks = 8, 3
    N = ks * ks

    x = jax.random.normal(k1, (B, C, H, W), jnp.float32)
    # NOTE: the module zero-inits p_conv.weight; small random values are used here so the
    # data-dependent offset path is actually exercised (the forward math is identical).
    p_w = 0.1 * jax.random.normal(k2, (2 * N, C, 3, 3), jnp.float32)   # p_conv.weight
    p_b = 0.1 * jax.random.normal(k3, (2 * N,), jnp.float32)           # p_conv.bias
    c_w = 0.1 * jax.random.normal(k4, (outc, C, ks, ks), jnp.float32)  # conv.weight (bias=None)

    out = jax.jit(deform_conv2d_forward)(x, p_w, p_b, c_w)
    out = jax.block_until_ready(out)
    assert out.shape == (B, outc, H, W), out.shape

    ref = jax.block_until_ready(jax.jit(deform_conv2d_reference)(x, p_w, p_b, c_w))
    err = float(jnp.max(jnp.abs(out - ref)))
    # bf16 neighbours / weights in the Pallas path (f32 accumulation) -> loosened tolerance
    assert err < 5e-2, f"max abs error {err}"

    print("KERNEL_OK")
</pallas_src>

<mosaic_0001>
module attributes {stable_mosaic.version = 11 : i64} {
  func.func @kernel(%arg0: i32, %arg1: memref<1x372x4xf32, #tpu.memory_space<vmem>>, %arg2: memref<9x4x128xf32, #tpu.memory_space<vmem>>, %arg3: memref<1x128xf32, #tpu.memory_space<vmem>>, %arg4: memref<1x324x128xf32, #tpu.memory_space<vmem>>) attributes {dimension_semantics = [#tpu.dimension_semantics<parallel>], iteration_bounds = array<i64: 2>, scalar_prefetch = 0 : i64, scratch_operands = 0 : i64, tpu.core_type = #tpu.core_type<tc>, window_params = [{transform_indices = @transform_0, window_bounds = array<i64: 1, 372, 4>}, {pipeline_mode = #tpu.pipeline_mode<synchronous>, transform_indices = @transform_1, window_bounds = array<i64: 9, 4, 128>}, {pipeline_mode = #tpu.pipeline_mode<synchronous>, transform_indices = @transform_2, window_bounds = array<i64: 1, 128>}, {transform_indices = @transform_3, window_bounds = array<i64: 1, 324, 128>}]} {
    %c0 = arith.constant 0 : index
    %c5 = arith.constant 5 : index
    %c0_0 = arith.constant 0 : index
    %0 = vector.load %arg1[%c0, %c5, %c0_0] : memref<1x372x4xf32, #tpu.memory_space<vmem>>, vector<1x324x4xf32>
    %1 = vector.shape_cast %0 : vector<1x324x4xf32> to vector<324x4xf32>
    %c0_1 = arith.constant 0 : index
    %c0_2 = arith.constant 0 : index
    %2 = vector.load %arg3[%c0_1, %c0_2] : memref<1x128xf32, #tpu.memory_space<vmem>>, vector<1x128xf32>
    %c0_3 = arith.constant 0 : index
    %c0_4 = arith.constant 0 : index
    %c0_5 = arith.constant 0 : index
    %3 = vector.load %arg2[%c0_3, %c0_4, %c0_5] : memref<9x4x128xf32, #tpu.memory_space<vmem>>, vector<1x4x128xf32>
    %4 = vector.shape_cast %3 : vector<1x4x128xf32> to vector<4x128xf32>
    %cst = arith.constant dense<0.000000e+00> : vector<324x128xf32>
    %5 = tpu.matmul %1, %4, %cst {dimension_numbers = #tpu.dot_dimension_numbers<[1], [0], [0], [1], [0, 0, 1, 1], [], []>} : vector<324x4xf32>, vector<4x128xf32>, vector<324x128xf32> -> vector<324x128xf32>
    %6 = vector.broadcast %2 : vector<1x128xf32> to vector<324x128xf32>
    %7 = arith.addf %6, %5 : vector<324x128xf32>
    %c0_6 = arith.constant 0 : index
    %c0_7 = arith.constant 0 : index
    %c0_8 = arith.constant 0 : index
    %8 = vector.load %arg4[%c0_6, %c0_7, %c0_8] : memref<1x324x128xf32, #tpu.memory_space<vmem>>, vector<1x324x128xf32>
    %9 = vector.shape_cast %8 : vector<1x324x128xf32> to vector<324x128xf32>
    %10 = vector.shape_cast %7 : vector<324x128xf32> to vector<1x324x128xf32>
    tpu.vector_store %arg4[%c0_6, %c0_7, %c0_8], %10 {strides = array<i32>} : memref<1x324x128xf32, #tpu.memory_space<vmem>>, vector<1x324x128xf32>,
    %c0_9 = arith.constant 0 : index
    %c6 = arith.constant 6 : index
    %c0_10 = arith.constant 0 : index
    %11 = vector.load %arg1[%c0_9, %c6, %c0_10] : memref<1x372x4xf32, #tpu.memory_space<vmem>>, vector<1x324x4xf32>
    %12 = vector.shape_cast %11 : vector<1x324x4xf32> to vector<324x4xf32>
    %c0_11 = arith.constant 0 : index
    %c0_12 = arith.constant 0 : index
    %c0_13 = arith.constant 0 : index
    %13 = vector.load %arg4[%c0_11, %c0_12, %c0_13] : memref<1x324x128xf32, #tpu.memory_space<vmem>>, vector<1x324x128xf32>
    %14 = vector.shape_cast %13 : vector<1x324x128xf32> to vector<324x128xf32>
    %c1 = arith.constant 1 : index
    %c0_14 = arith.constant 0 : index
    %c0_15 = arith.constant 0 : index
    %15 = vector.load %arg2[%c1, %c0_14, %c0_15] : memref<9x4x128xf32, #tpu.memory_space<vmem>>, vector<1x4x128xf32>
    %16 = vector.shape_cast %15 : vector<1x4x128xf32> to vector<4x128xf32>
    %cst_16 = arith.constant dense<0.000000e+00> : vector<324x128xf32>
    %17 = tpu.matmul %12, %16, %cst_16 {dimension_numbers = #tpu.dot_dimension_numbers<[1], [0], [0], [1], [0, 0, 1, 1], [], []>} : vector<324x4xf32>, vector<4x128xf32>, vector<324x128xf32> -> vector<324x128xf32>
    %18 = arith.addf %14, %17 : vector<324x128xf32>
    %c0_17 = arith.constant 0 : index
    %c0_18 = arith.constant 0 : index
    %c0_19 = arith.constant 0 : index
    %19 = vector.load %arg4[%c0_17, %c0_18, %c0_19] : memref<1x324x128xf32, #tpu.memory_space<vmem>>, vector<1x324x128xf32>
    %20 = vector.shape_cast %19 : vector<1x324x128xf32> to vector<324x128xf32>
    %21 = vector.shape_cast %18 : vector<324x128xf32> to vector<1x324x128xf32>
    tpu.vector_store %arg4[%c0_17, %c0_18, %c0_19], %21 {strides = array<i32>} : memref<1x324x128xf32, #tpu.memory_space<vmem>>, vector<1x324x128xf32>,
    %c0_20 = arith.constant 0 : index
    %c7 = arith.constant 7 : index
    %c0_21 = arith.constant 0 : index
    %22 = vector.load %arg1[%c0_20, %c7, %c0_21] : memref<1x372x4xf32, #tpu.memory_space<vmem>>, vector<1x324x4xf32>
    %23 = vector.shape_cast %22 : vector<1x324x4xf32> to vector<324x4xf32>
    %c0_22 = arith.constant 0 : index
    %c0_23 = arith.constant 0 : index
    %c0_24 = arith.constant 0 : index
    %24 = vector.load %arg4[%c0_22, %c0_23, %c0_24] : memref<1x324x128xf32, #tpu.memory_space<vmem>>, vector<1x324x128xf32>
    %25 = vector.shape_cast %24 : vector<1x324x128xf32> to vector<324x128xf32>
    %c2 = arith.constant 2 : index
    %c0_25 = arith.constant 0 : index
    %c0_26 = arith.constant 0 : index
    %26 = vector.load %arg2[%c2, %c0_25, %c0_26] : memref<9x4x128xf32, #tpu.memory_space<vmem>>, vector<1x4x128xf32>
    %27 = vector.shape_cast %26 : vector<1x4x128xf32> to vector<4x128xf32>
    %cst_27 = arith.constant dense<0.000000e+00> : vector<324x128xf32>
    %28 = tpu.matmul %23, %27, %cst_27 {dimension_numbers = #tpu.dot_dimension_numbers<[1], [0], [0], [1], [0, 0, 1, 1], [], []>} : vector<324x4xf32>, vector<4x128xf32>, vector<324x128xf32> -> vector<324x128xf32>
    %29 = arith.addf %25, %28 : vector<324x128xf32>
    %c0_28 = arith.constant 0 : index
    %c0_29 = arith.constant 0 : index
    %c0_30 = arith.constant 0 : index
    %30 = vector.load %arg4[%c0_28, %c0_29, %c0_30] : memref<1x324x128xf32, #tpu.memory_space<vmem>>, vector<1x324x128xf32>
    %31 = vector.shape_cast %30 : vector<1x324x128xf32> to vector<324x128xf32>
    %32 = vector.shape_cast %29 : vector<324x128xf32> to vector<1x324x128xf32>
    tpu.vector_store %arg4[%c0_28, %c0_29, %c0_30], %32 {strides = array<i32>} : memref<1x324x128xf32, #tpu.memory_space<vmem>>, vector<1x324x128xf32>,
    %c0_31 = arith.constant 0 : index
    %c23 = arith.constant 23 : index
    %c0_32 = arith.constant 0 : index
    %33 = vector.load %arg1[%c0_31, %c23, %c0_32] : memref<1x372x4xf32, #tpu.memory_space<vmem>>, vector<1x324x4xf32>
    %34 = vector.shape_cast %33 : vector<1x324x4xf32> to vector<324x4xf32>
    %c0_33 = arith.constant 0 : index
    %c0_34 = arith.constant 0 : index
    %c0_35 = arith.constant 0 : index
    %35 = vector.load %arg4[%c0_33, %c0_34, %c0_35] : memref<1x324x128xf32, #tpu.memory_space<vmem>>, vector<1x324x128xf32>
    %36 = vector.shape_cast %35 : vector<1x324x128xf32> to vector<324x128xf32>
    %c3 = arith.constant 3 : index
    %c0_36 = arith.constant 0 : index
    %c0_37 = arith.constant 0 : index
    %37 = vector.load %arg2[%c3, %c0_36, %c0_37] : memref<9x4x128xf32, #tpu.memory_space<vmem>>, vector<1x4x128xf32>
    %38 = vector.shape_cast %37 : vector<1x4x128xf32> to vector<4x128xf32>
    %cst_38 = arith.constant dense<0.000000e+00> : vector<324x128xf32>
    %39 = tpu.matmul %34, %38, %cst_38 {dimension_numbers = #tpu.dot_dimension_numbers<[1], [0], [0], [1], [0, 0, 1, 1], [], []>} : vector<324x4xf32>, vector<4x128xf32>, vector<324x128xf32> -> vector<324x128xf32>
    %40 = arith.addf %36, %39 : vector<324x128xf32>
    %c0_39 = arith.constant 0 : index
    %c0_40 = arith.constant 0 : index
    %c0_41 = arith.constant 0 : index
    %41 = vector.load %arg4[%c0_39, %c0_40, %c0_41] : memref<1x324x128xf32, #tpu.memory_space<vmem>>, vector<1x324x128xf32>
    %42 = vector.shape_cast %41 : vector<1x324x128xf32> to vector<324x128xf32>
    %43 = vector.shape_cast %40 : vector<324x128xf32> to vector<1x324x128xf32>
    tpu.vector_store %arg4[%c0_39, %c0_40, %c0_41], %43 {strides = array<i32>} : memref<1x324x128xf32, #tpu.memory_space<vmem>>, vector<1x324x128xf32>,
    %c0_42 = arith.constant 0 : index
    %c24 = arith.constant 24 : index
    %c0_43 = arith.constant 0 : index
    %44 = vector.load %arg1[%c0_42, %c24, %c0_43] : memref<1x372x4xf32, #tpu.memory_space<vmem>>, vector<1x324x4xf32>
    %45 = vector.shape_cast %44 : vector<1x324x4xf32> to vector<324x4xf32>
    %c0_44 = arith.constant 0 : index
    %c0_45 = arith.constant 0 : index
    %c0_46 = arith.constant 0 : index
    %46 = vector.load %arg4[%c0_44, %c0_45, %c0_46] : memref<1x324x128xf32, #tpu.memory_space<vmem>>, vector<1x324x128xf32>
    %47 = vector.shape_cast %46 : vector<1x324x128xf32> to vector<324x128xf32>
    %c4 = arith.constant 4 : index
    %c0_47 = arith.constant 0 : index
    %c0_48 = arith.constant 0 : index
    %48 = vector.load %arg2[%c4, %c0_47, %c0_48] : memref<9x4x128xf32, #tpu.memory_space<vmem>>, vector<1x4x128xf32>
    %49 = vector.shape_cast %48 : vector<1x4x128xf32> to vector<4x128xf32>
    %cst_49 = arith.constant dense<0.000000e+00> : vector<324x128xf32>
    %50 = tpu.matmul %45, %49, %cst_49 {dimension_numbers = #tpu.dot_dimension_numbers<[1], [0], [0], [1], [0, 0, 1, 1], [], []>} : vector<324x4xf32>, vector<4x128xf32>, vector<324x128xf32> -> vector<324x128xf32>
    %51 = arith.addf %47, %50 : vector<324x128xf32>
    %c0_50 = arith.constant 0 : index
    %c0_51 = arith.constant 0 : index
    %c0_52 = arith.constant 0 : index
    %52 = vector.load %arg4[%c0_50, %c0_51, %c0_52] : memref<1x324x128xf32, #tpu.memory_space<vmem>>, vector<1x324x128xf32>
    %53 = vector.shape_cast %52 : vector<1x324x128xf32> to vector<324x128xf32>
    %54 = vector.shape_cast %51 : vector<324x128xf32> to vector<1x324x128xf32>
    tpu.vector_store %arg4[%c0_50, %c0_51, %c0_52], %54 {strides = array<i32>} : memref<1x324x128xf32, #tpu.memory_space<vmem>>, vector<1x324x128xf32>,
    %c0_53 = arith.constant 0 : index
    %c25 = arith.constant 25 : index
    %c0_54 = arith.constant 0 : index
    %55 = vector.load %arg1[%c0_53, %c25, %c0_54] : memref<1x372x4xf32, #tpu.memory_space<vmem>>, vector<1x324x4xf32>
    %56 = vector.shape_cast %55 : vector<1x324x4xf32> to vector<324x4xf32>
    %c0_55 = arith.constant 0 : index
    %c0_56 = arith.constant 0 : index
    %c0_57 = arith.constant 0 : index
    %57 = vector.load %arg4[%c0_55, %c0_56, %c0_57] : memref<1x324x128xf32, #tpu.memory_space<vmem>>, vector<1x324x128xf32>
    %58 = vector.shape_cast %57 : vector<1x324x128xf32> to vector<324x128xf32>
    %c5_58 = arith.constant 5 : index
    %c0_59 = arith.constant 0 : index
    %c0_60 = arith.constant 0 : index
    %59 = vector.load %arg2[%c5_58, %c0_59, %c0_60] : memref<9x4x128xf32, #tpu.memory_space<vmem>>, vector<1x4x128xf32>
    %60 = vector.shape_cast %59 : vector<1x4x128xf32> to vector<4x128xf32>
    %cst_61 = arith.constant dense<0.000000e+00> : vector<324x128xf32>
    %61 = tpu.matmul %56, %60, %cst_61 {dimension_numbers = #tpu.dot_dimension_numbers<[1], [0], [0], [1], [0, 0, 1, 1], [], []>} : vector<324x4xf32>, vector<4x128xf32>, vector<324x128xf32> -> vector<324x128xf32>
    %62 = arith.addf %58, %61 : vector<324x128xf32>
    %c0_62 = arith.constant 0 : index
    %c0_63 = arith.constant 0 : index
    %c0_64 = arith.constant 0 : index
    %63 = vector.load %arg4[%c0_62, %c0_63, %c0_64] : memref<1x324x128xf32, #tpu.memory_space<vmem>>, vector<1x324x128xf32>
    %64 = vector.shape_cast %63 : vector<1x324x128xf32> to vector<324x128xf32>
    %65 = vector.shape_cast %62 : vector<324x128xf32> to vector<1x324x128xf32>
    tpu.vector_store %arg4[%c0_62, %c0_63, %c0_64], %65 {strides = array<i32>} : memref<1x324x128xf32, #tpu.memory_space<vmem>>, vector<1x324x128xf32>,
    %c0_65 = arith.constant 0 : index
    %c41 = arith.constant 41 : index
    %c0_66 = arith.constant 0 : index
    %66 = vector.load %arg1[%c0_65, %c41, %c0_66] : memref<1x372x4xf32, #tpu.memory_space<vmem>>, vector<1x324x4xf32>
    %67 = vector.shape_cast %66 : vector<1x324x4xf32> to vector<324x4xf32>
    %c0_67 = arith.constant 0 : index
    %c0_68 = arith.constant 0 : index
    %c0_69 = arith.constant 0 : index
    %68 = vector.load %arg4[%c0_67, %c0_68, %c0_69] : memref<1x324x128xf32, #tpu.memory_space<vmem>>, vector<1x324x128xf32>
    %69 = vector.shape_cast %68 : vector<1x324x128xf32> to vector<324x128xf32>
    %c6_70 = arith.constant 6 : index
    %c0_71 = arith.constant 0 : index
    %c0_72 = arith.constant 0 : index
    %70 = vector.load %arg2[%c6_70, %c0_71, %c0_72] : memref<9x4x128xf32, #tpu.memory_space<vmem>>, vector<1x4x128xf32>
    %71 = vector.shape_cast %70 : vector<1x4x128xf32> to vector<4x128xf32>
    %cst_73 = arith.constant dense<0.000000e+00> : vector<324x128xf32>
    %72 = tpu.matmul %67, %71, %cst_73 {dimension_numbers = #tpu.dot_dimension_numbers<[1], [0], [0], [1], [0, 0, 1, 1], [], []>} : vector<324x4xf32>, vector<4x128xf32>, vector<324x128xf32> -> vector<324x128xf32>
    %73 = arith.addf %69, %72 : vector<324x128xf32>
    %c0_74 = arith.constant 0 : index
    %c0_75 = arith.constant 0 : index
    %c0_76 = arith.constant 0 : index
    %74 = vector.load %arg4[%c0_74, %c0_75, %c0_76] : memref<1x324x128xf32, #tpu.memory_space<vmem>>, vector<1x324x128xf32>
    %75 = vector.shape_cast %74 : vector<1x324x128xf32> to vector<324x128xf32>
    %76 = vector.shape_cast %73 : vector<324x128xf32> to vector<1x324x128xf32>
    tpu.vector_store %arg4[%c0_74, %c0_75, %c0_76], %76 {strides = array<i32>} : memref<1x324x128xf32, #tpu.memory_space<vmem>>, vector<1x324x128xf32>,
    %c0_77 = arith.constant 0 : index
    %c42 = arith.constant 42 : index
    %c0_78 = arith.constant 0 : index
    %77 = vector.load %arg1[%c0_77, %c42, %c0_78] : memref<1x372x4xf32, #tpu.memory_space<vmem>>, vector<1x324x4xf32>
    %78 = vector.shape_cast %77 : vector<1x324x4xf32> to vector<324x4xf32>
    %c0_79 = arith.constant 0 : index
    %c0_80 = arith.constant 0 : index
    %c0_81 = arith.constant 0 : index
    %79 = vector.load %arg4[%c0_79, %c0_80, %c0_81] : memref<1x324x128xf32, #tpu.memory_space<vmem>>, vector<1x324x128xf32>
    %80 = vector.shape_cast %79 : vector<1x324x128xf32> to vector<324x128xf32>
    %c7_82 = arith.constant 7 : index
    %c0_83 = arith.constant 0 : index
    %c0_84 = arith.constant 0 : index
    %81 = vector.load %arg2[%c7_82, %c0_83, %c0_84] : memref<9x4x128xf32, #tpu.memory_space<vmem>>, vector<1x4x128xf32>
    %82 = vector.shape_cast %81 : vector<1x4x128xf32> to vector<4x128xf32>
    %cst_85 = arith.constant dense<0.000000e+00> : vector<324x128xf32>
    %83 = tpu.matmul %78, %82, %cst_85 {dimension_numbers = #tpu.dot_dimension_numbers<[1], [0], [0], [1], [0, 0, 1, 1], [], []>} : vector<324x4xf32>, vector<4x128xf32>, vector<324x128xf32> -> vector<324x128xf32>
    %84 = arith.addf %80, %83 : vector<324x128xf32>
    %c0_86 = arith.constant 0 : index
    %c0_87 = arith.constant 0 : index
    %c0_88 = arith.constant 0 : index
    %85 = vector.load %arg4[%c0_86, %c0_87, %c0_88] : memref<1x324x128xf32, #tpu.memory_space<vmem>>, vector<1x324x128xf32>
    %86 = vector.shape_cast %85 : vector<1x324x128xf32> to vector<324x128xf32>
    %87 = vector.shape_cast %84 : vector<324x128xf32> to vector<1x324x128xf32>
    tpu.vector_store %arg4[%c0_86, %c0_87, %c0_88], %87 {strides = array<i32>} : memref<1x324x128xf32, #tpu.memory_space<vmem>>, vector<1x324x128xf32>,
    %c0_89 = arith.constant 0 : index
    %c43 = arith.constant 43 : index
    %c0_90 = arith.constant 0 : index
    %88 = vector.load %arg1[%c0_89, %c43, %c0_90] : memref<1x372x4xf32, #tpu.memory_space<vmem>>, vector<1x324x4xf32>
    %89 = vector.shape_cast %88 : vector<1x324x4xf32> to vector<324x4xf32>
    %c0_91 = arith.constant 0 : index
    %c0_92 = arith.constant 0 : index
    %c0_93 = arith.constant 0 : index
    %90 = vector.load %arg4[%c0_91, %c0_92, %c0_93] : memref<1x324x128xf32, #tpu.memory_space<vmem>>, vector<1x324x128xf32>
    %91 = vector.shape_cast %90 : vector<1x324x128xf32> to vector<324x128xf32>
    %c8 = arith.constant 8 : index
    %c0_94 = arith.constant 0 : index
    %c0_95 = arith.constant 0 : index
    %92 = vector.load %arg2[%c8, %c0_94, %c0_95] : memref<9x4x128xf32, #tpu.memory_space<vmem>>, vector<1x4x128xf32>
    %93 = vector.shape_cast %92 : vector<1x4x128xf32> to vector<4x128xf32>
    %cst_96 = arith.constant dense<0.000000e+00> : vector<324x128xf32>
    %94 = tpu.matmul %89, %93, %cst_96 {dimension_numbers = #tpu.dot_dimension_numbers<[1], [0], [0], [1], [0, 0, 1, 1], [], []>} : vector<324x4xf32>, vector<4x128xf32>, vector<324x128xf32> -> vector<324x128xf32>
    %95 = arith.addf %91, %94 : vector<324x128xf32>
    %c0_97 = arith.constant 0 : index
    %c0_98 = arith.constant 0 : index
    %c0_99 = arith.constant 0 : index
    %96 = vector.load %arg4[%c0_97, %c0_98, %c0_99] : memref<1x324x128xf32, #tpu.memory_space<vmem>>, vector<1x324x128xf32>
    %97 = vector.shape_cast %96 : vector<1x324x128xf32> to vector<324x128xf32>
    %98 = vector.shape_cast %95 : vector<324x128xf32> to vector<1x324x128xf32>
    tpu.vector_store %arg4[%c0_97, %c0_98, %c0_99], %98 {strides = array<i32>} : memref<1x324x128xf32, #tpu.memory_space<vmem>>, vector<1x324x128xf32>,
    return
  }
  func.func @transform_0(%arg0: i32) -> (i32, i32, i32) {
    %c0_i32 = arith.constant 0 : i32
    %c0_i32_0 = arith.constant 0 : i32
    %c0_i32_1 = arith.constant 0 : i32
    return %arg0, %c0_i32, %c0_i32_0 : i32, i32, i32
  }
  func.func @transform_1(%arg0: i32) -> (i32, i32, i32) {
    %c0_i32 = arith.constant 0 : i32
    %c0_i32_0 = arith.constant 0 : i32
    %c0_i32_1 = arith.constant 0 : i32
    %c0_i32_2 = arith.constant 0 : i32
    return %c0_i32, %c0_i32_0, %c0_i32_1 : i32, i32, i32
  }
  func.func @transform_2(%arg0: i32) -> (i32, i32) {
    %c0_i32 = arith.constant 0 : i32
    %c0_i32_0 = arith.constant 0 : i32
    %c0_i32_1 = arith.constant 0 : i32
    return %c0_i32, %c0_i32_0 : i32, i32
  }
  func.func @transform_3(%arg0: i32) -> (i32, i32, i32) {
    %c0_i32 = arith.constant 0 : i32
    %c0_i32_0 = arith.constant 0 : i32
    %c0_i32_1 = arith.constant 0 : i32
    return %arg0, %c0_i32, %c0_i32_0 : i32, i32, i32
  }
}

module attributes {stable_mosaic.version = 11 : i64} {
  func.func @kernel(%arg0: i32, %arg1: i32, %arg2: memref<1x4x256x36xbf16, #tpu.memory_space<vmem>>, %arg3: memref<1x4x256x9xf32, #tpu.memory_space<vmem>>, %arg4: memref<9x36xf32, #tpu.memory_space<vmem>>, %arg5: memref<36x128xbf16, #tpu.memory_space<vmem>>, %arg6: memref<1x256x128xf32, #tpu.memory_space<vmem>>) attributes {dimension_semantics = [#tpu.dimension_semantics<parallel>, #tpu.dimension_semantics<parallel>], iteration_bounds = array<i64: 2, 1>, scalar_prefetch = 0 : i64, scratch_operands = 0 : i64, tpu.core_type = #tpu.core_type<tc>, window_params = [{transform_indices = @transform_0, window_bounds = array<i64: 1, 4, 256, 36>}, {transform_indices = @transform_1, window_bounds = array<i64: 1, 4, 256, 9>}, {pipeline_mode = #tpu.pipeline_mode<synchronous>, transform_indices = @transform_2, window_bounds = array<i64: 9, 36>}, {pipeline_mode = #tpu.pipeline_mode<synchronous>, transform_indices = @transform_3, window_bounds = array<i64: 36, 128>}, {transform_indices = @transform_4, window_bounds = array<i64: 1, 256, 128>}]} {
    %c0 = arith.constant 0 : index
    %c0_0 = arith.constant 0 : index
    %c0_1 = arith.constant 0 : index
    %c0_2 = arith.constant 0 : index
    %0 = vector.load %arg3[%c0, %c0_0, %c0_1, %c0_2] : memref<1x4x256x9xf32, #tpu.memory_space<vmem>>, vector<1x1x256x9xf32>
    %1 = vector.shape_cast %0 : vector<1x1x256x9xf32> to vector<256x9xf32>
    %c0_3 = arith.constant 0 : index
    %c0_4 = arith.constant 0 : index
    %2 = vector.load %arg4[%c0_3, %c0_4] : memref<9x36xf32, #tpu.memory_space<vmem>>, vector<9x36xf32>
    %cst = arith.constant dense<0.000000e+00> : vector<256x36xf32>
    %3 = tpu.matmul %1, %2, %cst {dimension_numbers = #tpu.dot_dimension_numbers<[1], [0], [0], [1], [0, 0, 1, 1], [], []>} : vector<256x9xf32>, vector<9x36xf32>, vector<256x36xf32> -> vector<256x36xf32>
    %c0_5 = arith.constant 0 : index
    %c0_6 = arith.constant 0 : index
    %c0_7 = arith.constant 0 : index
    %c0_8 = arith.constant 0 : index
    %4 = vector.load %arg2[%c0_5, %c0_6, %c0_7, %c0_8] : memref<1x4x256x36xbf16, #tpu.memory_space<vmem>>, vector<1x1x256x36xbf16>
    %5 = vector.shape_cast %4 : vector<1x1x256x36xbf16> to vector<256x36xbf16>
    %6 = arith.extf %5 : vector<256x36xbf16> to vector<256x36xf32>
    %7 = arith.mulf %3, %6 : vector<256x36xf32>
    %c0_9 = arith.constant 0 : index
    %c1 = arith.constant 1 : index
    %c0_10 = arith.constant 0 : index
    %c0_11 = arith.constant 0 : index
    %8 = vector.load %arg3[%c0_9, %c1, %c0_10, %c0_11] : memref<1x4x256x9xf32, #tpu.memory_space<vmem>>, vector<1x1x256x9xf32>
    %9 = vector.shape_cast %8 : vector<1x1x256x9xf32> to vector<256x9xf32>
    %c0_12 = arith.constant 0 : index
    %c0_13 = arith.constant 0 : index
    %10 = vector.load %arg4[%c0_12, %c0_13] : memref<9x36xf32, #tpu.memory_space<vmem>>, vector<9x36xf32>
    %cst_14 = arith.constant dense<0.000000e+00> : vector<256x36xf32>
    %11 = tpu.matmul %9, %10, %cst_14 {dimension_numbers = #tpu.dot_dimension_numbers<[1], [0], [0], [1], [0, 0, 1, 1], [], []>} : vector<256x9xf32>, vector<9x36xf32>, vector<256x36xf32> -> vector<256x36xf32>
    %c0_15 = arith.constant 0 : index
    %c1_16 = arith.constant 1 : index
    %c0_17 = arith.constant 0 : index
    %c0_18 = arith.constant 0 : index
    %12 = vector.load %arg2[%c0_15, %c1_16, %c0_17, %c0_18] : memref<1x4x256x36xbf16, #tpu.memory_space<vmem>>, vector<1x1x256x36xbf16>
    %13 = vector.shape_cast %12 : vector<1x1x256x36xbf16> to vector<256x36xbf16>
    %14 = arith.extf %13 : vector<256x36xbf16> to vector<256x36xf32>
    %15 = arith.mulf %11, %14 : vector<256x36xf32>
    %16 = arith.addf %7, %15 : vector<256x36xf32>
    %c0_19 = arith.constant 0 : index
    %c2 = arith.constant 2 : index
    %c0_20 = arith.constant 0 : index
    %c0_21 = arith.constant 0 : index
    %17 = vector.load %arg3[%c0_19, %c2, %c0_20, %c0_21] : memref<1x4x256x9xf32, #tpu.memory_space<vmem>>, vector<1x1x256x9xf32>
    %18 = vector.shape_cast %17 : vector<1x1x256x9xf32> to vector<256x9xf32>
    %c0_22 = arith.constant 0 : index
    %c0_23 = arith.constant 0 : index
    %19 = vector.load %arg4[%c0_22, %c0_23] : memref<9x36xf32, #tpu.memory_space<vmem>>, vector<9x36xf32>
    %cst_24 = arith.constant dense<0.000000e+00> : vector<256x36xf32>
    %20 = tpu.matmul %18, %19, %cst_24 {dimension_numbers = #tpu.dot_dimension_numbers<[1], [0], [0], [1], [0, 0, 1, 1], [], []>} : vector<256x9xf32>, vector<9x36xf32>, vector<256x36xf32> -> vector<256x36xf32>
    %c0_25 = arith.constant 0 : index
    %c2_26 = arith.constant 2 : index
    %c0_27 = arith.constant 0 : index
    %c0_28 = arith.constant 0 : index
    %21 = vector.load %arg2[%c0_25, %c2_26, %c0_27, %c0_28] : memref<1x4x256x36xbf16, #tpu.memory_space<vmem>>, vector<1x1x256x36xbf16>
    %22 = vector.shape_cast %21 : vector<1x1x256x36xbf16> to vector<256x36xbf16>
    %23 = arith.extf %22 : vector<256x36xbf16> to vector<256x36xf32>
    %24 = arith.mulf %20, %23 : vector<256x36xf32>
    %25 = arith.addf %16, %24 : vector<256x36xf32>
    %c0_29 = arith.constant 0 : index
    %c3 = arith.constant 3 : index
    %c0_30 = arith.constant 0 : index
    %c0_31 = arith.constant 0 : index
    %26 = vector.load %arg3[%c0_29, %c3, %c0_30, %c0_31] : memref<1x4x256x9xf32, #tpu.memory_space<vmem>>, vector<1x1x256x9xf32>
    %27 = vector.shape_cast %26 : vector<1x1x256x9xf32> to vector<256x9xf32>
    %c0_32 = arith.constant 0 : index
    %c0_33 = arith.constant 0 : index
    %28 = vector.load %arg4[%c0_32, %c0_33] : memref<9x36xf32, #tpu.memory_space<vmem>>, vector<9x36xf32>
    %cst_34 = arith.constant dense<0.000000e+00> : vector<256x36xf32>
    %29 = tpu.matmul %27, %28, %cst_34 {dimension_numbers = #tpu.dot_dimension_numbers<[1], [0], [0], [1], [0, 0, 1, 1], [], []>} : vector<256x9xf32>, vector<9x36xf32>, vector<256x36xf32> -> vector<256x36xf32>
    %c0_35 = arith.constant 0 : index
    %c3_36 = arith.constant 3 : index
    %c0_37 = arith.constant 0 : index
    %c0_38 = arith.constant 0 : index
    %30 = vector.load %arg2[%c0_35, %c3_36, %c0_37, %c0_38] : memref<1x4x256x36xbf16, #tpu.memory_space<vmem>>, vector<1x1x256x36xbf16>
    %31 = vector.shape_cast %30 : vector<1x1x256x36xbf16> to vector<256x36xbf16>
    %32 = arith.extf %31 : vector<256x36xbf16> to vector<256x36xf32>
    %33 = arith.mulf %29, %32 : vector<256x36xf32>
    %34 = arith.addf %25, %33 : vector<256x36xf32>
    %35 = arith.truncf %34 : vector<256x36xf32> to vector<256x36xbf16>
    %c0_39 = arith.constant 0 : index
    %c0_40 = arith.constant 0 : index
    %36 = vector.load %arg5[%c0_39, %c0_40] : memref<36x128xbf16, #tpu.memory_space<vmem>>, vector<36x128xbf16>
    %cst_41 = arith.constant dense<0.000000e+00> : vector<256x128xf32>
    %37 = tpu.matmul %35, %36, %cst_41 {dimension_numbers = #tpu.dot_dimension_numbers<[1], [0], [0], [1], [0, 0, 1, 1], [], []>} : vector<256x36xbf16>, vector<36x128xbf16>, vector<256x128xf32> -> vector<256x128xf32>
    %c0_42 = arith.constant 0 : index
    %c0_43 = arith.constant 0 : index
    %c0_44 = arith.constant 0 : index
    %38 = vector.load %arg6[%c0_42, %c0_43, %c0_44] : memref<1x256x128xf32, #tpu.memory_space<vmem>>, vector<1x256x128xf32>
    %39 = vector.shape_cast %38 : vector<1x256x128xf32> to vector<256x128xf32>
    %40 = vector.shape_cast %37 : vector<256x128xf32> to vector<1x256x128xf32>
    tpu.vector_store %arg6[%c0_42, %c0_43, %c0_44], %40 {strides = array<i32>} : memref<1x256x128xf32, #tpu.memory_space<vmem>>, vector<1x256x128xf32>,
    return
  }
  func.func @transform_0(%arg0: i32, %arg1: i32) -> (i32, i32, i32, i32) {
    %c0_i32 = arith.constant 0 : i32
    %c0_i32_0 = arith.constant 0 : i32
    %c0_i32_1 = arith.constant 0 : i32
    return %arg0, %c0_i32, %arg1, %c0_i32_0 : i32, i32, i32, i32
  }
  func.func @transform_1(%arg0: i32, %arg1: i32) -> (i32, i32, i32, i32) {
    %c0_i32 = arith.constant 0 : i32
    %c0_i32_0 = arith.constant 0 : i32
    %c0_i32_1 = arith.constant 0 : i32
    return %arg0, %c0_i32, %arg1, %c0_i32_0 : i32, i32, i32, i32
  }
  func.func @transform_2(%arg0: i32, %arg1: i32) -> (i32, i32) {
    %c0_i32 = arith.constant 0 : i32
    %c0_i32_0 = arith.constant 0 : i32
    %c0_i32_1 = arith.constant 0 : i32
    return %c0_i32, %c0_i32_0 : i32, i32
  }
  func.func @transform_3(%arg0: i32, %arg1: i32) -> (i32, i32) {
    %c0_i32 = arith.constant 0 : i32
    %c0_i32_0 = arith.constant 0 : i32
    %c0_i32_1 = arith.constant 0 : i32
    return %c0_i32, %c0_i32_0 : i32, i32
  }
  func.func @transform_4(%arg0: i32, %arg1: i32) -> (i32, i32, i32) {
    %c0_i32 = arith.constant 0 : i32
    %c0_i32_0 = arith.constant 0 : i32
    return %arg0, %arg1, %c0_i32 : i32, i32, i32
  }
}

</mosaic_0001>

<bundles_post_ra>
// kernel: tile.8
= control target key start
LH: loop header
LB: loop body
LE: loop exit
PB: predicated region body
PF: predicated region fallthrough
CT: control target
= control target key end

     0   :  { %s22_s0 = inlined_call_operand.vmem [shape: f32[3], index: 0, kind: input, shape index: {}]   ;;  %s23_s1 = inlined_call_operand.vmem [shape: f32[3,3], index: 1, kind: output, shape index: {}]  }
   0x1   :  { %v4_v0 = vld [vmem:[%s22_s0] ss:$0 sm:$0xff] }
   0x2   :  { %5 = vst [vmem:[%s23_s1] sm:$0xf] %v4_v0 }

// kernel: deform_conv2d_forward.2
= control target key start
LH: loop header
LB: loop body
LE: loop exit
PB: predicated region body
PF: predicated region fallthrough
CT: control target
= control target key end

     0   :  { %s7995_s12 = smov 0   ;;  %s10029_s0 = inlined_call_operand.vmem [shape: f32[2,372,4], index: 0, kind: input, shape index: {}]   ;;  %s10030_s1 = inlined_call_operand.vmem [shape: f32[9,4,128], index: 1, kind: input, shape index: {}]   ;;  %s10031_s2 = inlined_call_operand.vmem [shape: f32[1,128], index: 2, kind: input, shape index: {}]   ;;  %s10032_s3 = inlined_call_operand.vmem [shape: f32[2,324,128], index: 3, kind: output, shape index: {}]  }
   0x1 LB: > { %s5251_s13 = sadd.s32 4294967295, %s7971_s12   ;;  %p5255_p0 = scmp.ge.s32.totalorder %s7971_s12, 1  ;;  %s7971_s12 = sphi %s7995_s12, %s13_s12  }
   0x2   : > { %p137_p1 = scmp.lt.s32.totalorder %s7971_s12, 3 }
   0x4   : > { %p138_p2 = pnand %p5255_p0, %p137_p1 }
   0x5   : > { %v213_v0 = vld [vmem:[%s10030_s1] sm:$0xf] (!%p138_p2)  ;;  %vm338_vm0 = vcmask (!%p138_p2), 1043456   ;;  %p161_p3 = scmp.lt.s32.totalorder (!%p138_p2), %s5251_s13, 1  ;;  %v7973_v1 = vmov (!%p138_p2), 0.0   ;;  %vm7974_vm1 = vmmov (!%p138_p2), 0  }
   0x6   : > { %141 = sbr.rel (%p138_p2) target bundleno = 1005 (0x3ed), region = 32  ;;  %6025 = vmatprep.subr.mxu1 (!%p138_p2), %v7973_v1  ;;  %6525 = vmatprep.subr.mxu0 (!%p138_p2), %v7973_v1  ;;  %v5430_v2 = vld [vmem:[%s10030_s1 + $0x10] sm:$0xf] (!%p138_p2)  ;;  %vm214_vm2 = vcmask (!%p138_p2), 31744   ;;  %v5301_v3 = vld [vmem:[%s10030_s1 + $0x4] sm:$0xf] (!%p138_p2) }
   0x7   : > { %6026 = vmatpush3.msk.msra.mxu1 (!%p138_p2), %vm338_vm0, %v213_v0  ;;  %6027 = vmatprep.mubr.msk.f32.mxu1 (!%p138_p2), %vm7974_vm1, %v7973_v1  ;;  %v5473_v6 = vld [vmem:[%s10030_s1 + $0x14] sm:$0xf] (!%p138_p2)  ;;  %v5516_v49 = vld [vmem:[%s10030_s1 + $0x18] sm:$0xf] (!%p138_p2) }
   0x8   : > { %6150 = vmatprep.subr.mxu1 (!%p138_p2), %v7973_v1  ;;  %6526 = vmatpush3.msk.msra.mxu0 (!%p138_p2), %vm338_vm0, %v5430_v2 }
   0x9   : > { %6527 = vmatprep.mubr.msk.f32.mxu0 (!%p138_p2), %vm7974_vm1, %v7973_v1  ;;  %6650 = vmatprep.subr.mxu0 (!%p138_p2), %v7973_v1 }
   0xd   : > { %s10034_s13 = smov (!%p161_p3, %s5251_s13), 1 }
   0xe   : > { %s7952_s18 = smul.u32 376, %s10034_s13 }
   0xf   : > { %s7953_s30 = smul.u32 328, %s10034_s13 }
  0x10   : > { %s8025_s21 = scalar_lea.vmem %s10029_s0, %s7952_s18 }
  0x11   : > { %v171_v4 = vld [vmem:[%s8025_s21 + $0x5] sm:$0xff]  ;;  %v2386_v5 = vld [vmem:[%s8025_s21 + $0x18] sm:$0xff]  ;;  %v172_v7 = vld [vmem:[%s8025_s21 + $0xd] sm:$0xff]  ;;  %s8655_s6 = scalar_lea.vmem %s10032_s3, %s7953_s30 }
  0x12   : > { %6028 = vmatmul.mubr.msk.f32.vlgmr.msra.gmra.mrb[0].mxu1 %vm214_vm2, %v171_v4  ;;  %6528 = vmatmul.mubr.msk.f32.vlgmr.msra.gmra.mrb[0].mxu0 %vm214_vm2, %v2386_v5  ;;  %v2387_v8 = vld [vmem:[%s8025_s21 + $0x20] sm:$0xff]  ;;  %v173_v9 = vld [vmem:[%s8025_s21 + $0x15] sm:$0xff]  ;;  %v2388_v10 = vld [vmem:[%s8025_s21 + $0x28] sm:$0xff] }
  0x13   : > { %6151 = vmatpush3.msk.msra.mxu1 %vm338_vm0, %v5301_v3  ;;  %6030 = vmatprep.mubr.msk.f32.mxu1 %vm7974_vm1, %v7973_v1  ;;  %v174_v11 = vld [vmem:[%s8025_s21 + $0x1d] sm:$0xff]  ;;  %v2389_v12 = vld [vmem:[%s8025_s21 + $0x30] sm:$0xff]  ;;  %v175_v13 = vld [vmem:[%s8025_s21 + $0x25] sm:$0xff] }
  0x14   : > { %6530 = vmatprep.mubr.msk.f32.mxu0 %vm7974_vm1, %v7973_v1  ;;  %6651 = vmatpush3.msk.msra.mxu0 %vm338_vm0, %v5473_v6  ;;  %v2390_v14 = vld [vmem:[%s8025_s21 + $0x38] sm:$0xff]  ;;  %v176_v15 = vld [vmem:[%s8025_s21 + $0x2d] sm:$0xff]  ;;  %v2391_v16 = vld [vmem:[%s8025_s21 + $0x40] sm:$0xff] }
  0x15   : > { %6775 = vmatprep.subr.mxu0 %v7973_v1  ;;  %6275 = vmatprep.subr.mxu1 %v7973_v1  ;;  %v177_v17 = vld [vmem:[%s8025_s21 + $0x35] sm:$0xff]  ;;  %v2392_v18 = vld [vmem:[%s8025_s21 + $0x48] sm:$0xff]  ;;  %v178_v19 = vld [vmem:[%s8025_s21 + $0x3d] sm:$0xff] }
  0x16   : > { %6031 = vmatmul.mubr.msk.f32.gmra.mrb[2].mxu1 %vm214_vm2, %v172_v7  ;;  %6531 = vmatmul.mubr.msk.f32.gmra.mrb[2].mxu0 %vm214_vm2, %v2387_v8  ;;  %v2393_v20 = vld [vmem:[%s8025_s21 + $0x50] sm:$0xff]  ;;  %v179_v21 = vld [vmem:[%s8025_s21 + $0x45] sm:$0xff]  ;;  %v2394_v22 = vld [vmem:[%s8025_s21 + $0x58] sm:$0xff] }
  0x17   : > { %6033 = vmatprep.mubr.msk.f32.mxu1 %vm7974_vm1, %v7973_v1  ;;  %6533 = vmatprep.mubr.msk.f32.mxu0 %vm7974_vm1, %v7973_v1  ;;  %v180_v23 = vld [vmem:[%s8025_s21 + $0x4d] sm:$0xff]  ;;  %v2395_v24 = vld [vmem:[%s8025_s21 + $0x60] sm:$0xff]  ;;  %v181_v25 = vld [vmem:[%s8025_s21 + $0x55] sm:$0xff] }
  0x18   : > { %v2396_v26 = vld [vmem:[%s8025_s21 + $0x68] sm:$0xff]  ;;  %v182_v27 = vld [vmem:[%s8025_s21 + $0x5d] sm:$0xff]  ;;  %v2397_v28 = vld [vmem:[%s8025_s21 + $0x70] sm:$0xff] }
  0x19   : > { %v183_v29 = vld [vmem:[%s8025_s21 + $0x65] sm:$0xff]  ;;  %v2398_v30 = vld [vmem:[%s8025_s21 + $0x78] sm:$0xff]  ;;  %v184_v31 = vld [vmem:[%s8025_s21 + $0x6d] sm:$0xff] }
  0x1a   : > { %6034 = vmatmul.mubr.msk.f32.gmra.mrb[4].mxu1 %vm214_vm2, %v173_v9  ;;  %6534 = vmatmul.mubr.msk.f32.gmra.mrb[4].mxu0 %vm214_vm2, %v2388_v10  ;;  %v2399_v32 = vld [vmem:[%s8025_s21 + $0x80] sm:$0xff]  ;;  %v185_v33 = vld [vmem:[%s8025_s21 + $0x75] sm:$0xff]  ;;  %v2400_v34 = vld [vmem:[%s8025_s21 + $0x88] sm:$0xff] }
  0x1b   : > { %6036 = vmatprep.mubr.msk.f32.mxu1 %vm7974_vm1, %v7973_v1  ;;  %6536 = vmatprep.mubr.msk.f32.mxu0 %vm7974_vm1, %v7973_v1  ;;  %v186_v35 = vld [vmem:[%s8025_s21 + $0x7d] sm:$0xff]  ;;  %v2401_v36 = vld [vmem:[%s8025_s21 + $0x90] sm:$0xff]  ;;  %v187_v37 = vld [vmem:[%s8025_s21 + $0x85] sm:$0xff] }
  0x1c   : > { %v2402_v38 = vld [vmem:[%s8025_s21 + $0x98] sm:$0xff]  ;;  %v188_v39 = vld [vmem:[%s8025_s21 + $0x8d] sm:$0xff]  ;;  %v2403_v40 = vld [vmem:[%s8025_s21 + $0xa0] sm:$0xff] }
  0x1d   : > { %v189_v41 = vld [vmem:[%s8025_s21 + $0x95] sm:$0xff]  ;;  %v2404_v42 = vld [vmem:[%s8025_s21 + $0xa8] sm:$0xff]  ;;  %v190_v43 = vld [vmem:[%s8025_s21 + $0x9d] sm:$0xff] }
  0x1e   : > { %6037 = vmatmul.mubr.msk.f32.gmra.mrb[6].mxu1 %vm214_vm2, %v174_v11  ;;  %6537 = vmatmul.mubr.msk.f32.gmra.mrb[6].mxu0 %vm214_vm2, %v2389_v12  ;;  %v2405_v44 = vld [vmem:[%s8025_s21 + $0xb0] sm:$0xff]  ;;  %v191_v45 = vld [vmem:[%s8025_s21 + $0xa5] sm:$0xff]  ;;  %v2406_v46 = vld [vmem:[%s8025_s21 + $0xb8] sm:$0xff] }
  0x1f   : > { %6039 = vmatprep.mubr.msk.f32.mxu1 %vm7974_vm1, %v7973_v1  ;;  %6539 = vmatprep.mubr.msk.f32.mxu0 %vm7974_vm1, %v7973_v1  ;;  %v192_v47 = vld [vmem:[%s8025_s21 + $0xad] sm:$0xff]  ;;  %v2948_v48 = vld [vmem:[%s8025_s21 + $0x19] sm:$0xff]  ;;  %v2949_v51 = vld [vmem:[%s8025_s21 + $0x21] sm:$0xff] }
  0x20   : > { %v193_v50 = vld [vmem:[%s8025_s21 + $0xb5] sm:$0xff]  ;;  %v194_v52 = vld [vmem:[%s8025_s21 + $0xbd] sm:$0xff]  ;;  %v8228_v53 = vld [vmem:[%s8025_s21 + $0x29] sm:$0xff] }
  0x21   : > { %v195_v54 = vld [vmem:[%s8025_s21 + $0xc5] sm:$0xff]  ;;  %v8239_v55 = vld [vmem:[%s8025_s21 + $0x31] sm:$0xff]  ;;  %v8250_v57 = vld [vmem:[%s8025_s21 + $0x39] sm:$0xff] }
  0x22   : > { %6040 = vmatmul.mubr.msk.f32.gmra.mrb[8].mxu1 %vm214_vm2, %v175_v13  ;;  %6540 = vmatmul.mubr.msk.f32.gmra.mrb[8].mxu0 %vm214_vm2, %v2390_v14  ;;  %v196_v56 = vld [vmem:[%s8025_s21 + $0xcd] sm:$0xff]  ;;  %v197_v58 = vld [vmem:[%s8025_s21 + $0xd5] sm:$0xff]  ;;  %v8261_v59 = vld [vmem:[%s8025_s21 + $0x41] sm:$0xff] }
  0x23   : > { %6042 = vmatprep.mubr.msk.f32.mxu1 %vm7974_vm1, %v7973_v1  ;;  %6542 = vmatprep.mubr.msk.f32.mxu0 %vm7974_vm1, %v7973_v1  ;;  %v198_v60 = vld [vmem:[%s8025_s21 + $0xdd] sm:$0xff]  ;;  %v8272_v61 = vld [vmem:[%s8025_s21 + $0x49] sm:$0xff]  ;;  %v8283_v63 = vld [vmem:[%s8025_s21 + $0x51] sm:$0xff] }
  0x24   : > { %v199_v62 = vld [vmem:[%s8025_s21 + $0xe5] sm:$0xff]  ;;  %v200_v0 = vld [vmem:[%s8025_s21 + $0xed] sm:$0xff]  ;;  %v8294_v2 = vld [vmem:[%s8025_s21 + $0x59] sm:$0xff] }
  0x25   : > { %v201_v3 = vld [vmem:[%s8025_s21 + $0xf5] sm:$0xff]  ;;  %v8305_v4 = vld [vmem:[%s8025_s21 + $0x61] sm:$0xff]  ;;  %v8316_v6 = vld [vmem:[%s8025_s21 + $0x69] sm:$0xff] }
  0x26   : > { %6043 = vmatmul.mubr.msk.f32.gmra.mrb[10].mxu1 %vm214_vm2, %v176_v15  ;;  %6543 = vmatmul.mubr.msk.f32.gmra.mrb[10].mxu0 %vm214_vm2, %v2391_v16  ;;  %v202_v5 = vld [vmem:[%s8025_s21 + $0xfd] sm:$0xff]  ;;  %v203_v7 = vld [vmem:[%s8025_s21 + $0x105] sm:$0xff]  ;;  %v8327_v8 = vld [vmem:[%s8025_s21 + $0x71] sm:$0xff] }
  0x27   : > { %6045 = vmatprep.mubr.msk.f32.mxu1 %vm7974_vm1, %v7973_v1  ;;  %6545 = vmatprep.mubr.msk.f32.mxu0 %vm7974_vm1, %v7973_v1  ;;  %v204_v9 = vld [vmem:[%s8025_s21 + $0x10d] sm:$0xff]  ;;  %v8338_v10 = vld [vmem:[%s8025_s21 + $0x79] sm:$0xff]  ;;  %v8349_v12 = vld [vmem:[%s8025_s21 + $0x81] sm:$0xff] }
  0x28   : > { %v205_v11 = vld [vmem:[%s8025_s21 + $0x115] sm:$0xff]  ;;  %v206_v13 = vld [vmem:[%s8025_s21 + $0x11d] sm:$0xff]  ;;  %v8360_v14 = vld [vmem:[%s8025_s21 + $0x89] sm:$0xff] }
  0x29   : > { %v207_v15 = vld [vmem:[%s8025_s21 + $0x125] sm:$0xff]  ;;  %v8371_v16 = vld [vmem:[%s8025_s21 + $0x91] sm:$0xff] }
  0x2a   : > { %6046 = vmatmul.mubr.msk.f32.gmra.mrb[12].mxu1 %vm214_vm2, %v177_v17  ;;  %6546 = vmatmul.mubr.msk.f32.gmra.mrb[12].mxu0 %vm214_vm2, %v2392_v18  ;;  %v208_v17 = vld [vmem:[%s8025_s21 + $0x12d] sm:$0xff]  ;;  %v8382_v18 = vld [vmem:[%s8025_s21 + $0x99] sm:$0xff] }
  0x2b   : > { %6048 = vmatprep.mubr.msk.f32.mxu1 %vm7974_vm1, %v7973_v1  ;;  %6548 = vmatprep.mubr.msk.f32.mxu0 %vm7974_vm1, %v7973_v1 }
  0x2e   : > { %6049 = vmatmul.mubr.msk.f32.gmra.mrb[14].mxu1 %vm214_vm2, %v178_v19  ;;  %6549 = vmatmul.mubr.msk.f32.gmra.mrb[14].mxu0 %vm214_vm2, %v2393_v20  ;;  %v209_v19 = vld [vmem:[%s8025_s21 + $0x135] sm:$0xff]  ;;  %v8393_v20 = vld [vmem:[%s8025_s21 + $0xa1] sm:$0xff] }
  0x2f   : > { %6051 = vmatprep.mubr.msk.f32.mxu1 %vm7974_vm1, %v7973_v1  ;;  %6551 = vmatprep.mubr.msk.f32.mxu0 %vm7974_vm1, %v7973_v1 }
  0x32   : > { %6052 = vmatmul.mubr.msk.f32.gmra.mrb[16].mxu1 %vm214_vm2, %v179_v21  ;;  %6552 = vmatmul.mubr.msk.f32.gmra.mrb[16].mxu0 %vm214_vm2, %v2394_v22  ;;  %v210_v21 = vld [vmem:[%s8025_s21 + $0x13d] sm:$0xff]  ;;  %v8404_v22 = vld [vmem:[%s8025_s21 + $0xa9] sm:$0xff] }
  0x33   : > { %6054 = vmatprep.mubr.msk.f32.mxu1 %vm7974_vm1, %v7973_v1  ;;  %6554 = vmatprep.mubr.msk.f32.mxu0 %vm7974_vm1, %v7973_v1 }
  0x36   : > { %6055 = vmatmul.mubr.msk.f32.gmra.mrb[18].mxu1 %vm214_vm2, %v180_v23  ;;  %6555 = vmatmul.mubr.msk.f32.gmra.mrb[18].mxu0 %vm214_vm2, %v2395_v24  ;;  %v211_v23 = vld [vmem:[%s8025_s21 + $0x145] sm:$0xf]  ;;  %v8415_v24 = vld [vmem:[%s8025_s21 + $0xb1] sm:$0xff] }
  0x37   : > { %6057 = vmatprep.mubr.msk.f32.mxu1 %vm7974_vm1, %v7973_v1  ;;  %6557 = vmatprep.mubr.msk.f32.mxu0 %vm7974_vm1, %v7973_v1 }
  0x3a   : > { %6058 = vmatmul.mubr.msk.f32.gmra.mrb[20].mxu1 %vm214_vm2, %v181_v25  ;;  %6558 = vmatmul.mubr.msk.f32.gmra.mrb[20].mxu0 %vm214_vm2, %v2396_v26  ;;  %v700_v25 = vld [vmem:[%s8025_s21 + $0x6] sm:$0xff]  ;;  %v8426_v26 = vld [vmem:[%s8025_s21 + $0xb9] sm:$0xff] }
  0x3b   : > { %6060 = vmatprep.mubr.msk.f32.mxu1 %vm7974_vm1, %v7973_v1  ;;  %6560 = vmatprep.mubr.msk.f32.mxu0 %vm7974_vm1, %v7973_v1 }
  0x3e   : > { %6061 = vmatmul.mubr.msk.f32.gmra.mrb[22].mxu1 %vm214_vm2, %v182_v27  ;;  %6561 = vmatmul.mubr.msk.f32.gmra.mrb[22].mxu0 %vm214_vm2, %v2397_v28  ;;  %v5344_v27 = vld [vmem:[%s10030_s1 + $0x8] sm:$0xf]  ;;  %v701_v28 = vld [vmem:[%s8025_s21 + $0xe] sm:$0xff] }
  0x3f   : > { %6063 = vmatprep.mubr.msk.f32.mxu1 %vm7974_vm1, %v7973_v1  ;;  %6563 = vmatprep.mubr.msk.f32.mxu0 %vm7974_vm1, %v7973_v1 }
  0x42   : > { %6064 = vmatmul.mubr.msk.f32.gmra.mrb[24].mxu1 %vm214_vm2, %v183_v29  ;;  %6564 = vmatmul.mubr.msk.f32.gmra.mrb[24].mxu0 %vm214_vm2, %v2398_v30  ;;  %v8439_v29 = vld [vmem:[%s8025_s21 + $0xc1] sm:$0xff]  ;;  %v702_v30 = vld [vmem:[%s8025_s21 + $0x16] sm:$0xff] }
  0x43   : > { %6066 = vmatprep.mubr.msk.f32.mxu1 %vm7974_vm1, %v7973_v1  ;;  %6566 = vmatprep.mubr.msk.f32.mxu0 %vm7974_vm1, %v7973_v1 }
  0x46   : > { %6067 = vmatmul.mubr.msk.f32.gmra.mrb[26].mxu1 %vm214_vm2, %v184_v31  ;;  %6567 = vmatmul.mubr.msk.f32.gmra.mrb[26].mxu0 %vm214_vm2, %v2399_v32  ;;  %v8453_v31 = vld [vmem:[%s8025_s21 + $0xc9] sm:$0xff]  ;;  %v703_v32 = vld [vmem:[%s8025_s21 + $0x1e] sm:$0xff] }
  0x47   : > { %6069 = vmatprep.mubr.msk.f32.mxu1 %vm7974_vm1, %v7973_v1  ;;  %6569 = vmatprep.mubr.msk.f32.mxu0 %vm7974_vm1, %v7973_v1 }
  0x4a   : > { %6070 = vmatmul.mubr.msk.f32.gmra.mrb[28].mxu1 %vm214_vm2, %v185_v33  ;;  %6570 = vmatmul.mubr.msk.f32.gmra.mrb[28].mxu0 %vm214_vm2, %v2400_v34  ;;  %v8464_v33 = vld [vmem:[%s8025_s21 + $0xd1] sm:$0xff]  ;;  %v704_v34 = vld [vmem:[%s8025_s21 + $0x26] sm:$0xff] }
  0x4b   : > { %6072 = vmatprep.mubr.msk.f32.mxu1 %vm7974_vm1, %v7973_v1  ;;  %6572 = vmatprep.mubr.msk.f32.mxu0 %vm7974_vm1, %v7973_v1 }
  0x4e   : > { %6073 = vmatmul.mubr.msk.f32.gmra.mrb[30].mxu1 %vm214_vm2, %v186_v35  ;;  %6573 = vmatmul.mubr.msk.f32.gmra.mrb[30].mxu0 %vm214_vm2, %v2401_v36  ;;  %v8475_v35 = vld [vmem:[%s8025_s21 + $0xd9] sm:$0xff]  ;;  %v705_v36 = vld [vmem:[%s8025_s21 + $0x2e] sm:$0xff] }
  0x4f   : > { %6075 = vmatprep.mubr.msk.f32.mxu1 %vm7974_vm1, %v7973_v1  ;;  %6575 = vmatprep.mubr.msk.f32.mxu0 %vm7974_vm1, %v7973_v1 }
  0x52   : > { %6076 = vmatmul.mubr.msk.f32.gmra.mrb[32].mxu1 %vm214_vm2, %v187_v37  ;;  %6576 = vmatmul.mubr.msk.f32.gmra.mrb[32].mxu0 %vm214_vm2, %v2402_v38  ;;  %v8486_v37 = vld [vmem:[%s8025_s21 + $0xe1] sm:$0xff]  ;;  %v706_v38 = vld [vmem:[%s8025_s21 + $0x36] sm:$0xff] }
  0x53   : > { %6078 = vmatprep.mubr.msk.f32.mxu1 %vm7974_vm1, %v7973_v1  ;;  %6578 = vmatprep.mubr.msk.f32.mxu0 %vm7974_vm1, %v7973_v1 }
  0x56   : > { %6079 = vmatmul.mubr.msk.f32.gmra.mrb[34].mxu1 %vm214_vm2, %v188_v39  ;;  %6579 = vmatmul.mubr.msk.f32.gmra.mrb[34].mxu0 %vm214_vm2, %v2403_v40  ;;  %v8497_v39 = vld [vmem:[%s8025_s21 + $0xe9] sm:$0xff]  ;;  %v707_v40 = vld [vmem:[%s8025_s21 + $0x3e] sm:$0xff] }
  0x57   : > { %6081 = vmatprep.mubr.msk.f32.mxu1 %vm7974_vm1, %v7973_v1  ;;  %6581 = vmatprep.mubr.msk.f32.mxu0 %vm7974_vm1, %v7973_v1 }
  0x5a   : > { %6082 = vmatmul.mubr.msk.f32.gmra.mrb[36].mxu1 %vm214_vm2, %v189_v41  ;;  %6582 = vmatmul.mubr.msk.f32.gmra.mrb[36].mxu0 %vm214_vm2, %v2404_v42  ;;  %v8508_v41 = vld [vmem:[%s8025_s21 + $0xf1] sm:$0xff]  ;;  %v708_v42 = vld [vmem:[%s8025_s21 + $0x46] sm:$0xff] }
  0x5b   : > { %6084 = vmatprep.mubr.msk.f32.mxu1 %vm7974_vm1, %v7973_v1  ;;  %6584 = vmatprep.mubr.msk.f32.mxu0 %vm7974_vm1, %v7973_v1 }
  0x5e   : > { %6085 = vmatmul.mubr.msk.f32.gmra.mrb[38].mxu1 %vm214_vm2, %v190_v43  ;;  %6585 = vmatmul.mubr.msk.f32.gmra.mrb[38].mxu0 %vm214_vm2, %v2405_v44  ;;  %v8519_v43 = vld [vmem:[%s8025_s21 + $0xf9] sm:$0xff]  ;;  %v709_v44 = vld [vmem:[%s8025_s21 + $0x4e] sm:$0xff] }
  0x5f   : > { %6087 = vmatprep.mubr.msk.f32.mxu1 %vm7974_vm1, %v7973_v1  ;;  %6587 = vmatprep.mubr.msk.f32.mxu0 %vm7974_vm1, %v7973_v1 }
  0x62   : > { %6088 = vmatmul.mubr.msk.f32.gmra.mrb[40].mxu1 %vm214_vm2, %v191_v45  ;;  %6588 = vmatmul.mubr.msk.f32.gmra.mrb[40].mxu0 %vm214_vm2, %v2406_v46  ;;  %v8530_v45 = vld [vmem:[%s8025_s21 + $0x101] sm:$0xff]  ;;  %v710_v46 = vld [vmem:[%s8025_s21 + $0x56] sm:$0xff] }
  0x63   : > { %6090 = vmatprep.mubr.msk.f32.mxu1 %vm7974_vm1, %v7973_v1  ;;  %6652 = vmatprep.mubr.msk.f32.mxu0 %vm7974_vm1, %v7973_v1 }
  0x66   : > { %6091 = vmatmul.mubr.msk.f32.gmra.mrb[42].mxu1 %vm214_vm2, %v192_v47  ;;  %6653 = vmatmul.mubr.msk.f32.vlgmr.msra.gmra.mrb[0].mxu0 %vm214_vm2, %v2948_v48  ;;  %v8541_v47 = vld [vmem:[%s8025_s21 + $0x109] sm:$0xff]  ;;  %v711_v48 = vld [vmem:[%s8025_s21 + $0x5e] sm:$0xff] }
  0x67   : > { %6093 = vmatprep.mubr.msk.f32.mxu1 %vm7974_vm1, %v7973_v1  ;;  %6655 = vmatprep.mubr.msk.f32.mxu0 %vm7974_vm1, %v7973_v1 }
  0x68   : > { %6776 = vmatpush3.msk.msra.mxu0 %vm338_vm0, %v5516_v49  ;;  %v8552_v49 = vld [vmem:[%s8025_s21 + $0x111] sm:$0xff] }
  0x69   : > { %6900 = vmatprep.subr.mxu0 %v7973_v1 }
  0x6a   : > { %6094 = vmatmul.mubr.msk.f32.gmra.mrb[44].mxu1 %vm214_vm2, %v193_v50  ;;  %6656 = vmatmul.mubr.msk.f32.gmra.mrb[2].mxu0 %vm214_vm2, %v2949_v51  ;;  %v712_v50 = vld [vmem:[%s8025_s21 + $0x66] sm:$0xff]  ;;  %v8563_v51 = vld [vmem:[%s8025_s21 + $0x119] sm:$0xff] }
  0x6b   : > { %6096 = vmatprep.mubr.msk.f32.mxu1 %vm7974_vm1, %v7973_v1  ;;  %6658 = vmatprep.mubr.msk.f32.mxu0 %vm7974_vm1, %v7973_v1 }
  0x6e   : > { %6097 = vmatmul.mubr.msk.f32.gmra.mrb[46].mxu1 %vm214_vm2, %v194_v52  ;;  %6659 = vmatmul.mubr.msk.f32.gmra.mrb[4].mxu0 %vm214_vm2, %v8228_v53  ;;  %v713_v52 = vld [vmem:[%s8025_s21 + $0x6e] sm:$0xff] }
  0x6f   : > { %6099 = vmatprep.mubr.msk.f32.mxu1 %vm7974_vm1, %v7973_v1  ;;  %6661 = vmatprep.mubr.msk.f32.mxu0 %vm7974_vm1, %v7973_v1 }
  0x72   : > { %6100 = vmatmul.mubr.msk.f32.gmra.mrb[48].mxu1 %vm214_vm2, %v195_v54  ;;  %6662 = vmatmul.mubr.msk.f32.gmra.mrb[6].mxu0 %vm214_vm2, %v8239_v55  ;;  %v8574_v54 = vld [vmem:[%s8025_s21 + $0x121] sm:$0xff] }
  0x73   : > { %6102 = vmatprep.mubr.msk.f32.mxu1 %vm7974_vm1, %v7973_v1  ;;  %6664 = vmatprep.mubr.msk.f32.mxu0 %vm7974_vm1, %v7973_v1 }
  0x76   : > { %6103 = vmatmul.mubr.msk.f32.gmra.mrb[50].mxu1 %vm214_vm2, %v196_v56  ;;  %6665 = vmatmul.mubr.msk.f32.gmra.mrb[8].mxu0 %vm214_vm2, %v8250_v57  ;;  %v714_v56 = vld [vmem:[%s8025_s21 + $0x76] sm:$0xff] }
  0x77   : > { %6105 = vmatprep.mubr.msk.f32.mxu1 %vm7974_vm1, %v7973_v1  ;;  %6667 = vmatprep.mubr.msk.f32.mxu0 %vm7974_vm1, %v7973_v1 }
  0x7a   : > { %6106 = vmatmul.mubr.msk.f32.gmra.mrb[52].mxu1 %vm214_vm2, %v197_v58  ;;  %6668 = vmatmul.mubr.msk.f32.gmra.mrb[10].mxu0 %vm214_vm2, %v8261_v59  ;;  %v8585_v58 = vld [vmem:[%s8025_s21 + $0x129] sm:$0xff] }
  0x7b   : > { %6108 = vmatprep.mubr.msk.f32.mxu1 %vm7974_vm1, %v7973_v1  ;;  %6670 = vmatprep.mubr.msk.f32.mxu0 %vm7974_vm1, %v7973_v1 }
  0x7e   : > { %6109 = vmatmul.mubr.msk.f32.gmra.mrb[54].mxu1 %vm214_vm2, %v198_v60  ;;  %6671 = vmatmul.mubr.msk.f32.gmra.mrb[12].mxu0 %vm214_vm2, %v8272_v61  ;;  %v715_v60 = vld [vmem:[%s8025_s21 + $0x7e] sm:$0xff] }
  0x7f   : > { %6111 = vmatprep.mubr.msk.f32.mxu1 %vm7974_vm1, %v7973_v1  ;;  %6673 = vmatprep.mubr.msk.f32.mxu0 %vm7974_vm1, %v7973_v1 }
  0x82   : > { %6112 = vmatmul.mubr.msk.f32.gmra.mrb[56].mxu1 %vm214_vm2, %v199_v62  ;;  %6674 = vmatmul.mubr.msk.f32.gmra.mrb[14].mxu0 %vm214_vm2, %v8283_v63  ;;  %v8596_v62 = vld [vmem:[%s8025_s21 + $0x131] sm:$0xff] }
  0x83   : > { %6114 = vmatprep.mubr.msk.f32.mxu1 %vm7974_vm1, %v7973_v1  ;;  %6676 = vmatprep.mubr.msk.f32.mxu0 %vm7974_vm1, %v7973_v1 }
  0x86   : > { %6115 = vmatmul.mubr.msk.f32.gmra.mrb[58].mxu1 %vm214_vm2, %v200_v0  ;;  %6677 = vmatmul.mubr.msk.f32.gmra.mrb[16].mxu0 %vm214_vm2, %v8294_v2  ;;  %v716_v0 = vld [vmem:[%s8025_s21 + $0x86] sm:$0xff] }
  0x87   : > { %6117 = vmatprep.mubr.msk.f32.mxu1 %vm7974_vm1, %v7973_v1  ;;  %6679 = vmatprep.mubr.msk.f32.mxu0 %vm7974_vm1, %v7973_v1 }
  0x8a   : > { %6118 = vmatmul.mubr.msk.f32.gmra.mrb[60].mxu1 %vm214_vm2, %v201_v3  ;;  %6680 = vmatmul.mubr.msk.f32.gmra.mrb[18].mxu0 %vm214_vm2, %v8305_v4  ;;  %v8607_v3 = vld [vmem:[%s8025_s21 + $0x139] sm:$0xff] }
  0x8b   : > { %6120 = vmatprep.mubr.msk.f32.mxu1 %vm7974_vm1, %v7973_v1  ;;  %6682 = vmatprep.mubr.msk.f32.mxu0 %vm7974_vm1, %v7973_v1 }
  0x8e   : > { %6121 = vmatmul.mubr.msk.f32.gmra.mrb[62].mxu1 %vm214_vm2, %v202_v5  ;;  %6683 = vmatmul.mubr.msk.f32.gmra.mrb[20].mxu0 %vm214_vm2, %v8316_v6  ;;  %v717_v5 = vld [vmem:[%s8025_s21 + $0x8e] sm:$0xff] }
  0x8f   : > { %6123 = vmatprep.mubr.msk.f32.mxu1 %vm7974_vm1, %v7973_v1  ;;  %6685 = vmatprep.mubr.msk.f32.mxu0 %vm7974_vm1, %v7973_v1 }
  0x92   : > { %6124 = vmatmul.mubr.msk.f32.gmra.mrb[64].mxu1 %vm214_vm2, %v203_v7  ;;  %6686 = vmatmul.mubr.msk.f32.gmra.mrb[22].mxu0 %vm214_vm2, %v8327_v8  ;;  %v8618_v7 = vld [vmem:[%s8025_s21 + $0x141] sm:$0xff] }
  0x93   : > { %6126 = vmatprep.mubr.msk.f32.mxu1 %vm7974_vm1, %v7973_v1  ;;  %6688 = vmatprep.mubr.msk.f32.mxu0 %vm7974_vm1, %v7973_v1 }
  0x96   : > { %6127 = vmatmul.mubr.msk.f32.gmra.mrb[66].mxu1 %vm214_vm2, %v204_v9  ;;  %6689 = vmatmul.mubr.msk.f32.gmra.mrb[24].mxu0 %vm214_vm2, %v8338_v10  ;;  %v718_v9 = vld [vmem:[%s8025_s21 + $0x96] sm:$0xff] }
  0x97   : > { %6129 = vmatprep.mubr.msk.f32.mxu1 %vm7974_vm1, %v7973_v1  ;;  %6691 = vmatprep.mubr.msk.f32.mxu0 %vm7974_vm1, %v7973_v1 }
  0x9a   : > { %6130 = vmatmul.mubr.msk.f32.gmra.mrb[68].mxu1 %vm214_vm2, %v205_v11  ;;  %6692 = vmatmul.mubr.msk.f32.gmra.mrb[26].mxu0 %vm214_vm2, %v8349_v12  ;;  %v8629_v11 = vld [vmem:[%s8025_s21 + $0x149] sm:$0xff] }
  0x9b   : > { %6132 = vmatprep.mubr.msk.f32.mxu1 %vm7974_vm1, %v7973_v1  ;;  %6694 = vmatprep.mubr.msk.f32.mxu0 %vm7974_vm1, %v7973_v1 }
  0x9e   : > { %6133 = vmatmul.mubr.msk.f32.gmra.mrb[70].mxu1 %vm214_vm2, %v206_v13  ;;  %6695 = vmatmul.mubr.msk.f32.gmra.mrb[28].mxu0 %vm214_vm2, %v8360_v14  ;;  %v719_v13 = vld [vmem:[%s8025_s21 + $0x9e] sm:$0xff] }
  0x9f   : > { %6135 = vmatprep.mubr.msk.f32.mxu1 %vm7974_vm1, %v7973_v1  ;;  %6697 = vmatprep.mubr.msk.f32.mxu0 %vm7974_vm1, %v7973_v1 }
  0xa2   : > { %6136 = vmatmul.mubr.msk.f32.gmra.mrb[72].mxu1 %vm214_vm2, %v207_v15  ;;  %6698 = vmatmul.mubr.msk.f32.gmra.mrb[30].mxu0 %vm214_vm2, %v8371_v16  ;;  %v8640_v15 = vld [vmem:[%s8025_s21 + $0x151] sm:$0xff] }
  0xa3   : > { %6138 = vmatprep.mubr.msk.f32.mxu1 %vm7974_vm1, %v7973_v1  ;;  %6700 = vmatprep.mubr.msk.f32.mxu0 %vm7974_vm1, %v7973_v1 }
  0xa6   : > { %6139 = vmatmul.mubr.msk.f32.gmra.mrb[74].mxu1 %vm214_vm2, %v208_v17  ;;  %6701 = vmatmul.mubr.msk.f32.gmra.mrb[32].mxu0 %vm214_vm2, %v8382_v18  ;;  %v720_v17 = vld [vmem:[%s8025_s21 + $0xa6] sm:$0xff] }
  0xa7   : > { %6141 = vmatprep.mubr.msk.f32.mxu1 %vm7974_vm1, %v7973_v1  ;;  %6703 = vmatprep.mubr.msk.f32.mxu0 %vm7974_vm1, %v7973_v1 }
  0xaa   : > { %6142 = vmatmul.mubr.msk.f32.gmra.mrb[76].mxu1 %vm214_vm2, %v209_v19  ;;  %6704 = vmatmul.mubr.msk.f32.gmra.mrb[34].mxu0 %vm214_vm2, %v8393_v20  ;;  %v2988_v19 = vld [vmem:[%s8025_s21 + $0x159] sm:$0xf] }
  0xab   : > { %6144 = vmatprep.mubr.msk.f32.mxu1 %vm7974_vm1, %v7973_v1  ;;  %6706 = vmatprep.mubr.msk.f32.mxu0 %vm7974_vm1, %v7973_v1 }
  0xae   : > { %6145 = vmatmul.mubr.msk.f32.gmra.mrb[78].mxu1 %vm214_vm2, %v210_v21  ;;  %6707 = vmatmul.mubr.msk.f32.gmra.mrb[36].mxu0 %vm214_vm2, %v8404_v22  ;;  %v8660_v21 = vld [vmem:[%s10031_s2] ss:$0 sm:$0xff] }
  0xaf   : > { %6147 = vmatprep.mubr.msk.f32.mxu1 %vm7974_vm1, %v7973_v1  ;;  %6709 = vmatprep.mubr.msk.f32.mxu0 %vm7974_vm1, %v7973_v1  ;;  %7152 = vst [vmem:[%s8655_s6] sm:$0xff] %v8660_v21  ;;  %7158 = vst [vmem:[%s8655_s6 + $0x8] sm:$0xff] %v8660_v21 }
  0xb0   : > { %7164 = vst [vmem:[%s8655_s6 + $0x10] sm:$0xff] %v8660_v21  ;;  %7170 = vst [vmem:[%s8655_s6 + $0x18] sm:$0xff] %v8660_v21 }
  0xb1   : > { %7176 = vst [vmem:[%s8655_s6 + $0x20] sm:$0xff] %v8660_v21  ;;  %7182 = vst [vmem:[%s8655_s6 + $0x28] sm:$0xff] %v8660_v21 }
  0xb2   : > { %6148 = vmatmul.mubr.msk.f32.gmra.mrb[80].mxu1 %vm214_vm2, %v211_v23  ;;  %6710 = vmatmul.mubr.msk.f32.gmra.mrb[38].mxu0 %vm214_vm2, %v8415_v24  ;;  %7188 = vst [vmem:[%s8655_s6 + $0x30] sm:$0xff] %v8660_v21  ;;  %7194 = vst [vmem:[%s8655_s6 + $0x38] sm:$0xff] %v8660_v21  ;;  %v721_v23 = vld [vmem:[%s8025_s21 + $0xae] sm:$0xff] }
  0xb3   : > { %6152 = vmatprep.mubr.msk.f32.mxu1 %vm7974_vm1, %v7973_v1  ;;  %6712 = vmatprep.mubr.msk.f32.mxu0 %vm7974_vm1, %v7973_v1  ;;  %7200 = vst [vmem:[%s8655_s6 + $0x40] sm:$0xff] %v8660_v21  ;;  %7206 = vst [vmem:[%s8655_s6 + $0x48] sm:$0xff] %v8660_v21 }
  0xb4   : > { %7212 = vst [vmem:[%s8655_s6 + $0x50] sm:$0xff] %v8660_v21  ;;  %7218 = vst [vmem:[%s8655_s6 + $0x58] sm:$0xff] %v8660_v21 }
  0xb5   : > { %7224 = vst [vmem:[%s8655_s6 + $0x60] sm:$0xff] %v8660_v21  ;;  %7230 = vst [vmem:[%s8655_s6 + $0x68] sm:$0xff] %v8660_v21 }
  0xb6   : > { %6153 = vmatmul.mubr.msk.f32.vlgmr.msra.gmra.mrb[0].mxu1 %vm214_vm2, %v700_v25  ;;  %6713 = vmatmul.mubr.msk.f32.gmra.mrb[40].mxu0 %vm214_vm2, %v8426_v26  ;;  %7236 = vst [vmem:[%s8655_s6 + $0x70] sm:$0xff] %v8660_v21  ;;  %7242 = vst [vmem:[%s8655_s6 + $0x78] sm:$0xff] %v8660_v21  ;;  %v5559_v25 = vld [vmem:[%s10030_s1 + $0x1c] sm:$0xf] }
  0xb7   : > { %6276 = vmatpush3.msk.msra.mxu1 %vm338_vm0, %v5344_v27  ;;  %6155 = vmatprep.mubr.msk.f32.mxu1 %vm7974_vm1, %v7973_v1  ;;  %7248 = vst [vmem:[%s8655_s6 + $0x80] sm:$0xff] %v8660_v21  ;;  %7254 = vst [vmem:[%s8655_s6 + $0x88] sm:$0xff] %v8660_v21  ;;  %v722_v27 = vld [vmem:[%s8025_s21 + $0xb6] sm:$0xff] }
  0xb8   : > { %6715 = vmatprep.mubr.msk.f32.mxu0 %vm7974_vm1, %v7973_v1  ;;  %6400 = vmatprep.subr.mxu1 %v7973_v1  ;;  %7260 = vst [vmem:[%s8655_s6 + $0x90] sm:$0xff] %v8660_v21  ;;  %7266 = vst [vmem:[%s8655_s6 + $0x98] sm:$0xff] %v8660_v21 }
  0xb9   : > { %7272 = vst [vmem:[%s8655_s6 + $0xa0] sm:$0xff] %v8660_v21  ;;  %7278 = vst [vmem:[%s8655_s6 + $0xa8] sm:$0xff] %v8660_v21 }
  0xba   : > { %6156 = vmatmul.mubr.msk.f32.gmra.mrb[2].mxu1 %vm214_vm2, %v701_v28  ;;  %6716 = vmatmul.mubr.msk.f32.gmra.mrb[42].mxu0 %vm214_vm2, %v8439_v29  ;;  %7284 = vst [vmem:[%s8655_s6 + $0xb0] sm:$0xff] %v8660_v21  ;;  %7290 = vst [vmem:[%s8655_s6 + $0xb8] sm:$0xff] %v8660_v21  ;;  %v5387_v28 = vld [vmem:[%s10030_s1 + $0xc] sm:$0xf] }
  0xbb   : > { %6158 = vmatprep.mubr.msk.f32.mxu1 %vm7974_vm1, %v7973_v1  ;;  %6718 = vmatprep.mubr.msk.f32.mxu0 %vm7974_vm1, %v7973_v1  ;;  %7296 = vst [vmem:[%s8655_s6 + $0xc0] sm:$0xff] %v8660_v21  ;;  %7302 = vst [vmem:[%s8655_s6 + $0xc8] sm:$0xff] %v8660_v21 }
  0xbc   : > { %7308 = vst [vmem:[%s8655_s6 + $0xd0] sm:$0xff] %v8660_v21  ;;  %7314 = vst [vmem:[%s8655_s6 + $0xd8] sm:$0xff] %v8660_v21 }
  0xbd   : > { %7320 = vst [vmem:[%s8655_s6 + $0xe0] sm:$0xff] %v8660_v21  ;;  %7326 = vst [vmem:[%s8655_s6 + $0xe8] sm:$0xff] %v8660_v21 }
  0xbe   : > { %6159 = vmatmul.mubr.msk.f32.gmra.mrb[4].mxu1 %vm214_vm2, %v702_v30  ;;  %6719 = vmatmul.mubr.msk.f32.gmra.mrb[44].mxu0 %vm214_vm2, %v8453_v31  ;;  %7332 = vst [vmem:[%s8655_s6 + $0xf0] sm:$0xff] %v8660_v21  ;;  %7338 = vst [vmem:[%s8655_s6 + $0xf8] sm:$0xff] %v8660_v21  ;;  %v8935_v30 = vld [vmem:[%s8025_s21 + $0x17] sm:$0xff] }
  0xbf   : > { %6161 = vmatprep.mubr.msk.f32.mxu1 %vm7974_vm1, %v7973_v1  ;;  %6721 = vmatprep.mubr.msk.f32.mxu0 %vm7974_vm1, %v7973_v1  ;;  %7344 = vst [vmem:[%s8655_s6 + $0x100] sm:$0xff] %v8660_v21  ;;  %7350 = vst [vmem:[%s8655_s6 + $0x108] sm:$0xff] %v8660_v21 }
  0xc0   : > { %7356 = vst [vmem:[%s8655_s6 + $0x110] sm:$0xff] %v8660_v21  ;;  %7362 = vst [vmem:[%s8655_s6 + $0x118] sm:$0xff] %v8660_v21 }
  0xc1   : > { %7368 = vst [vmem:[%s8655_s6 + $0x120] sm:$0xff] %v8660_v21  ;;  %7374 = vst [vmem:[%s8655_s6 + $0x128] sm:$0xff] %v8660_v21 }
  0xc2   : > { %6162 = vmatmul.mubr.msk.f32.gmra.mrb[6].mxu1 %vm214_vm2, %v703_v32  ;;  %6722 = vmatmul.mubr.msk.f32.gmra.mrb[46].mxu0 %vm214_vm2, %v8464_v33  ;;  %7380 = vst [vmem:[%s8655_s6 + $0x130] sm:$0xff] %v8660_v21  ;;  %7386 = vst [vmem:[%s8655_s6 + $0x138] sm:$0xff] %v8660_v21  ;;  %v8957_v32 = vld [vmem:[%s8025_s21 + $0x27] sm:$0xff] }
  0xc3   : > { %6164 = vmatprep.mubr.msk.f32.mxu1 %vm7974_vm1, %v7973_v1  ;;  %6724 = vmatprep.mubr.msk.f32.mxu0 %vm7974_vm1, %v7973_v1 }
  0xc6   : > { %6165 = vmatmul.mubr.msk.f32.gmra.mrb[8].mxu1 %vm214_vm2, %v704_v34  ;;  %6725 = vmatmul.mubr.msk.f32.gmra.mrb[48].mxu0 %vm214_vm2, %v8475_v35  ;;  %v8979_v34 = vld [vmem:[%s8025_s21 + $0x37] sm:$0xff] }
  0xc7   : > { %6167 = vmatprep.mubr.msk.f32.mxu1 %vm7974_vm1, %v7973_v1  ;;  %6727 = vmatprep.mubr.msk.f32.mxu0 %vm7974_vm1, %v7973_v1 }
  0xca   : > { %6168 = vmatmul.mubr.msk.f32.gmra.mrb[10].mxu1 %vm214_vm2, %v705_v36  ;;  %6728 = vmatmul.mubr.msk.f32.gmra.mrb[50].mxu0 %vm214_vm2, %v8486_v37  ;;  %v9001_v36 = vld [vmem:[%s8025_s21 + $0x47] sm:$0xff] }
  0xcb   : > { %6170 = vmatprep.mubr.msk.f32.mxu1 %vm7974_vm1, %v7973_v1  ;;  %6730 = vmatprep.mubr.msk.f32.mxu0 %vm7974_vm1, %v7973_v1 }
  0xce   : > { %6171 = vmatmul.mubr.msk.f32.gmra.mrb[12].mxu1 %vm214_vm2, %v706_v38  ;;  %6731 = vmatmul.mubr.msk.f32.gmra.mrb[52].mxu0 %vm214_vm2, %v8497_v39  ;;  %v9023_v38 = vld [vmem:[%s8025_s21 + $0x57] sm:$0xff] }
  0xcf   : > { %6173 = vmatprep.mubr.msk.f32.mxu1 %vm7974_vm1, %v7973_v1  ;;  %6733 = vmatprep.mubr.msk.f32.mxu0 %vm7974_vm1, %v7973_v1 }
  0xd2   : > { %6174 = vmatmul.mubr.msk.f32.gmra.mrb[14].mxu1 %vm214_vm2, %v707_v40  ;;  %6734 = vmatmul.mubr.msk.f32.gmra.mrb[54].mxu0 %vm214_vm2, %v8508_v41 }
  0xd3   : > { %6176 = vmatprep.mubr.msk.f32.mxu1 %vm7974_vm1, %v7973_v1  ;;  %6736 = vmatprep.mubr.msk.f32.mxu0 %vm7974_vm1, %v7973_v1 }
  0xd6   : > { %6177 = vmatmul.mubr.msk.f32.gmra.mrb[16].mxu1 %vm214_vm2, %v708_v42  ;;  %6737 = vmatmul.mubr.msk.f32.gmra.mrb[56].mxu0 %vm214_vm2, %v8519_v43 }
  0xd7   : > { %6179 = vmatprep.mubr.msk.f32.mxu1 %vm7974_vm1, %v7973_v1  ;;  %6739 = vmatprep.mubr.msk.f32.mxu0 %vm7974_vm1, %v7973_v1 }
  0xda   : > { %6180 = vmatmul.mubr.msk.f32.gmra.mrb[18].mxu1 %vm214_vm2, %v709_v44  ;;  %6740 = vmatmul.mubr.msk.f32.gmra.mrb[58].mxu0 %vm214_vm2, %v8530_v45  ;;  %v9058_v44 = vld [vmem:[%s8025_s21 + $0x6f] sm:$0xff] }
  0xdb   : > { %6182 = vmatprep.mubr.msk.f32.mxu1 %vm7974_vm1, %v7973_v1  ;;  %6742 = vmatprep.mubr.msk.f32.mxu0 %vm7974_vm1, %v7973_v1 }
  0xde   : > { %6183 = vmatmul.mubr.msk.f32.gmra.mrb[20].mxu1 %vm214_vm2, %v710_v46  ;;  %6743 = vmatmul.mubr.msk.f32.gmra.mrb[60].mxu0 %vm214_vm2, %v8541_v47  ;;  %v9080_v46 = vld [vmem:[%s8025_s21 + $0x7f] sm:$0xff] }
  0xdf   : > { %6185 = vmatprep.mubr.msk.f32.mxu1 %vm7974_vm1, %v7973_v1  ;;  %6745 = vmatprep.mubr.msk.f32.mxu0 %vm7974_vm1, %v7973_v1 }
  0xe2   : > { %6186 = vmatmul.mubr.msk.f32.gmra.mrb[22].mxu1 %vm214_vm2, %v711_v48  ;;  %6746 = vmatmul.mubr.msk.f32.gmra.mrb[62].mxu0 %vm214_vm2, %v8552_v49  ;;  %v9102_v48 = vld [vmem:[%s8025_s21 + $0x8f] sm:$0xff] }
  0xe3   : > { %6188 = vmatprep.mubr.msk.f32.mxu1 %vm7974_vm1, %v7973_v1  ;;  %6748 = vmatprep.mubr.msk.f32.mxu0 %vm7974_vm1, %v7973_v1 }
  0xe6   : > { %6189 = vmatmul.mubr.msk.f32.gmra.mrb[24].mxu1 %vm214_vm2, %v712_v50  ;;  %6749 = vmatmul.mubr.msk.f32.gmra.mrb[64].mxu0 %vm214_vm2, %v8563_v51  ;;  %v3548_v50 = vld [vmem:[%s8025_s21 + $0x159] sm:$0xff] }
  0xe7   : > { %6191 = vmatprep.mubr.msk.f32.mxu1 %vm7974_vm1, %v7973_v1  ;;  %6751 = vmatprep.mubr.msk.f32.mxu0 %vm7974_vm1, %v7973_v1 }
  0xea   : > { %6192 = vmatmul.mubr.msk.f32.gmra.mrb[26].mxu1 %vm214_vm2, %v713_v52  ;;  %6752 = vmatmul.mubr.msk.f32.gmra.mrb[66].mxu0 %vm214_vm2, %v8574_v54  ;;  %v3549_v52 = vld [vmem:[%s8025_s21 + $0x161] sm:$0xff] }
  0xeb   : > { %6194 = vmatprep.mubr.msk.f32.mxu1 %vm7974_vm1, %v7973_v1  ;;  %6754 = vmatprep.mubr.msk.f32.mxu0 %vm7974_vm1, %v7973_v1 }
  0xee   : > { %6195 = vmatmul.mubr.msk.f32.gmra.mrb[28].mxu1 %vm214_vm2, %v714_v56  ;;  %6755 = vmatmul.mubr.msk.f32.gmra.mrb[68].mxu0 %vm214_vm2, %v8585_v58  ;;  %v3550_v56 = vld [vmem:[%s8025_s21 + $0x169] sm:$0xf] }
  0xef   : > { %6197 = vmatprep.mubr.msk.f32.mxu1 %vm7974_vm1, %v7973_v1  ;;  %6757 = vmatprep.mubr.msk.f32.mxu0 %vm7974_vm1, %v7973_v1 }
  0xf2   : > { %6198 = vmatmul.mubr.msk.f32.gmra.mrb[30].mxu1 %vm214_vm2, %v715_v60  ;;  %6758 = vmatmul.mubr.msk.f32.gmra.mrb[70].mxu0 %vm214_vm2, %v8596_v62  ;;  %v4072_v60 = vld [vmem:[%s8025_s21 + $0x2a] sm:$0xff] }
  0xf3   : > { %6200 = vmatprep.mubr.msk.f32.mxu1 %vm7974_vm1, %v7973_v1  ;;  %6760 = vmatprep.mubr.msk.f32.mxu0 %vm7974_vm1, %v7973_v1 }
  0xf6   : > { %6201 = vmatmul.mubr.msk.f32.gmra.mrb[32].mxu1 %vm214_vm2, %v716_v0  ;;  %6761 = vmatmul.mubr.msk.f32.gmra.mrb[72].mxu0 %vm214_vm2, %v8607_v3  ;;  %v9160_v0 = vld [vmem:[%s8025_s21 + $0xb7] sm:$0xff] }
  0xf7   : > { %6203 = vmatprep.mubr.msk.f32.mxu1 %vm7974_vm1, %v7973_v1  ;;  %6763 = vmatprep.mubr.msk.f32.mxu0 %vm7974_vm1, %v7973_v1 }
  0xfa   : > { %6204 = vmatmul.mubr.msk.f32.gmra.mrb[34].mxu1 %vm214_vm2, %v717_v5  ;;  %6764 = vmatmul.mubr.msk.f32.gmra.mrb[74].mxu0 %vm214_vm2, %v8618_v7  ;;  %v9172_v5 = vld [vmem:[%s8025_s21 + $0xbf] sm:$0xff] }
  0xfb   : > { %6206 = vmatprep.mubr.msk.f32.mxu1 %vm7974_vm1, %v7973_v1  ;;  %6766 = vmatprep.mubr.msk.f32.mxu0 %vm7974_vm1, %v7973_v1 }
  0xfe   : > { %6207 = vmatmul.mubr.msk.f32.gmra.mrb[36].mxu1 %vm214_vm2, %v718_v9  ;;  %6767 = vmatmul.mubr.msk.f32.gmra.mrb[76].mxu0 %vm214_vm2, %v8629_v11  ;;  %v9183_v9 = vld [vmem:[%s8025_s21 + $0xc7] sm:$0xff] }
  0xff   : > { %6209 = vmatprep.mubr.msk.f32.mxu1 %vm7974_vm1, %v7973_v1  ;;  %6769 = vmatprep.mubr.msk.f32.mxu0 %vm7974_vm1, %v7973_v1 }
 0x102   : > { %6210 = vmatmul.mubr.msk.f32.gmra.mrb[38].mxu1 %vm214_vm2, %v719_v13  ;;  %6770 = vmatmul.mubr.msk.f32.gmra.mrb[78].mxu0 %vm214_vm2, %v8640_v15  ;;  %v9194_v13 = vld [vmem:[%s8025_s21 + $0xcf] sm:$0xff] }
 0x103   : > { %6212 = vmatprep.mubr.msk.f32.mxu1 %vm7974_vm1, %v7973_v1  ;;  %6772 = vmatprep.mubr.msk.f32.mxu0 %vm7974_vm1, %v7973_v1 }
 0x106   : > { %6213 = vmatmul.mubr.msk.f32.gmra.mrb[40].mxu1 %vm214_vm2, %v720_v17  ;;  %6773 = vmatmul.mubr.msk.f32.gmra.mrb[80].mxu0 %vm214_vm2, %v2988_v19  ;;  %v9205_v17 = vld [vmem:[%s8025_s21 + $0xd7] sm:$0xff] }
 0x107   : > { %6215 = vmatprep.mubr.msk.f32.mxu1 %vm7974_vm1, %v7973_v1  ;;  %6777 = vmatprep.mubr.msk.f32.mxu0 %vm7974_vm1, %v7973_v1  ;;  %v4077_v19 = vld [vmem:[%s8025_s21 + $0x52] sm:$0xff] }
 0x10a   : > { %6216 = vmatmul.mubr.msk.f32.gmra.mrb[42].mxu1 %vm214_vm2, %v721_v23  ;;  %6778 = vmatmul.mubr.msk.f32.vlgmr.msra.gmra.mrb[0].mxu0 %vm214_vm2, %v8228_v53  ;;  %v723_v53 = vld [vmem:[%s8025_s21 + $0xbe] sm:$0xff] }
 0x10b   : > { %6218 = vmatprep.mubr.msk.f32.mxu1 %vm7974_vm1, %v7973_v1  ;;  %6780 = vmatprep.mubr.msk.f32.mxu0 %vm7974_vm1, %v7973_v1  ;;  %v4078_v23 = vld [vmem:[%s8025_s21 + $0x5a] sm:$0xff] }
 0x10c   : > { %6901 = vmatpush3.msk.msra.mxu0 %vm338_vm0, %v5559_v25  ;;  %v9227_v25 = vld [vmem:[%s8025_s21 + $0xe7] sm:$0xff] }
 0x10d   : > { %7025 = vmatprep.subr.mxu0 %v7973_v1 }
 0x10e   : > { %6219 = vmatmul.mubr.msk.f32.gmra.mrb[44].mxu1 %vm214_vm2, %v722_v27  ;;  %6781 = vmatmul.mubr.msk.f32.gmra.mrb[2].mxu0 %vm214_vm2, %v8239_v55  ;;  %v724_v55 = vld [vmem:[%s8025_s21 + $0xc6] sm:$0xff] }
 0x10f   : > { %6221 = vmatprep.mubr.msk.f32.mxu1 %vm7974_vm1, %v7973_v1  ;;  %6783 = vmatprep.mubr.msk.f32.mxu0 %vm7974_vm1, %v7973_v1  ;;  %v4079_v27 = vld [vmem:[%s8025_s21 + $0x62] sm:$0xff] }
 0x112   : > { %6222 = vmatmul.mubr.msk.f32.gmra.mrb[46].mxu1 %vm214_vm2, %v723_v53  ;;  %6784 = vmatmul.mubr.msk.f32.gmra.mrb[4].mxu0 %vm214_vm2, %v8250_v57  ;;  %v725_v57 = vld [vmem:[%s8025_s21 + $0xce] sm:$0xff] }
 0x113   : > { %6224 = vmatprep.mubr.msk.f32.mxu1 %vm7974_vm1, %v7973_v1  ;;  %6786 = vmatprep.mubr.msk.f32.mxu0 %vm7974_vm1, %v7973_v1  ;;  %v9238_v53 = vld [vmem:[%s8025_s21 + $0xef] sm:$0xff] }
 0x116   : > { %6225 = vmatmul.mubr.msk.f32.gmra.mrb[48].mxu1 %vm214_vm2, %v724_v55  ;;  %6787 = vmatmul.mubr.msk.f32.gmra.mrb[6].mxu0 %vm214_vm2, %v8261_v59  ;;  %v726_v59 = vld [vmem:[%s8025_s21 + $0xd6] sm:$0xff]  ;;  %v4080_v55 = vld [vmem:[%s8025_s21 + $0x6a] sm:$0xff] }
 0x117   : > { %6227 = vmatprep.mubr.msk.f32.mxu1 %vm7974_vm1, %v7973_v1  ;;  %6789 = vmatprep.mubr.msk.f32.mxu0 %vm7974_vm1, %v7973_v1 }
 0x11a   : > { %6228 = vmatmul.mubr.msk.f32.gmra.mrb[50].mxu1 %vm214_vm2, %v725_v57  ;;  %6790 = vmatmul.mubr.msk.f32.gmra.mrb[8].mxu0 %vm214_vm2, %v8272_v61  ;;  %v727_v61 = vld [vmem:[%s8025_s21 + $0xde] sm:$0xff] }
 0x11b   : > { %6230 = vmatprep.mubr.msk.f32.mxu1 %vm7974_vm1, %v7973_v1  ;;  %6792 = vmatprep.mubr.msk.f32.mxu0 %vm7974_vm1, %v7973_v1  ;;  %v9249_v57 = vld [vmem:[%s8025_s21 + $0xf7] sm:$0xff] }
 0x11e   : > { %6231 = vmatmul.mubr.msk.f32.gmra.mrb[52].mxu1 %vm214_vm2, %v726_v59  ;;  %6793 = vmatmul.mubr.msk.f32.gmra.mrb[10].mxu0 %vm214_vm2, %v8283_v63  ;;  %v728_v63 = vld [vmem:[%s8025_s21 + $0xe6] sm:$0xff]  ;;  %v4081_v59 = vld [vmem:[%s8025_s21 + $0x72] sm:$0xff] }
 0x11f   : > { %6233 = vmatprep.mubr.msk.f32.mxu1 %vm7974_vm1, %v7973_v1  ;;  %6795 = vmatprep.mubr.msk.f32.mxu0 %vm7974_vm1, %v7973_v1 }
 0x122   : > { %6234 = vmatmul.mubr.msk.f32.gmra.mrb[54].mxu1 %vm214_vm2, %v727_v61  ;;  %6796 = vmatmul.mubr.msk.f32.gmra.mrb[12].mxu0 %vm214_vm2, %v8294_v2  ;;  %v729_v2 = vld [vmem:[%s8025_s21 + $0xee] sm:$0xff]  ;;  %v9260_v61 = vld [vmem:[%s8025_s21 + $0xff] sm:$0xff] }
 0x123   : > { %6236 = vmatprep.mubr.msk.f32.mxu1 %vm7974_vm1, %v7973_v1  ;;  %6798 = vmatprep.mubr.msk.f32.mxu0 %vm7974_vm1, %v7973_v1 }
 0x126   : > { %6237 = vmatmul.mubr.msk.f32.gmra.mrb[56].mxu1 %vm214_vm2, %v728_v63  ;;  %6799 = vmatmul.mubr.msk.f32.gmra.mrb[14].mxu0 %vm214_vm2, %v8305_v4  ;;  %v730_v4 = vld [vmem:[%s8025_s21 + $0xf6] sm:$0xff] }
 0x127   : > { %6239 = vmatprep.mubr.msk.f32.mxu1 %vm7974_vm1, %v7973_v1  ;;  %6801 = vmatprep.mubr.msk.f32.mxu0 %vm7974_vm1, %v7973_v1  ;;  %v4082_v63 = vld [vmem:[%s8025_s21 + $0x7a] sm:$0xff] }
 0x12a   : > { %6240 = vmatmul.mubr.msk.f32.gmra.mrb[58].mxu1 %vm214_vm2, %v729_v2  ;;  %6802 = vmatmul.mubr.msk.f32.gmra.mrb[16].mxu0 %vm214_vm2, %v8316_v6  ;;  %v731_v6 = vld [vmem:[%s8025_s21 + $0xfe] sm:$0xff]  ;;  %v9271_v2 = vld [vmem:[%s8025_s21 + $0x107] sm:$0xff] }
 0x12b   : > { %6242 = vmatprep.mubr.msk.f32.mxu1 %vm7974_vm1, %v7973_v1  ;;  %6804 = vmatprep.mubr.msk.f32.mxu0 %vm7974_vm1, %v7973_v1 }
 0x12e   : > { %6243 = vmatmul.mubr.msk.f32.gmra.mrb[60].mxu1 %vm214_vm2, %v730_v4  ;;  %6805 = vmatmul.mubr.msk.f32.gmra.mrb[18].mxu0 %vm214_vm2, %v8327_v8  ;;  %v732_v8 = vld [vmem:[%s8025_s21 + $0x106] sm:$0xff] }
 0x12f   : > { %6245 = vmatprep.mubr.msk.f32.mxu1 %vm7974_vm1, %v7973_v1  ;;  %6807 = vmatprep.mubr.msk.f32.mxu0 %vm7974_vm1, %v7973_v1  ;;  %v4083_v4 = vld [vmem:[%s8025_s21 + $0x82] sm:$0xff] }
 0x132   : > { %6246 = vmatmul.mubr.msk.f32.gmra.mrb[62].mxu1 %vm214_vm2, %v731_v6  ;;  %6808 = vmatmul.mubr.msk.f32.gmra.mrb[20].mxu0 %vm214_vm2, %v8338_v10  ;;  %v733_v10 = vld [vmem:[%s8025_s21 + $0x10e] sm:$0xff] }
 0x133   : > { %6248 = vmatprep.mubr.msk.f32.mxu1 %vm7974_vm1, %v7973_v1  ;;  %6810 = vmatprep.mubr.msk.f32.mxu0 %vm7974_vm1, %v7973_v1 }
 0x136   : > { %6249 = vmatmul.mubr.msk.f32.gmra.mrb[64].mxu1 %vm214_vm2, %v732_v8  ;;  %6811 = vmatmul.mubr.msk.f32.gmra.mrb[22].mxu0 %vm214_vm2, %v8349_v12  ;;  %v734_v12 = vld [vmem:[%s8025_s21 + $0x116] sm:$0xff] }
 0x137   : > { %6251 = vmatprep.mubr.msk.f32.mxu1 %vm7974_vm1, %v7973_v1  ;;  %6813 = vmatprep.mubr.msk.f32.mxu0 %vm7974_vm1, %v7973_v1 }
 0x13a   : > { %6252 = vmatmul.mubr.msk.f32.gmra.mrb[66].mxu1 %vm214_vm2, %v733_v10  ;;  %6814 = vmatmul.mubr.msk.f32.gmra.mrb[24].mxu0 %vm214_vm2, %v8360_v14  ;;  %v735_v14 = vld [vmem:[%s8025_s21 + $0x11e] sm:$0xff]  ;;  %v9284_v10 = vld [vmem:[%s8025_s21 + $0x10f] sm:$0xff] }
 0x13b   : > { %6254 = vmatprep.mubr.msk.f32.mxu1 %vm7974_vm1, %v7973_v1  ;;  %6816 = vmatprep.mubr.msk.f32.mxu0 %vm7974_vm1, %v7973_v1 }
 0x13e   : > { %6255 = vmatmul.mubr.msk.f32.gmra.mrb[68].mxu1 %vm214_vm2, %v734_v12  ;;  %6817 = vmatmul.mubr.msk.f32.gmra.mrb[26].mxu0 %vm214_vm2, %v8371_v16  ;;  %v736_v16 = vld [vmem:[%s8025_s21 + $0x126] sm:$0xff] }
 0x13f   : > { %6257 = vmatprep.mubr.msk.f32.mxu1 %vm7974_vm1, %v7973_v1  ;;  %6819 = vmatprep.mubr.msk.f32.mxu0 %vm7974_vm1, %v7973_v1  ;;  %v4084_v12 = vld [vmem:[%s8025_s21 + $0x8a] sm:$0xff] }
 0x142   : > { %6258 = vmatmul.mubr.msk.f32.gmra.mrb[70].mxu1 %vm214_vm2, %v735_v14  ;;  %6820 = vmatmul.mubr.msk.f32.gmra.mrb[28].mxu0 %vm214_vm2, %v8382_v18  ;;  %v737_v18 = vld [vmem:[%s8025_s21 + $0x12e] sm:$0xff]  ;;  %v9295_v14 = vld [vmem:[%s8025_s21 + $0x117] sm:$0xff] }
 0x143   : > { %6260 = vmatprep.mubr.msk.f32.mxu1 %vm7974_vm1, %v7973_v1  ;;  %6822 = vmatprep.mubr.msk.f32.mxu0 %vm7974_vm1, %v7973_v1 }
 0x146   : > { %6261 = vmatmul.mubr.msk.f32.gmra.mrb[72].mxu1 %vm214_vm2, %v736_v16  ;;  %6823 = vmatmul.mubr.msk.f32.gmra.mrb[30].mxu0 %vm214_vm2, %v8393_v20  ;;  %v738_v20 = vld [vmem:[%s8025_s21 + $0x136] sm:$0xff] }
 0x147   : > { %6263 = vmatprep.mubr.msk.f32.mxu1 %vm7974_vm1, %v7973_v1  ;;  %6825 = vmatprep.mubr.msk.f32.mxu0 %vm7974_vm1, %v7973_v1  ;;  %v4085_v16 = vld [vmem:[%s8025_s21 + $0x92] sm:$0xff] }
 0x14a   : > { %6264 = vmatmul.mubr.msk.f32.gmra.mrb[74].mxu1 %vm214_vm2, %v737_v18  ;;  %6826 = vmatmul.mubr.msk.f32.gmra.mrb[32].mxu0 %vm214_vm2, %v8404_v22  ;;  %v739_v22 = vld [vmem:[%s8025_s21 + $0x13e] sm:$0xff] }
 0x14b   : > { %6266 = vmatprep.mubr.msk.f32.mxu1 %vm7974_vm1, %v7973_v1  ;;  %6828 = vmatprep.mubr.msk.f32.mxu0 %vm7974_vm1, %v7973_v1  ;;  %v9306_v18 = vld [vmem:[%s8025_s21 + $0x11f] sm:$0xff] }
 0x14e   : > { %6267 = vmatmul.mubr.msk.f32.gmra.mrb[76].mxu1 %vm214_vm2, %v738_v20  ;;  %6829 = vmatmul.mubr.msk.f32.gmra.mrb[34].mxu0 %vm214_vm2, %v8415_v24  ;;  %v740_v24 = vld [vmem:[%s8025_s21 + $0x146] sm:$0xf]  ;;  %v4086_v20 = vld [vmem:[%s8025_s21 + $0x9a] sm:$0xff] }
 0x14f   : > { %6269 = vmatprep.mubr.msk.f32.mxu1 %vm7974_vm1, %v7973_v1  ;;  %6831 = vmatprep.mubr.msk.f32.mxu0 %vm7974_vm1, %v7973_v1 }
 0x152   : > { %6270 = vmatmul.mubr.msk.f32.gmra.mrb[78].mxu1 %vm214_vm2, %v739_v22  ;;  %6832 = vmatmul.mubr.msk.f32.gmra.mrb[36].mxu0 %vm214_vm2, %v8426_v26  ;;  %v1262_v26 = vld [vmem:[%s8025_s21 + $0x7] sm:$0xff] }
 0x153   : > { %6272 = vmatprep.mubr.msk.f32.mxu1 %vm7974_vm1, %v7973_v1  ;;  %6834 = vmatprep.mubr.msk.f32.mxu0 %vm7974_vm1, %v7973_v1  ;;  %v9317_v22 = vld [vmem:[%s8025_s21 + $0x127] sm:$0xff] }
 0x156   : > { %6273 = vmatmul.mubr.msk.f32.gmra.mrb[82].mxu1 %vm214_vm2, %v740_v24  ;;  %6835 = vmatmul.mubr.msk.f32.gmra.mrb[38].mxu0 %vm214_vm2, %v8439_v29  ;;  %v1263_v29 = vld [vmem:[%s8025_s21 + $0xf] sm:$0xff]  ;;  %v4087_v24 = vld [vmem:[%s8025_s21 + $0xa2] sm:$0xff] }
 0x157   : > { %6277 = vmatprep.mubr.msk.f32.mxu1 %vm7974_vm1, %v7973_v1  ;;  %6837 = vmatprep.mubr.msk.f32.mxu0 %vm7974_vm1, %v7973_v1 }
 0x15a   : > { %6278 = vmatmul.mubr.msk.f32.vlgmr.msra.gmra.mrb[0].mxu1 %vm214_vm2, %v1262_v26  ;;  %6838 = vmatmul.mubr.msk.f32.gmra.mrb[40].mxu0 %vm214_vm2, %v8453_v31  ;;  %v8946_v31 = vld [vmem:[%s8025_s21 + $0x1f] sm:$0xff]  ;;  %v9328_v26 = vld [vmem:[%s8025_s21 + $0x12f] sm:$0xff] }
 0x15b   : > { %6401 = vmatpush3.msk.msra.mxu1 %vm338_vm0, %v5387_v28  ;;  %6280 = vmatprep.mubr.msk.f32.mxu1 %vm7974_vm1, %v7973_v1  ;;  %v4088_v28 = vld [vmem:[%s8025_s21 + $0xaa] sm:$0xff] }
 0x15c   : > { %6840 = vmatprep.mubr.msk.f32.mxu0 %vm7974_vm1, %v7973_v1  ;;  %7150 = vmatprep.subr.mxu1 %v7973_v1 }
 0x15e   : > { %6281 = vmatmul.mubr.msk.f32.gmra.mrb[2].mxu1 %vm214_vm2, %v1263_v29  ;;  %6841 = vmatmul.mubr.msk.f32.gmra.mrb[42].mxu0 %vm214_vm2, %v8464_v33  ;;  %v8968_v33 = vld [vmem:[%s8025_s21 + $0x2f] sm:$0xff]  ;;  %v9339_v29 = vld [vmem:[%s8025_s21 + $0x137] sm:$0xff] }
 0x15f   : > { %6283 = vmatprep.mubr.msk.f32.mxu1 %vm7974_vm1, %v7973_v1  ;;  %6843 = vmatprep.mubr.msk.f32.mxu0 %vm7974_vm1, %v7973_v1 }
 0x162   : > { %6284 = vmatmul.mubr.msk.f32.gmra.mrb[4].mxu1 %vm214_vm2, %v8935_v30  ;;  %6844 = vmatmul.mubr.msk.f32.gmra.mrb[44].mxu0 %vm214_vm2, %v8475_v35  ;;  %v8990_v35 = vld [vmem:[%s8025_s21 + $0x3f] sm:$0xff] }
 0x163   : > { %6286 = vmatprep.mubr.msk.f32.mxu1 %vm7974_vm1, %v7973_v1  ;;  %6846 = vmatprep.mubr.msk.f32.mxu0 %vm7974_vm1, %v7973_v1 }
 0x166   : > { %6287 = vmatmul.mubr.msk.f32.gmra.mrb[6].mxu1 %vm214_vm2, %v8946_v31  ;;  %6847 = vmatmul.mubr.msk.f32.gmra.mrb[46].mxu0 %vm214_vm2, %v8486_v37  ;;  %v9012_v37 = vld [vmem:[%s8025_s21 + $0x4f] sm:$0xff] }
 0x167   : > { %6289 = vmatprep.mubr.msk.f32.mxu1 %vm7974_vm1, %v7973_v1  ;;  %6849 = vmatprep.mubr.msk.f32.mxu0 %vm7974_vm1, %v7973_v1 }
 0x16a   : > { %6290 = vmatmul.mubr.msk.f32.gmra.mrb[8].mxu1 %vm214_vm2, %v8957_v32  ;;  %6850 = vmatmul.mubr.msk.f32.gmra.mrb[48].mxu0 %vm214_vm2, %v8497_v39  ;;  %v9034_v39 = vld [vmem:[%s8025_s21 + $0x5f] sm:$0xff] }
 0x16b   : > { %6292 = vmatprep.mubr.msk.f32.mxu1 %vm7974_vm1, %v7973_v1  ;;  %6852 = vmatprep.mubr.msk.f32.mxu0 %vm7974_vm1, %v7973_v1 }
 0x16e   : > { %6293 = vmatmul.mubr.msk.f32.gmra.mrb[10].mxu1 %vm214_vm2, %v8968_v33  ;;  %6853 = vmatmul.mubr.msk.f32.gmra.mrb[50].mxu0 %vm214_vm2, %v8508_v41 }
 0x16f   : > { %6295 = vmatprep.mubr.msk.f32.mxu1 %vm7974_vm1, %v7973_v1  ;;  %6855 = vmatprep.mubr.msk.f32.mxu0 %vm7974_vm1, %v7973_v1 }
 0x172   : > { %6296 = vmatmul.mubr.msk.f32.gmra.mrb[12].mxu1 %vm214_vm2, %v8979_v34  ;;  %6856 = vmatmul.mubr.msk.f32.gmra.mrb[52].mxu0 %vm214_vm2, %v8519_v43  ;;  %v9046_v43 = vld [vmem:[%s8025_s21 + $0x67] sm:$0xff] }
 0x173   : > { %6298 = vmatprep.mubr.msk.f32.mxu1 %vm7974_vm1, %v7973_v1  ;;  %6858 = vmatprep.mubr.msk.f32.mxu0 %vm7974_vm1, %v7973_v1 }
 0x176   : > { %6299 = vmatmul.mubr.msk.f32.gmra.mrb[14].mxu1 %vm214_vm2, %v8990_v35  ;;  %6859 = vmatmul.mubr.msk.f32.gmra.mrb[54].mxu0 %vm214_vm2, %v8530_v45  ;;  %v9069_v45 = vld [vmem:[%s8025_s21 + $0x77] sm:$0xff] }
 0x177   : > { %6301 = vmatprep.mubr.msk.f32.mxu1 %vm7974_vm1, %v7973_v1  ;;  %6861 = vmatprep.mubr.msk.f32.mxu0 %vm7974_vm1, %v7973_v1 }
 0x17a   : > { %6302 = vmatmul.mubr.msk.f32.gmra.mrb[16].mxu1 %vm214_vm2, %v9001_v36  ;;  %6862 = vmatmul.mubr.msk.f32.gmra.mrb[56].mxu0 %vm214_vm2, %v8541_v47  ;;  %v9091_v47 = vld [vmem:[%s8025_s21 + $0x87] sm:$0xff] }
 0x17b   : > { %6304 = vmatprep.mubr.msk.f32.mxu1 %vm7974_vm1, %v7973_v1  ;;  %6864 = vmatprep.mubr.msk.f32.mxu0 %vm7974_vm1, %v7973_v1 }
 0x17e   : > { %6305 = vmatmul.mubr.msk.f32.gmra.mrb[18].mxu1 %vm214_vm2, %v9012_v37  ;;  %6865 = vmatmul.mubr.msk.f32.gmra.mrb[58].mxu0 %vm214_vm2, %v8552_v49  ;;  %v9113_v49 = vld [vmem:[%s8025_s21 + $0x97] sm:$0xff] }
 0x17f   : > { %6307 = vmatprep.mubr.msk.f32.mxu1 %vm7974_vm1, %v7973_v1  ;;  %6867 = vmatprep.mubr.msk.f32.mxu0 %vm7974_vm1, %v7973_v1 }
 0x182   : > { %6308 = vmatmul.mubr.msk.f32.gmra.mrb[20].mxu1 %vm214_vm2, %v9023_v38  ;;  %6868 = vmatmul.mubr.msk.f32.gmra.mrb[60].mxu0 %vm214_vm2, %v8563_v51  ;;  %v9124_v51 = vld [vmem:[%s8025_s21 + $0x9f] sm:$0xff] }
 0x183   : > { %6310 = vmatprep.mubr.msk.f32.mxu1 %vm7974_vm1, %v7973_v1  ;;  %6870 = vmatprep.mubr.msk.f32.mxu0 %vm7974_vm1, %v7973_v1 }
 0x185   : > { %v608_v40 = vpop.f32.mrb[80].mxu1 }
 0x186   : > { %v658_v41 = vadd.f32 %v8660_v21, %v608_v40  ;;  %v6149_v42 = vpop.f32.mrb[81].mxu1  ;;  %6311 = vmatmul.mubr.msk.f32.gmra.mrb[22].mxu1 %vm214_vm2, %v9034_v39  ;;  %6871 = vmatmul.mubr.msk.f32.gmra.mrb[62].mxu0 %vm214_vm2, %v8574_v54  ;;  %v9135_v54 = vld [vmem:[%s8025_s21 + $0xa7] sm:$0xff]  ;;  %v9216_v21 = vld [vmem:[%s8025_s21 + $0xdf] sm:$0xff]  ;;  %v4089_v40 = vld [vmem:[%s8025_s21 + $0xb2] sm:$0xff] }
 0x187   : > { %6313 = vmatprep.mubr.msk.f32.mxu1 %vm7974_vm1, %v7973_v1  ;;  %6873 = vmatprep.mubr.msk.f32.mxu0 %vm7974_vm1, %v7973_v1  ;;  %v4090_v42 = vld [vmem:[%s8025_s21 + $0xba] sm:$0xff] }
 0x188   : > { %699 = vst [vmem:[%s8655_s6 + $0x140] sm:$0xf] %v658_v41  ;;  %v9350_v41 = vld [vmem:[%s8025_s21 + $0x13f] sm:$0xff] }
 0x18a   : > { %6314 = vmatmul.mubr.msk.f32.gmra.mrb[24].mxu1 %vm214_vm2, %v9046_v43  ;;  %6874 = vmatmul.mubr.msk.f32.gmra.mrb[64].mxu0 %vm214_vm2, %v8585_v58  ;;  %v9146_v58 = vld [vmem:[%s8025_s21 + $0xaf] sm:$0xff] }
 0x18b   : > { %6316 = vmatprep.mubr.msk.f32.mxu1 %vm7974_vm1, %v7973_v1  ;;  %6876 = vmatprep.mubr.msk.f32.mxu0 %vm7974_vm1, %v7973_v1 }
 0x18e   : > { %6317 = vmatmul.mubr.msk.f32.gmra.mrb[26].mxu1 %vm214_vm2, %v9058_v44  ;;  %6877 = vmatmul.mubr.msk.f32.gmra.mrb[66].mxu0 %vm214_vm2, %v8596_v62  ;;  %v5602_v62 = vld [vmem:[%s10030_s1 + $0x20] sm:$0xf] }
 0x18f   : > { %6319 = vmatprep.mubr.msk.f32.mxu1 %vm7974_vm1, %v7973_v1  ;;  %6879 = vmatprep.mubr.msk.f32.mxu0 %vm7974_vm1, %v7973_v1 }
 0x192   : > { %6320 = vmatmul.mubr.msk.f32.gmra.mrb[28].mxu1 %vm214_vm2, %v9069_v45  ;;  %6880 = vmatmul.mubr.msk.f32.gmra.mrb[68].mxu0 %vm214_vm2, %v8607_v3  ;;  %v4073_v3 = vld [vmem:[%s8025_s21 + $0x32] sm:$0xff] }
 0x193   : > { %6322 = vmatprep.mubr.msk.f32.mxu1 %vm7974_vm1, %v7973_v1  ;;  %6882 = vmatprep.mubr.msk.f32.mxu0 %vm7974_vm1, %v7973_v1 }
 0x196   : > { %6323 = vmatmul.mubr.msk.f32.gmra.mrb[30].mxu1 %vm214_vm2, %v9080_v46  ;;  %6883 = vmatmul.mubr.msk.f32.gmra.mrb[70].mxu0 %vm214_vm2, %v8618_v7  ;;  %v4074_v7 = vld [vmem:[%s8025_s21 + $0x3a] sm:$0xff] }
 0x197   : > { %6325 = vmatprep.mubr.msk.f32.mxu1 %vm7974_vm1, %v7973_v1  ;;  %6885 = vmatprep.mubr.msk.f32.mxu0 %vm7974_vm1, %v7973_v1 }
 0x19a   : > { %6326 = vmatmul.mubr.msk.f32.gmra.mrb[32].mxu1 %vm214_vm2, %v9091_v47  ;;  %6886 = vmatmul.mubr.msk.f32.gmra.mrb[72].mxu0 %vm214_vm2, %v8629_v11  ;;  %v4075_v11 = vld [vmem:[%s8025_s21 + $0x42] sm:$0xff] }
 0x19b   : > { %6328 = vmatprep.mubr.msk.f32.mxu1 %vm7974_vm1, %v7973_v1  ;;  %6888 = vmatprep.mubr.msk.f32.mxu0 %vm7974_vm1, %v7973_v1 }
 0x19e   : > { %6329 = vmatmul.mubr.msk.f32.gmra.mrb[34].mxu1 %vm214_vm2, %v9102_v48  ;;  %6889 = vmatmul.mubr.msk.f32.gmra.mrb[74].mxu0 %vm214_vm2, %v8640_v15  ;;  %v4076_v15 = vld [vmem:[%s8025_s21 + $0x4a] sm:$0xff] }
 0x19f   : > { %6331 = vmatprep.mubr.msk.f32.mxu1 %vm7974_vm1, %v7973_v1  ;;  %6891 = vmatprep.mubr.msk.f32.mxu0 %vm7974_vm1, %v7973_v1 }
 0x1a2   : > { %6332 = vmatmul.mubr.msk.f32.gmra.mrb[36].mxu1 %vm214_vm2, %v9113_v49  ;;  %6892 = vmatmul.mubr.msk.f32.gmra.mrb[76].mxu0 %vm214_vm2, %v3548_v50  ;;  %v1302_v50 = vld [vmem:[%s8025_s21 + $0x147] sm:$0xf] }
 0x1a3   : > { %6334 = vmatprep.mubr.msk.f32.mxu1 %vm7974_vm1, %v7973_v1  ;;  %6894 = vmatprep.mubr.msk.f32.mxu0 %vm7974_vm1, %v7973_v1 }
 0x1a6   : > { %6335 = vmatmul.mubr.msk.f32.gmra.mrb[38].mxu1 %vm214_vm2, %v9124_v51  ;;  %6895 = vmatmul.mubr.msk.f32.gmra.mrb[78].mxu0 %vm214_vm2, %v3549_v52  ;;  %v4091_v52 = vld [vmem:[%s8025_s21 + $0xc2] sm:$0xff] }
 0x1a7   : > { %6337 = vmatprep.mubr.msk.f32.mxu1 %vm7974_vm1, %v7973_v1  ;;  %6897 = vmatprep.mubr.msk.f32.mxu0 %vm7974_vm1, %v7973_v1 }
 0x1aa   : > { %6338 = vmatmul.mubr.msk.f32.gmra.mrb[40].mxu1 %vm214_vm2, %v9135_v54  ;;  %6898 = vmatmul.mubr.msk.f32.gmra.mrb[82].mxu0 %vm214_vm2, %v3550_v56  ;;  %v4092_v56 = vld [vmem:[%s8025_s21 + $0xca] sm:$0xff] }
 0x1ab   : > { %6340 = vmatprep.mubr.msk.f32.mxu1 %vm7974_vm1, %v7973_v1  ;;  %6902 = vmatprep.mubr.msk.f32.mxu0 %vm7974_vm1, %v7973_v1 }
 0x1ae   : > { %6341 = vmatmul.mubr.msk.f32.gmra.mrb[42].mxu1 %vm214_vm2, %v9146_v58  ;;  %6903 = vmatmul.mubr.msk.f32.vlgmr.msra.gmra.mrb[0].mxu0 %vm214_vm2, %v4072_v60  ;;  %v7964_v60 = vld [vmem:[%s10030_s1 + $0x10] sm:$0xf] }
 0x1af   : > { %6343 = vmatprep.mubr.msk.f32.mxu1 %vm7974_vm1, %v7973_v1  ;;  %6905 = vmatprep.mubr.msk.f32.mxu0 %vm7974_vm1, %v7973_v1 }
 0x1b0   : > { %7026 = vmatpush3.msk.msra.mxu0 %vm338_vm0, %v5602_v62  ;;  %v4093_v62 = vld [vmem:[%s8025_s21 + $0xd2] sm:$0xff] }
 0x1b2   : > { %6344 = vmatmul.mubr.msk.f32.gmra.mrb[44].mxu1 %vm214_vm2, %v9160_v0  ;;  %6906 = vmatmul.mubr.msk.f32.gmra.mrb[2].mxu0 %vm214_vm2, %v4073_v3  ;;  %v781_v3 = vld [vmem:[%s8655_s6 + $0x140] sm:$0xf] }
 0x1b3   : > { %6346 = vmatprep.mubr.msk.f32.mxu1 %vm7974_vm1, %v7973_v1  ;;  %6908 = vmatprep.mubr.msk.f32.mxu0 %vm7974_vm1, %v7973_v1 }
 0x1b6   : > { %6347 = vmatmul.mubr.msk.f32.gmra.mrb[46].mxu1 %vm214_vm2, %v9172_v5  ;;  %6909 = vmatmul.mubr.msk.f32.gmra.mrb[4].mxu0 %vm214_vm2, %v4074_v7 }
 0x1b7   : > { %6349 = vmatprep.mubr.msk.f32.mxu1 %vm7974_vm1, %v7973_v1  ;;  %6911 = vmatprep.mubr.msk.f32.mxu0 %vm7974_vm1, %v7973_v1 }
 0x1ba   : > { %6350 = vmatmul.mubr.msk.f32.gmra.mrb[48].mxu1 %vm214_vm2, %v9183_v9  ;;  %6912 = vmatmul.mubr.msk.f32.gmra.mrb[6].mxu0 %vm214_vm2, %v4075_v11 }
 0x1bb   : > { %6352 = vmatprep.mubr.msk.f32.mxu1 %vm7974_vm1, %v7973_v1  ;;  %6914 = vmatprep.mubr.msk.f32.mxu0 %vm7974_vm1, %v7973_v1 }
 0x1be   : > { %6353 = vmatmul.mubr.msk.f32.gmra.mrb[50].mxu1 %vm214_vm2, %v9194_v13  ;;  %6915 = vmatmul.mubr.msk.f32.gmra.mrb[8].mxu0 %vm214_vm2, %v4076_v15 }
 0x1bf   : > { %6355 = vmatprep.mubr.msk.f32.mxu1 %vm7974_vm1, %v7973_v1  ;;  %6917 = vmatprep.mubr.msk.f32.mxu0 %vm7974_vm1, %v7973_v1 }
 0x1c2   : > { %6356 = vmatmul.mubr.msk.f32.gmra.mrb[52].mxu1 %vm214_vm2, %v9205_v17  ;;  %6918 = vmatmul.mubr.msk.f32.gmra.mrb[10].mxu0 %vm214_vm2, %v4077_v19  ;;  %v4640_v19 = vld [vmem:[%s8025_s21 + $0x5b] sm:$0xff] }
 0x1c3   : > { %6358 = vmatprep.mubr.msk.f32.mxu1 %vm7974_vm1, %v7973_v1  ;;  %6920 = vmatprep.mubr.msk.f32.mxu0 %vm7974_vm1, %v7973_v1 }
 0x1c6   : > { %6359 = vmatmul.mubr.msk.f32.gmra.mrb[54].mxu1 %vm214_vm2, %v9216_v21  ;;  %6921 = vmatmul.mubr.msk.f32.gmra.mrb[12].mxu0 %vm214_vm2, %v4078_v23  ;;  %v4642_v23 = vld [vmem:[%s8025_s21 + $0x6b] sm:$0xff] }
 0x1c7   : > { %6361 = vmatprep.mubr.msk.f32.mxu1 %vm7974_vm1, %v7973_v1  ;;  %6923 = vmatprep.mubr.msk.f32.mxu0 %vm7974_vm1, %v7973_v1 }
 0x1ca   : > { %6362 = vmatmul.mubr.msk.f32.gmra.mrb[56].mxu1 %vm214_vm2, %v9227_v25  ;;  %6924 = vmatmul.mubr.msk.f32.gmra.mrb[14].mxu0 %vm214_vm2, %v4079_v27  ;;  %v4644_v27 = vld [vmem:[%s8025_s21 + $0x7b] sm:$0xff] }
 0x1cb   : > { %6364 = vmatprep.mubr.msk.f32.mxu1 %vm7974_vm1, %v7973_v1  ;;  %6926 = vmatprep.mubr.msk.f32.mxu0 %vm7974_vm1, %v7973_v1 }
 0x1ce   : > { %6365 = vmatmul.mubr.msk.f32.gmra.mrb[58].mxu1 %vm214_vm2, %v9238_v53  ;;  %6927 = vmatmul.mubr.msk.f32.gmra.mrb[16].mxu0 %vm214_vm2, %v4080_v55 }
 0x1cf   : > { %6367 = vmatprep.mubr.msk.f32.mxu1 %vm7974_vm1, %v7973_v1  ;;  %6929 = vmatprep.mubr.msk.f32.mxu0 %vm7974_vm1, %v7973_v1 }
 0x1d2   : > { %6368 = vmatmul.mubr.msk.f32.gmra.mrb[60].mxu1 %vm214_vm2, %v9249_v57  ;;  %6930 = vmatmul.mubr.msk.f32.gmra.mrb[18].mxu0 %vm214_vm2, %v4081_v59  ;;  %v4646_v59 = vld [vmem:[%s8025_s21 + $0x8b] sm:$0xff] }
 0x1d3   : > { %6370 = vmatprep.mubr.msk.f32.mxu1 %vm7974_vm1, %v7973_v1  ;;  %6932 = vmatprep.mubr.msk.f32.mxu0 %vm7974_vm1, %v7973_v1 }
 0x1d6   : > { %6371 = vmatmul.mubr.msk.f32.gmra.mrb[62].mxu1 %vm214_vm2, %v9260_v61  ;;  %6933 = vmatmul.mubr.msk.f32.gmra.mrb[20].mxu0 %vm214_vm2, %v4082_v63  ;;  %v4648_v63 = vld [vmem:[%s8025_s21 + $0x9b] sm:$0xff] }
 0x1d7   : > { %6373 = vmatprep.mubr.msk.f32.mxu1 %vm7974_vm1, %v7973_v1  ;;  %6935 = vmatprep.mubr.msk.f32.mxu0 %vm7974_vm1, %v7973_v1 }
 0x1d9   : > { %v9274_v6 = vpop.f32.mrb[80].mxu0 }
 0x1da   : > { %6374 = vmatmul.mubr.msk.f32.gmra.mrb[64].mxu1 %vm214_vm2, %v9271_v2  ;;  %6936 = vmatmul.mubr.msk.f32.gmra.mrb[22].mxu0 %vm214_vm2, %v4083_v4  ;;  %v6774_v8 = vpop.f32.mrb[81].mxu0  ;;  %v4650_v4 = vld [vmem:[%s8025_s21 + $0xab] sm:$0xff] }
 0x1db   : > { %6376 = vmatprep.mubr.msk.f32.mxu1 %vm7974_vm1, %v7973_v1  ;;  %6938 = vmatprep.mubr.msk.f32.mxu0 %vm7974_vm1, %v7973_v1  ;;  %v1862_v8 = vld [vmem:[%s8025_s21 + $0x147] sm:$0xff] }
 0x1de   : > { %6377 = vmatmul.mubr.msk.f32.gmra.mrb[66].mxu1 %vm214_vm2, %v9284_v10  ;;  %6939 = vmatmul.mubr.msk.f32.gmra.mrb[24].mxu0 %vm214_vm2, %v4084_v12  ;;  %v1863_v12 = vld [vmem:[%s8025_s21 + $0x14f] sm:$0xff] }
 0x1df   : > { %6379 = vmatprep.mubr.msk.f32.mxu1 %vm7974_vm1, %v7973_v1  ;;  %6941 = vmatprep.mubr.msk.f32.mxu0 %vm7974_vm1, %v7973_v1 }
 0x1e2   : > { %6380 = vmatmul.mubr.msk.f32.gmra.mrb[68].mxu1 %vm214_vm2, %v9295_v14  ;;  %6942 = vmatmul.mubr.msk.f32.gmra.mrb[26].mxu0 %vm214_vm2, %v4085_v16  ;;  %v1864_v16 = vld [vmem:[%s8025_s21 + $0x157] sm:$0xf] }
 0x1e3   : > { %6382 = vmatprep.mubr.msk.f32.mxu1 %vm7974_vm1, %v7973_v1  ;;  %6944 = vmatprep.mubr.msk.f32.mxu0 %vm7974_vm1, %v7973_v1 }
 0x1e6   : > { %6383 = vmatmul.mubr.msk.f32.gmra.mrb[70].mxu1 %vm214_vm2, %v9306_v18  ;;  %6945 = vmatmul.mubr.msk.f32.gmra.mrb[28].mxu0 %vm214_vm2, %v4086_v20  ;;  %v2407_v20 = vld [vmem:[%s8025_s21 + $0xc0] sm:$0xff] }
 0x1e7   : > { %6385 = vmatprep.mubr.msk.f32.mxu1 %vm7974_vm1, %v7973_v1  ;;  %6947 = vmatprep.mubr.msk.f32.mxu0 %vm7974_vm1, %v7973_v1 }
 0x1ea   : > { %6386 = vmatmul.mubr.msk.f32.gmra.mrb[72].mxu1 %vm214_vm2, %v9317_v22  ;;  %6948 = vmatmul.mubr.msk.f32.gmra.mrb[30].mxu0 %vm214_vm2, %v4087_v24  ;;  %v2408_v24 = vld [vmem:[%s8025_s21 + $0xc8] sm:$0xff] }
 0x1eb   : > { %6388 = vmatprep.mubr.msk.f32.mxu1 %vm7974_vm1, %v7973_v1  ;;  %6950 = vmatprep.mubr.msk.f32.mxu0 %vm7974_vm1, %v7973_v1 }
 0x1ee   : > { %6389 = vmatmul.mubr.msk.f32.gmra.mrb[74].mxu1 %vm214_vm2, %v9328_v26  ;;  %6951 = vmatmul.mubr.msk.f32.gmra.mrb[32].mxu0 %vm214_vm2, %v4088_v28  ;;  %v2409_v28 = vld [vmem:[%s8025_s21 + $0xd0] sm:$0xff] }
 0x1ef   : > { %6391 = vmatprep.mubr.msk.f32.mxu1 %vm7974_vm1, %v7973_v1  ;;  %6953 = vmatprep.mubr.msk.f32.mxu0 %vm7974_vm1, %v7973_v1 }
 0x1f2   : > { %6392 = vmatmul.mubr.msk.f32.gmra.mrb[76].mxu1 %vm214_vm2, %v9339_v29  ;;  %6954 = vmatmul.mubr.msk.f32.gmra.mrb[34].mxu0 %vm214_vm2, %v4089_v40  ;;  %v2410_v40 = vld [vmem:[%s8025_s21 + $0xd8] sm:$0xff] }
 0x1f3   : > { %6394 = vmatprep.mubr.msk.f32.mxu1 %vm7974_vm1, %v7973_v1  ;;  %6956 = vmatprep.mubr.msk.f32.mxu0 %vm7974_vm1, %v7973_v1 }
 0x1f6   : > { %6395 = vmatmul.mubr.msk.f32.gmra.mrb[78].mxu1 %vm214_vm2, %v9350_v41  ;;  %6957 = vmatmul.mubr.msk.f32.gmra.mrb[36].mxu0 %vm214_vm2, %v4090_v42  ;;  %v2411_v42 = vld [vmem:[%s8025_s21 + $0xe0] sm:$0xff] }
 0x1f7   : > { %6397 = vmatprep.mubr.msk.f32.mxu1 %vm7974_vm1, %v7973_v1  ;;  %6959 = vmatprep.mubr.msk.f32.mxu0 %vm7974_vm1, %v7973_v1 }
 0x1fa   : > { %6398 = vmatmul.mubr.msk.f32.gmra.mrb[84].mxu1 %vm214_vm2, %v1302_v50  ;;  %6960 = vmatmul.mubr.msk.f32.gmra.mrb[38].mxu0 %vm214_vm2, %v4091_v52  ;;  %v4658_v50 = vld [vmem:[%s8025_s21 + $0xeb] sm:$0xff] }
 0x1fb   : > { %6402 = vmatprep.mubr.msk.f32.mxu1 %vm7974_vm1, %v7973_v1  ;;  %6962 = vmatprep.mubr.msk.f32.mxu0 %vm7974_vm1, %v7973_v1  ;;  %v2412_v52 = vld [vmem:[%s8025_s21 + $0xe8] sm:$0xff] }
 0x1fe   : > { %6403 = vmatmul.mubr.msk.f32.vlgmr.msra.gmra.mrb[0].mxu1 %vm214_vm2, %v8935_v30  ;;  %6963 = vmatmul.mubr.msk.f32.gmra.mrb[40].mxu0 %vm214_vm2, %v4092_v56  ;;  %v4094_v30 = vld [vmem:[%s8025_s21 + $0xda] sm:$0xff] }
 0x1ff   : > { %7151 = vmatpush3.msk.msra.mxu1 %vm338_vm0, %v7964_v60  ;;  %6405 = vmatprep.mubr.msk.f32.mxu1 %vm7974_vm1, %v7973_v1  ;;  %v4659_v56 = vld [vmem:[%s8025_s21 + $0xf3] sm:$0xff] }
 0x200   : > { %6965 = vmatprep.mubr.msk.f32.mxu0 %vm7974_vm1, %v7973_v1  ;;  %v2413_v60 = vld [vmem:[%s8025_s21 + $0xf0] sm:$0xff] }
 0x202   : > { %6406 = vmatmul.mubr.msk.f32.gmra.mrb[2].mxu1 %vm214_vm2, %v8946_v31  ;;  %6966 = vmatmul.mubr.msk.f32.gmra.mrb[42].mxu0 %vm214_vm2, %v4093_v62  ;;  %v4095_v31 = vld [vmem:[%s8025_s21 + $0xe2] sm:$0xff] }
 0x203   : > { %6408 = vmatprep.mubr.msk.f32.mxu1 %vm7974_vm1, %v7973_v1  ;;  %6968 = vmatprep.mubr.msk.f32.mxu0 %vm7974_vm1, %v7973_v1  ;;  %v4660_v62 = vld [vmem:[%s8025_s21 + $0xfb] sm:$0xff] }
 0x206   : > { %6409 = vmatmul.mubr.msk.f32.gmra.mrb[4].mxu1 %vm214_vm2, %v8957_v32  ;;  %6969 = vmatmul.mubr.msk.f32.gmra.mrb[44].mxu0 %vm214_vm2, %v4094_v30  ;;  %v4096_v32 = vld [vmem:[%s8025_s21 + $0xea] sm:$0xff]  ;;  %v2414_v30 = vld [vmem:[%s8025_s21 + $0xf8] sm:$0xff] }
 0x207   : > { %6411 = vmatprep.mubr.msk.f32.mxu1 %vm7974_vm1, %v7973_v1  ;;  %6971 = vmatprep.mubr.msk.f32.mxu0 %vm7974_vm1, %v7973_v1 }
 0x20a   : > { %6412 = vmatmul.mubr.msk.f32.gmra.mrb[6].mxu1 %vm214_vm2, %v8968_v33  ;;  %6972 = vmatmul.mubr.msk.f32.gmra.mrb[46].mxu0 %vm214_vm2, %v4095_v31  ;;  %v4097_v33 = vld [vmem:[%s8025_s21 + $0xf2] sm:$0xff]  ;;  %v4661_v31 = vld [vmem:[%s8025_s21 + $0x103] sm:$0xff] }
 0x20b   : > { %6414 = vmatprep.mubr.msk.f32.mxu1 %vm7974_vm1, %v7973_v1  ;;  %6974 = vmatprep.mubr.msk.f32.mxu0 %vm7974_vm1, %v7973_v1 }
 0x20e   : > { %6415 = vmatmul.mubr.msk.f32.gmra.mrb[8].mxu1 %vm214_vm2, %v8979_v34  ;;  %6975 = vmatmul.mubr.msk.f32.gmra.mrb[48].mxu0 %vm214_vm2, %v4096_v32  ;;  %v4098_v34 = vld [vmem:[%s8025_s21 + $0xfa] sm:$0xff] }
 0x20f   : > { %6417 = vmatprep.mubr.msk.f32.mxu1 %vm7974_vm1, %v7973_v1  ;;  %6977 = vmatprep.mubr.msk.f32.mxu0 %vm7974_vm1, %v7973_v1  ;;  %v2415_v32 = vld [vmem:[%s8025_s21 + $0x100] sm:$0xff] }
 0x212   : > { %6418 = vmatmul.mubr.msk.f32.gmra.mrb[10].mxu1 %vm214_vm2, %v8990_v35  ;;  %6978 = vmatmul.mubr.msk.f32.gmra.mrb[50].mxu0 %vm214_vm2, %v4097_v33  ;;  %v4099_v35 = vld [vmem:[%s8025_s21 + $0x102] sm:$0xff]  ;;  %v4662_v33 = vld [vmem:[%s8025_s21 + $0x10b] sm:$0xff] }
 0x213   : > { %6420 = vmatprep.mubr.msk.f32.mxu1 %vm7974_vm1, %v7973_v1  ;;  %6980 = vmatprep.mubr.msk.f32.mxu0 %vm7974_vm1, %v7973_v1 }
 0x216   : > { %6421 = vmatmul.mubr.msk.f32.gmra.mrb[12].mxu1 %vm214_vm2, %v9001_v36  ;;  %6981 = vmatmul.mubr.msk.f32.gmra.mrb[52].mxu0 %vm214_vm2, %v4098_v34  ;;  %v4100_v36 = vld [vmem:[%s8025_s21 + $0x10a] sm:$0xff] }
 0x217   : > { %6423 = vmatprep.mubr.msk.f32.mxu1 %vm7974_vm1, %v7973_v1  ;;  %6983 = vmatprep.mubr.msk.f32.mxu0 %vm7974_vm1, %v7973_v1  ;;  %v2416_v34 = vld [vmem:[%s8025_s21 + $0x108] sm:$0xff] }
 0x21a   : > { %6424 = vmatmul.mubr.msk.f32.gmra.mrb[14].mxu1 %vm214_vm2, %v9012_v37  ;;  %6984 = vmatmul.mubr.msk.f32.gmra.mrb[54].mxu0 %vm214_vm2, %v4099_v35  ;;  %v4101_v37 = vld [vmem:[%s8025_s21 + $0x112] sm:$0xff] }
 0x21b   : > { %6426 = vmatprep.mubr.msk.f32.mxu1 %vm7974_vm1, %v7973_v1  ;;  %6986 = vmatprep.mubr.msk.f32.mxu0 %vm7974_vm1, %v7973_v1  ;;  %v4663_v35 = vld [vmem:[%s8025_s21 + $0x113] sm:$0xff] }
 0x21e   : > { %6427 = vmatmul.mubr.msk.f32.gmra.mrb[16].mxu1 %vm214_vm2, %v9023_v38  ;;  %6987 = vmatmul.mubr.msk.f32.gmra.mrb[56].mxu0 %vm214_vm2, %v4100_v36  ;;  %v4102_v38 = vld [vmem:[%s8025_s21 + $0x11a] sm:$0xff]  ;;  %v2417_v36 = vld [vmem:[%s8025_s21 + $0x110] sm:$0xff] }
 0x21f   : > { %6429 = vmatprep.mubr.msk.f32.mxu1 %vm7974_vm1, %v7973_v1  ;;  %6989 = vmatprep.mubr.msk.f32.mxu0 %vm7974_vm1, %v7973_v1 }
 0x222   : > { %6430 = vmatmul.mubr.msk.f32.gmra.mrb[18].mxu1 %vm214_vm2, %v9034_v39  ;;  %6990 = vmatmul.mubr.msk.f32.gmra.mrb[58].mxu0 %vm214_vm2, %v4101_v37  ;;  %v4103_v39 = vld [vmem:[%s8025_s21 + $0x122] sm:$0xff] }
 0x223   : > { %6432 = vmatprep.mubr.msk.f32.mxu1 %vm7974_vm1, %v7973_v1  ;;  %6992 = vmatprep.mubr.msk.f32.mxu0 %vm7974_vm1, %v7973_v1  ;;  %v4664_v37 = vld [vmem:[%s8025_s21 + $0x11b] sm:$0xff] }
 0x226   : > { %6433 = vmatmul.mubr.msk.f32.gmra.mrb[20].mxu1 %vm214_vm2, %v9046_v43  ;;  %6993 = vmatmul.mubr.msk.f32.gmra.mrb[60].mxu0 %vm214_vm2, %v4102_v38  ;;  %v4104_v43 = vld [vmem:[%s8025_s21 + $0x12a] sm:$0xff]  ;;  %v2418_v38 = vld [vmem:[%s8025_s21 + $0x118] sm:$0xff] }
 0x227   : > { %6435 = vmatprep.mubr.msk.f32.mxu1 %vm7974_vm1, %v7973_v1  ;;  %6995 = vmatprep.mubr.msk.f32.mxu0 %vm7974_vm1, %v7973_v1 }
 0x229   : > { %v1176_v7 = vpop.f32.mrb[82].mxu1 }
 0x22a   : > { %v1220_v11 = vadd.f32 %v1176_v7, %v781_v3  ;;  %v6274_v15 = vpop.f32.mrb[83].mxu1  ;;  %6436 = vmatmul.mubr.msk.f32.gmra.mrb[22].mxu1 %vm214_vm2, %v9058_v44  ;;  %6996 = vmatmul.mubr.msk.f32.gmra.mrb[62].mxu0 %vm214_vm2, %v4103_v39  ;;  %v4105_v44 = vld [vmem:[%s8025_s21 + $0x132] sm:$0xff]  ;;  %v4665_v39 = vld [vmem:[%s8025_s21 + $0x123] sm:$0xff] }
 0x22b   : > { %6438 = vmatprep.mubr.msk.f32.mxu1 %vm7974_vm1, %v7973_v1  ;;  %6998 = vmatprep.mubr.msk.f32.mxu0 %vm7974_vm1, %v7973_v1 }
 0x22c   : > { %1261 = vst [vmem:[%s8655_s6 + $0x140] sm:$0xf] %v1220_v11 }
 0x22e   : > { %6439 = vmatmul.mubr.msk.f32.gmra.mrb[24].mxu1 %vm214_vm2, %v9069_v45  ;;  %6999 = vmatmul.mubr.msk.f32.gmra.mrb[64].mxu0 %vm214_vm2, %v4104_v43  ;;  %v4106_v45 = vld [vmem:[%s8025_s21 + $0x13a] sm:$0xff] }
 0x22f   : > { %6441 = vmatprep.mubr.msk.f32.mxu1 %vm7974_vm1, %v7973_v1  ;;  %7001 = vmatprep.mubr.msk.f32.mxu0 %vm7974_vm1, %v7973_v1  ;;  %v2419_v43 = vld [vmem:[%s8025_s21 + $0x120] sm:$0xff] }
 0x232   : > { %6442 = vmatmul.mubr.msk.f32.gmra.mrb[26].mxu1 %vm214_vm2, %v9080_v46  ;;  %7002 = vmatmul.mubr.msk.f32.gmra.mrb[66].mxu0 %vm214_vm2, %v4105_v44  ;;  %v4107_v46 = vld [vmem:[%s8025_s21 + $0x142] sm:$0xff]  ;;  %v4666_v44 = vld [vmem:[%s8025_s21 + $0x12b] sm:$0xff] }
 0x233   : > { %6444 = vmatprep.mubr.msk.f32.mxu1 %vm7974_vm1, %v7973_v1  ;;  %7004 = vmatprep.mubr.msk.f32.mxu0 %vm7974_vm1, %v7973_v1  ;;  %v1343_v3 = vld [vmem:[%s8655_s6 + $0x140] sm:$0xf] }
 0x236   : > { %6445 = vmatmul.mubr.msk.f32.gmra.mrb[28].mxu1 %vm214_vm2, %v9091_v47  ;;  %7005 = vmatmul.mubr.msk.f32.gmra.mrb[68].mxu0 %vm214_vm2, %v4106_v45  ;;  %v4108_v47 = vld [vmem:[%s8025_s21 + $0x14a] sm:$0xff] }
 0x237   : > { %6447 = vmatprep.mubr.msk.f32.mxu1 %vm7974_vm1, %v7973_v1  ;;  %7007 = vmatprep.mubr.msk.f32.mxu0 %vm7974_vm1, %v7973_v1 }
 0x23a   : > { %6448 = vmatmul.mubr.msk.f32.gmra.mrb[30].mxu1 %vm214_vm2, %v9102_v48  ;;  %7008 = vmatmul.mubr.msk.f32.gmra.mrb[70].mxu0 %vm214_vm2, %v4107_v46  ;;  %v4109_v48 = vld [vmem:[%s8025_s21 + $0x152] sm:$0xff] }
 0x23b   : > { %6450 = vmatprep.mubr.msk.f32.mxu1 %vm7974_vm1, %v7973_v1  ;;  %7010 = vmatprep.mubr.msk.f32.mxu0 %vm7974_vm1, %v7973_v1 }
 0x23e   : > { %6451 = vmatmul.mubr.msk.f32.gmra.mrb[32].mxu1 %vm214_vm2, %v9113_v49  ;;  %7011 = vmatmul.mubr.msk.f32.gmra.mrb[72].mxu0 %vm214_vm2, %v4108_v47  ;;  %v4110_v49 = vld [vmem:[%s8025_s21 + $0x15a] sm:$0xff]  ;;  %v2420_v47 = vld [vmem:[%s8025_s21 + $0x128] sm:$0xff] }
 0x23f   : > { %6453 = vmatprep.mubr.msk.f32.mxu1 %vm7974_vm1, %v7973_v1  ;;  %7013 = vmatprep.mubr.msk.f32.mxu0 %vm7974_vm1, %v7973_v1 }
 0x242   : > { %6454 = vmatmul.mubr.msk.f32.gmra.mrb[34].mxu1 %vm214_vm2, %v9124_v51  ;;  %7014 = vmatmul.mubr.msk.f32.gmra.mrb[74].mxu0 %vm214_vm2, %v4109_v48  ;;  %v4111_v51 = vld [vmem:[%s8025_s21 + $0x162] sm:$0xff]  ;;  %v4667_v48 = vld [vmem:[%s8025_s21 + $0x133] sm:$0xff] }
 0x243   : > { %6456 = vmatprep.mubr.msk.f32.mxu1 %vm7974_vm1, %v7973_v1  ;;  %7016 = vmatprep.mubr.msk.f32.mxu0 %vm7974_vm1, %v7973_v1 }
 0x246   : > { %6457 = vmatmul.mubr.msk.f32.gmra.mrb[36].mxu1 %vm214_vm2, %v9135_v54  ;;  %7017 = vmatmul.mubr.msk.f32.gmra.mrb[76].mxu0 %vm214_vm2, %v4110_v49  ;;  %v4112_v54 = vld [vmem:[%s8025_s21 + $0x16a] sm:$0xf] }
 0x247   : > { %6459 = vmatprep.mubr.msk.f32.mxu1 %vm7974_vm1, %v7973_v1  ;;  %7019 = vmatprep.mubr.msk.f32.mxu0 %vm7974_vm1, %v7973_v1 }
 0x24a   : > { %6460 = vmatmul.mubr.msk.f32.gmra.mrb[38].mxu1 %vm214_vm2, %v9146_v58  ;;  %7020 = vmatmul.mubr.msk.f32.gmra.mrb[78].mxu0 %vm214_vm2, %v4111_v51  ;;  %v4634_v58 = vld [vmem:[%s8025_s21 + $0x2b] sm:$0xff] }
 0x24b   : > { %6462 = vmatprep.mubr.msk.f32.mxu1 %vm7974_vm1, %v7973_v1  ;;  %7022 = vmatprep.mubr.msk.f32.mxu0 %vm7974_vm1, %v7973_v1 }
 0x24e   : > { %6463 = vmatmul.mubr.msk.f32.gmra.mrb[40].mxu1 %vm214_vm2, %v9160_v0  ;;  %7023 = vmatmul.mubr.msk.f32.gmra.mrb[84].mxu0 %vm214_vm2, %v4112_v54  ;;  %v4635_v0 = vld [vmem:[%s8025_s21 + $0x33] sm:$0xff] }
 0x24f   : > { %6465 = vmatprep.mubr.msk.f32.mxu1 %vm7974_vm1, %v7973_v1  ;;  %7027 = vmatprep.mubr.msk.f32.mxu0 %vm7974_vm1, %v7973_v1  ;;  %v2421_v54 = vld [vmem:[%s8025_s21 + $0x130] sm:$0xff] }
 0x252   : > { %6466 = vmatmul.mubr.msk.f32.gmra.mrb[42].mxu1 %vm214_vm2, %v9172_v5  ;;  %7028 = vmatmul.mubr.msk.f32.vlgmr.msra.gmra.mrb[0].mxu0 %vm214_vm2, %v4634_v58  ;;  %v4636_v5 = vld [vmem:[%s8025_s21 + $0x3b] sm:$0xff] }
 0x253   : > { %6468 = vmatprep.mubr.msk.f32.mxu1 %vm7974_vm1, %v7973_v1  ;;  %7030 = vmatprep.mubr.msk.f32.mxu0 %vm7974_vm1, %v7973_v1  ;;  %v4668_v58 = vld [vmem:[%s8025_s21 + $0x13b] sm:$0xff] }
 0x256   : > { %6469 = vmatmul.mubr.msk.f32.gmra.mrb[44].mxu1 %vm214_vm2, %v9183_v9  ;;  %7031 = vmatmul.mubr.msk.f32.gmra.mrb[2].mxu0 %vm214_vm2, %v4635_v0  ;;  %v4637_v9 = vld [vmem:[%s8025_s21 + $0x43] sm:$0xff] }
 0x257   : > { %6471 = vmatprep.mubr.msk.f32.mxu1 %vm7974_vm1, %v7973_v1  ;;  %7033 = vmatprep.mubr.msk.f32.mxu0 %vm7974_vm1, %v7973_v1 }
 0x25a   : > { %6472 = vmatmul.mubr.msk.f32.gmra.mrb[46].mxu1 %vm214_vm2, %v9194_v13  ;;  %7034 = vmatmul.mubr.msk.f32.gmra.mrb[4].mxu0 %vm214_vm2, %v4636_v5  ;;  %v4638_v13 = vld [vmem:[%s8025_s21 + $0x4b] sm:$0xff] }
 0x25b   : > { %6474 = vmatprep.mubr.msk.f32.mxu1 %vm7974_vm1, %v7973_v1  ;;  %7036 = vmatprep.mubr.msk.f32.mxu0 %vm7974_vm1, %v7973_v1 }
 0x25e   : > { %6475 = vmatmul.mubr.msk.f32.gmra.mrb[48].mxu1 %vm214_vm2, %v9205_v17  ;;  %7037 = vmatmul.mubr.msk.f32.gmra.mrb[6].mxu0 %vm214_vm2, %v4637_v9  ;;  %v4639_v17 = vld [vmem:[%s8025_s21 + $0x53] sm:$0xff] }
 0x25f   : > { %6477 = vmatprep.mubr.msk.f32.mxu1 %vm7974_vm1, %v7973_v1  ;;  %7039 = vmatprep.mubr.msk.f32.mxu0 %vm7974_vm1, %v7973_v1  ;;  %v2422_v9 = vld [vmem:[%s8025_s21 + $0x138] sm:$0xff] }
 0x262   : > { %6478 = vmatmul.mubr.msk.f32.gmra.mrb[50].mxu1 %vm214_vm2, %v9216_v21  ;;  %7040 = vmatmul.mubr.msk.f32.gmra.mrb[8].mxu0 %vm214_vm2, %v4638_v13  ;;  %v4641_v21 = vld [vmem:[%s8025_s21 + $0x63] sm:$0xff] }
 0x263   : > { %6480 = vmatprep.mubr.msk.f32.mxu1 %vm7974_vm1, %v7973_v1  ;;  %7042 = vmatprep.mubr.msk.f32.mxu0 %vm7974_vm1, %v7973_v1  ;;  %v4669_v13 = vld [vmem:[%s8025_s21 + $0x143] sm:$0xff] }
 0x266   : > { %6481 = vmatmul.mubr.msk.f32.gmra.mrb[52].mxu1 %vm214_vm2, %v9227_v25  ;;  %7043 = vmatmul.mubr.msk.f32.gmra.mrb[10].mxu0 %vm214_vm2, %v4639_v17  ;;  %v4643_v25 = vld [vmem:[%s8025_s21 + $0x73] sm:$0xff] }
 0x267   : > { %6483 = vmatprep.mubr.msk.f32.mxu1 %vm7974_vm1, %v7973_v1  ;;  %7045 = vmatprep.mubr.msk.f32.mxu0 %vm7974_vm1, %v7973_v1 }
 0x26a   : > { %6484 = vmatmul.mubr.msk.f32.gmra.mrb[54].mxu1 %vm214_vm2, %v9238_v53  ;;  %7046 = vmatmul.mubr.msk.f32.gmra.mrb[12].mxu0 %vm214_vm2, %v4640_v19  ;;  %v4645_v53 = vld [vmem:[%s8025_s21 + $0x83] sm:$0xff] }
 0x26b   : > { %6486 = vmatprep.mubr.msk.f32.mxu1 %vm7974_vm1, %v7973_v1  ;;  %7048 = vmatprep.mubr.msk.f32.mxu0 %vm7974_vm1, %v7973_v1 }
 0x26e   : > { %6487 = vmatmul.mubr.msk.f32.gmra.mrb[56].mxu1 %vm214_vm2, %v9249_v57  ;;  %7049 = vmatmul.mubr.msk.f32.gmra.mrb[14].mxu0 %vm214_vm2, %v4641_v21  ;;  %v2423_v21 = vld [vmem:[%s8025_s21 + $0x140] sm:$0xff] }
 0x26f   : > { %6489 = vmatprep.mubr.msk.f32.mxu1 %vm7974_vm1, %v7973_v1  ;;  %7051 = vmatprep.mubr.msk.f32.mxu0 %vm7974_vm1, %v7973_v1 }
 0x272   : > { %6490 = vmatmul.mubr.msk.f32.gmra.mrb[58].mxu1 %vm214_vm2, %v9260_v61  ;;  %7052 = vmatmul.mubr.msk.f32.gmra.mrb[16].mxu0 %vm214_vm2, %v4642_v23  ;;  %v4647_v61 = vld [vmem:[%s8025_s21 + $0x93] sm:$0xff]  ;;  %v4670_v23 = vld [vmem:[%s8025_s21 + $0x14b] sm:$0xff] }
 0x273   : > { %6492 = vmatprep.mubr.msk.f32.mxu1 %vm7974_vm1, %v7973_v1  ;;  %7054 = vmatprep.mubr.msk.f32.mxu0 %vm7974_vm1, %v7973_v1 }
 0x276   : > { %6493 = vmatmul.mubr.msk.f32.gmra.mrb[60].mxu1 %vm214_vm2, %v9271_v2  ;;  %7055 = vmatmul.mubr.msk.f32.gmra.mrb[18].mxu0 %vm214_vm2, %v4643_v25  ;;  %v4649_v2 = vld [vmem:[%s8025_s21 + $0xa3] sm:$0xff] }
 0x277   : > { %6495 = vmatprep.mubr.msk.f32.mxu1 %vm7974_vm1, %v7973_v1  ;;  %7057 = vmatprep.mubr.msk.f32.mxu0 %vm7974_vm1, %v7973_v1 }
 0x27a   : > { %6496 = vmatmul.mubr.msk.f32.gmra.mrb[62].mxu1 %vm214_vm2, %v9284_v10  ;;  %7058 = vmatmul.mubr.msk.f32.gmra.mrb[20].mxu0 %vm214_vm2, %v4644_v27  ;;  %v4651_v10 = vld [vmem:[%s8025_s21 + $0xb3] sm:$0xff] }
 0x27b   : > { %6498 = vmatprep.mubr.msk.f32.mxu1 %vm7974_vm1, %v7973_v1  ;;  %7060 = vmatprep.mubr.msk.f32.mxu0 %vm7974_vm1, %v7973_v1 }
 0x27d   : > { %v9631_v55 = vpop.f32.mrb[82].mxu0 }
 0x27e   : > { %6499 = vmatmul.mubr.msk.f32.gmra.mrb[64].mxu1 %vm214_vm2, %v9295_v14  ;;  %7061 = vmatmul.mubr.msk.f32.gmra.mrb[22].mxu0 %vm214_vm2, %v4645_v53  ;;  %v6899_v57 = vpop.f32.mrb[83].mxu0  ;;  %v4652_v14 = vld [vmem:[%s8025_s21 + $0xbb] sm:$0xff]  ;;  %v2424_v53 = vld [vmem:[%s8025_s21 + $0x148] sm:$0xff] }
 0x27f   : > { %6501 = vmatprep.mubr.msk.f32.mxu1 %vm7974_vm1, %v7973_v1  ;;  %7063 = vmatprep.mubr.msk.f32.mxu0 %vm7974_vm1, %v7973_v1  ;;  %v4671_v57 = vld [vmem:[%s8025_s21 + $0x153] sm:$0xff] }
 0x282   : > { %6502 = vmatmul.mubr.msk.f32.gmra.mrb[66].mxu1 %vm214_vm2, %v9306_v18  ;;  %7064 = vmatmul.mubr.msk.f32.gmra.mrb[24].mxu0 %vm214_vm2, %v4646_v59  ;;  %v4653_v18 = vld [vmem:[%s8025_s21 + $0xc3] sm:$0xff] }
 0x283   : > { %6504 = vmatprep.mubr.msk.f32.mxu1 %vm7974_vm1, %v7973_v1  ;;  %7066 = vmatprep.mubr.msk.f32.mxu0 %vm7974_vm1, %v7973_v1 }
 0x286   : > { %6505 = vmatmul.mubr.msk.f32.gmra.mrb[68].mxu1 %vm214_vm2, %v9317_v22  ;;  %7067 = vmatmul.mubr.msk.f32.gmra.mrb[26].mxu0 %vm214_vm2, %v4647_v61  ;;  %v4654_v22 = vld [vmem:[%s8025_s21 + $0xcb] sm:$0xff] }
 0x287   : > { %6507 = vmatprep.mubr.msk.f32.mxu1 %vm7974_vm1, %v7973_v1  ;;  %7069 = vmatprep.mubr.msk.f32.mxu0 %vm7974_vm1, %v7973_v1 }
 0x28a   : > { %6508 = vmatmul.mubr.msk.f32.gmra.mrb[70].mxu1 %vm214_vm2, %v9328_v26  ;;  %7070 = vmatmul.mubr.msk.f32.gmra.mrb[28].mxu0 %vm214_vm2, %v4648_v63  ;;  %v4655_v26 = vld [vmem:[%s8025_s21 + $0xd3] sm:$0xff] }
 0x28b   : > { %6510 = vmatprep.mubr.msk.f32.mxu1 %vm7974_vm1, %v7973_v1  ;;  %7072 = vmatprep.mubr.msk.f32.mxu0 %vm7974_vm1, %v7973_v1  ;;  %v2425_v63 = vld [vmem:[%s8025_s21 + $0x150] sm:$0xff] }
 0x28e   : > { %6511 = vmatmul.mubr.msk.f32.gmra.mrb[72].mxu1 %vm214_vm2, %v9339_v29  ;;  %7073 = vmatmul.mubr.msk.f32.gmra.mrb[30].mxu0 %vm214_vm2, %v4649_v2  ;;  %v4656_v29 = vld [vmem:[%s8025_s21 + $0xdb] sm:$0xff] }
 0x28f   : > { %6513 = vmatprep.mubr.msk.f32.mxu1 %vm7974_vm1, %v7973_v1  ;;  %7075 = vmatprep.mubr.msk.f32.mxu0 %vm7974_vm1, %v7973_v1  ;;  %v4672_v2 = vld [vmem:[%s8025_s21 + $0x15b] sm:$0xff] }
 0x292   : > { %6514 = vmatmul.mubr.msk.f32.gmra.mrb[74].mxu1 %vm214_vm2, %v9350_v41  ;;  %7076 = vmatmul.mubr.msk.f32.gmra.mrb[32].mxu0 %vm214_vm2, %v4650_v4  ;;  %v4657_v41 = vld [vmem:[%s8025_s21 + $0xe3] sm:$0xff] }
 0x293   : > { %6516 = vmatprep.mubr.msk.f32.mxu1 %vm7974_vm1, %v7973_v1  ;;  %7078 = vmatprep.mubr.msk.f32.mxu0 %vm7974_vm1, %v7973_v1 }
 0x296   : > { %6517 = vmatmul.mubr.msk.f32.gmra.mrb[76].mxu1 %vm214_vm2, %v1862_v8  ;;  %7079 = vmatmul.mubr.msk.f32.gmra.mrb[34].mxu0 %vm214_vm2, %v4651_v10  ;;  %v2426_v10 = vld [vmem:[%s8025_s21 + $0x158] sm:$0xf] }
 0x297   : > { %6519 = vmatprep.mubr.msk.f32.mxu1 %vm7974_vm1, %v7973_v1  ;;  %7081 = vmatprep.mubr.msk.f32.mxu0 %vm7974_vm1, %v7973_v1 }
 0x29a   : > { %6520 = vmatmul.mubr.msk.f32.gmra.mrb[78].mxu1 %vm214_vm2, %v1863_v12  ;;  %7082 = vmatmul.mubr.msk.f32.gmra.mrb[36].mxu0 %vm214_vm2, %v4652_v14  ;;  %v4673_v12 = vld [vmem:[%s8025_s21 + $0x163] sm:$0xff] }
 0x29b   : > { %6522 = vmatprep.mubr.msk.f32.mxu1 %vm7974_vm1, %v7973_v1  ;;  %7084 = vmatprep.mubr.msk.f32.mxu0 %vm7974_vm1, %v7973_v1 }
 0x29e   : > { %6523 = vmatmul.mubr.msk.f32.gmra.mrb[86].mxu1 %vm214_vm2, %v1864_v16  ;;  %7085 = vmatmul.mubr.msk.f32.gmra.mrb[38].mxu0 %vm214_vm2, %v4653_v18  ;;  %v4674_v18 = vld [vmem:[%s8025_s21 + $0x16b] sm:$0xf] }
 0x29f   : > { %6590 = vmatprep.mubr.msk.f32.mxu1 %vm7974_vm1, %v7973_v1  ;;  %7087 = vmatprep.mubr.msk.f32.mxu0 %vm7974_vm1, %v7973_v1 }
 0x2a2   : > { %6591 = vmatmul.mubr.msk.f32.vlgmr.msra.gmra.mrb[42].mxu1 %vm214_vm2, %v2407_v20  ;;  %7088 = vmatmul.mubr.msk.f32.gmra.mrb[40].mxu0 %vm214_vm2, %v4654_v22 }
 0x2a3   : > { %6593 = vmatprep.mubr.msk.f32.mxu1 %vm7974_vm1, %v7973_v1  ;;  %7090 = vmatprep.mubr.msk.f32.mxu0 %vm7974_vm1, %v7973_v1 }
 0x2a6   : > { %6594 = vmatmul.mubr.msk.f32.gmra.mrb[44].mxu1 %vm214_vm2, %v2408_v24  ;;  %7091 = vmatmul.mubr.msk.f32.gmra.mrb[42].mxu0 %vm214_vm2, %v4655_v26 }
 0x2a7   : > { %6596 = vmatprep.mubr.msk.f32.mxu1 %vm7974_vm1, %v7973_v1  ;;  %7093 = vmatprep.mubr.msk.f32.mxu0 %vm7974_vm1, %v7973_v1 }
 0x2aa   : > { %6597 = vmatmul.mubr.msk.f32.gmra.mrb[46].mxu1 %vm214_vm2, %v2409_v28  ;;  %7094 = vmatmul.mubr.msk.f32.gmra.mrb[44].mxu0 %vm214_vm2, %v4656_v29 }
 0x2ab   : > { %6599 = vmatprep.mubr.msk.f32.mxu1 %vm7974_vm1, %v7973_v1  ;;  %7096 = vmatprep.mubr.msk.f32.mxu0 %vm7974_vm1, %v7973_v1 }
 0x2ae   : > { %6600 = vmatmul.mubr.msk.f32.gmra.mrb[48].mxu1 %vm214_vm2, %v2410_v40  ;;  %7097 = vmatmul.mubr.msk.f32.gmra.mrb[46].mxu0 %vm214_vm2, %v4657_v41 }
 0x2af   : > { %6602 = vmatprep.mubr.msk.f32.mxu1 %vm7974_vm1, %v7973_v1  ;;  %7099 = vmatprep.mubr.msk.f32.mxu0 %vm7974_vm1, %v7973_v1 }
 0x2b2   : > { %6603 = vmatmul.mubr.msk.f32.gmra.mrb[50].mxu1 %vm214_vm2, %v2411_v42  ;;  %7100 = vmatmul.mubr.msk.f32.gmra.mrb[48].mxu0 %vm214_vm2, %v4658_v50 }
 0x2b3   : > { %6605 = vmatprep.mubr.msk.f32.mxu1 %vm7974_vm1, %v7973_v1  ;;  %7102 = vmatprep.mubr.msk.f32.mxu0 %vm7974_vm1, %v7973_v1 }
 0x2b6   : > { %6606 = vmatmul.mubr.msk.f32.gmra.mrb[52].mxu1 %vm214_vm2, %v2412_v52  ;;  %7103 = vmatmul.mubr.msk.f32.gmra.mrb[50].mxu0 %vm214_vm2, %v4659_v56 }
 0x2b7   : > { %6608 = vmatprep.mubr.msk.f32.mxu1 %vm7974_vm1, %v7973_v1  ;;  %7105 = vmatprep.mubr.msk.f32.mxu0 %vm7974_vm1, %v7973_v1 }
 0x2ba   : > { %6609 = vmatmul.mubr.msk.f32.gmra.mrb[54].mxu1 %vm214_vm2, %v2413_v60  ;;  %7106 = vmatmul.mubr.msk.f32.gmra.mrb[52].mxu0 %vm214_vm2, %v4660_v62 }
 0x2bb   : > { %6611 = vmatprep.mubr.msk.f32.mxu1 %vm7974_vm1, %v7973_v1  ;;  %7108 = vmatprep.mubr.msk.f32.mxu0 %vm7974_vm1, %v7973_v1 }
 0x2be   : > { %6612 = vmatmul.mubr.msk.f32.gmra.mrb[56].mxu1 %vm214_vm2, %v2414_v30  ;;  %7109 = vmatmul.mubr.msk.f32.gmra.mrb[54].mxu0 %vm214_vm2, %v4661_v31 }
 0x2bf   : > { %6614 = vmatprep.mubr.msk.f32.mxu1 %vm7974_vm1, %v7973_v1  ;;  %7111 = vmatprep.mubr.msk.f32.mxu0 %vm7974_vm1, %v7973_v1 }
 0x2c2   : > { %6615 = vmatmul.mubr.msk.f32.gmra.mrb[58].mxu1 %vm214_vm2, %v2415_v32  ;;  %7112 = vmatmul.mubr.msk.f32.gmra.mrb[56].mxu0 %vm214_vm2, %v4662_v33 }
 0x2c3   : > { %6617 = vmatprep.mubr.msk.f32.mxu1 %vm7974_vm1, %v7973_v1  ;;  %7114 = vmatprep.mubr.msk.f32.mxu0 %vm7974_vm1, %v7973_v1 }
 0x2c6   : > { %6618 = vmatmul.mubr.msk.f32.gmra.mrb[60].mxu1 %vm214_vm2, %v2416_v34  ;;  %7115 = vmatmul.mubr.msk.f32.gmra.mrb[58].mxu0 %vm214_vm2, %v4663_v35 }
 0x2c7   : > { %6620 = vmatprep.mubr.msk.f32.mxu1 %vm7974_vm1, %v7973_v1  ;;  %7117 = vmatprep.mubr.msk.f32.mxu0 %vm7974_vm1, %v7973_v1 }
 0x2ca   : > { %6621 = vmatmul.mubr.msk.f32.gmra.mrb[62].mxu1 %vm214_vm2, %v2417_v36  ;;  %7118 = vmatmul.mubr.msk.f32.gmra.mrb[60].mxu0 %vm214_vm2, %v4664_v37 }
 0x2cb   : > { %6623 = vmatprep.mubr.msk.f32.mxu1 %vm7974_vm1, %v7973_v1  ;;  %7120 = vmatprep.mubr.msk.f32.mxu0 %vm7974_vm1, %v7973_v1 }
 0x2cd   : > { %v1738_v7 = vpop.f32.mrb[84].mxu1 }
 0x2ce   : > { %v1782_v11 = vadd.f32 %v1738_v7, %v1343_v3  ;;  %v6399_v15 = vpop.f32.mrb[85].mxu1  ;;  %6624 = vmatmul.mubr.msk.f32.gmra.mrb[64].mxu1 %vm214_vm2, %v2418_v38  ;;  %7121 = vmatmul.mubr.msk.f32.gmra.mrb[62].mxu0 %vm214_vm2, %v4665_v39  ;;  %v7153_v39 = vld [vmem:[%s8655_s6] sm:$0xff] }
 0x2cf   : > { %6626 = vmatprep.mubr.msk.f32.mxu1 %vm7974_vm1, %v7973_v1  ;;  %7123 = vmatprep.mubr.msk.f32.mxu0 %vm7974_vm1, %v7973_v1 }
 0x2d0   : > { %1823 = vst [vmem:[%s8655_s6 + $0x140] sm:$0xf] %v1782_v11 }
 0x2d1   : > { %v9804_v45 = vpop.f32.mrb[0].mxu1 }
 0x2d2   : > { %v6404_v46 = vpop.f32.mrb[1].mxu1  ;;  %6627 = vmatmul.mubr.msk.f32.gmra.mrb[66].mxu1 %vm214_vm2, %v2419_v43  ;;  %7124 = vmatmul.mubr.msk.f32.gmra.mrb[64].mxu0 %vm214_vm2, %v4666_v44  ;;  %v7154_v43 = vadd.f32 %v7153_v39, %v9804_v45  ;;  %v7159_v44 = vld [vmem:[%s8655_s6 + $0x8] sm:$0xff] }
 0x2d3   : > { %6629 = vmatprep.mubr.msk.f32.mxu1 %vm7974_vm1, %v7973_v1  ;;  %7126 = vmatprep.mubr.msk.f32.mxu0 %vm7974_vm1, %v7973_v1 }
 0x2d5   : > { %v9814_v49 = vpop.f32.mrb[2].mxu1 }
 0x2d6   : > { %v6407_v51 = vpop.f32.mrb[3].mxu1  ;;  %6630 = vmatmul.mubr.msk.f32.gmra.mrb[68].mxu1 %vm214_vm2, %v2420_v47  ;;  %7127 = vmatmul.mubr.msk.f32.gmra.mrb[66].mxu0 %vm214_vm2, %v4667_v48 }
 0x2d7   : > { %6632 = vmatprep.mubr.msk.f32.mxu1 %vm7974_vm1, %v7973_v1  ;;  %7129 = vmatprep.mubr.msk.f32.mxu0 %vm7974_vm1, %v7973_v1  ;;  %v7160_v51 = vadd.f32 %v7159_v44, %v9814_v49  ;;  %v7177_v49 = vld [vmem:[%s8655_s6 + $0x20] sm:$0xff] }
 0x2d9   : > { %v9824_v0 = vpop.f32.mrb[4].mxu1 }
 0x2da   : > { %v6410_v5 = vpop.f32.mrb[5].mxu1  ;;  %6633 = vmatmul.mubr.msk.f32.gmra.mrb[70].mxu1 %vm214_vm2, %v2421_v54  ;;  %7130 = vmatmul.mubr.msk.f32.gmra.mrb[68].mxu0 %vm214_vm2, %v4668_v58  ;;  %v7165_v54 = vld [vmem:[%s8655_s6 + $0x10] sm:$0xff] }
 0x2db   : > { %6635 = vmatprep.mubr.msk.f32.mxu1 %vm7974_vm1, %v7973_v1  ;;  %7132 = vmatprep.mubr.msk.f32.mxu0 %vm7974_vm1, %v7973_v1 }
 0x2dd   : > { %v9834_v17 = vpop.f32.mrb[6].mxu1 }
 0x2de   : > { %v6413_v19 = vpop.f32.mrb[7].mxu1  ;;  %6636 = vmatmul.mubr.msk.f32.gmra.mrb[72].mxu1 %vm214_vm2, %v2422_v9  ;;  %7133 = vmatmul.mubr.msk.f32.gmra.mrb[70].mxu0 %vm214_vm2, %v4669_v13  ;;  %v7166_v13 = vadd.f32 %v7165_v54, %v9824_v0  ;;  %v7183_v0 = vld [vmem:[%s8655_s6 + $0x28] sm:$0xff] }
 0x2df   : > { %6638 = vmatprep.mubr.msk.f32.mxu1 %vm7974_vm1, %v7973_v1  ;;  %7135 = vmatprep.mubr.msk.f32.mxu0 %vm7974_vm1, %v7973_v1  ;;  %v7171_v19 = vld [vmem:[%s8655_s6 + $0x18] sm:$0xff] }
 0x2e1   : > { %v9844_v25 = vpop.f32.mrb[8].mxu1 }
 0x2e2   : > { %v6416_v27 = vpop.f32.mrb[9].mxu1  ;;  %6639 = vmatmul.mubr.msk.f32.gmra.mrb[74].mxu1 %vm214_vm2, %v2423_v21  ;;  %7136 = vmatmul.mubr.msk.f32.gmra.mrb[72].mxu0 %vm214_vm2, %v4670_v23 }
 0x2e3   : > { %6641 = vmatprep.mubr.msk.f32.mxu1 %vm7974_vm1, %v7973_v1  ;;  %7138 = vmatprep.mubr.msk.f32.mxu0 %vm7974_vm1, %v7973_v1  ;;  %v7172_v27 = vadd.f32 %v7171_v19, %v9834_v17  ;;  %v7189_v17 = vld [vmem:[%s8655_s6 + $0x30] sm:$0xff] }
 0x2e5   : > { %v9854_v59 = vpop.f32.mrb[10].mxu1 }
 0x2e6   : > { %v6419_v61 = vpop.f32.mrb[11].mxu1  ;;  %6642 = vmatmul.mubr.msk.f32.gmra.mrb[76].mxu1 %vm214_vm2, %v2424_v53  ;;  %7139 = vmatmul.mubr.msk.f32.gmra.mrb[74].mxu0 %vm214_vm2, %v4671_v57 }
 0x2e7   : > { %6644 = vmatprep.mubr.msk.f32.mxu1 %vm7974_vm1, %v7973_v1  ;;  %7141 = vmatprep.mubr.msk.f32.mxu0 %vm7974_vm1, %v7973_v1 }
 0x2e9   : > { %v9864_v4 = vpop.f32.mrb[12].mxu1 }
 0x2ea   : > { %v6422_v8 = vpop.f32.mrb[13].mxu1  ;;  %6645 = vmatmul.mubr.msk.f32.gmra.mrb[78].mxu1 %vm214_vm2, %v2425_v63  ;;  %7142 = vmatmul.mubr.msk.f32.gmra.mrb[76].mxu0 %vm214_vm2, %v4672_v2  ;;  %v7178_v63 = vadd.f32 %v7177_v49, %v9844_v25  ;;  %v7195_v25 = vld [vmem:[%s8655_s6 + $0x38] sm:$0xff] }
 0x2eb   : > { %6647 = vmatprep.mubr.msk.f32.mxu1 %vm7974_vm1, %v7973_v1  ;;  %7144 = vmatprep.mubr.msk.f32.mxu0 %vm7974_vm1, %v7973_v1 }
 0x2ed   : > { %v9874_v14 = vpop.f32.mrb[14].mxu1 }
 0x2ee   : > { %v6425_v16 = vpop.f32.mrb[15].mxu1  ;;  %6648 = vmatmul.mubr.msk.f32.gmra.mrb[88].mxu1 %vm214_vm2, %v2426_v10  ;;  %7145 = vmatmul.mubr.msk.f32.gmra.mrb[78].mxu0 %vm214_vm2, %v4673_v12  ;;  %v7184_v12 = vadd.f32 %v7183_v0, %v9854_v59  ;;  %v7201_v59 = vld [vmem:[%s8655_s6 + $0x40] sm:$0xff] }
 0x2ef   : > { %7147 = vmatprep.mubr.msk.f32.mxu0 %vm7974_vm1, %v7973_v1 }
 0x2f1   : > { %v9881_v20 = vpop.f32.mrb[16].mxu1 }
 0x2f2   : > { %v6428_v22 = vpop.f32.mrb[17].mxu1  ;;  %7148 = vmatmul.mubr.msk.f32.gmra.mrb[86].mxu0 %vm214_vm2, %v4674_v18 }
 0x2f5   : > { %v9884_v24 = vpop.f32.mrb[18].mxu1 }
 0x2f6   : > { %v6431_v26 = vpop.f32.mrb[19].mxu1 }
 0x2f7   : > { %v7190_v26 = vadd.f32 %v7189_v17, %v9864_v4  ;;  %v7207_v4 = vld [vmem:[%s8655_s6 + $0x48] sm:$0xff] }
 0x2f9   : > { %v9886_v28 = vpop.f32.mrb[20].mxu1 }
 0x2fa   : > { %v6434_v29 = vpop.f32.mrb[21].mxu1 }
 0x2fd   : > { %v9888_v40 = vpop.f32.mrb[22].mxu1 }
 0x2fe   : > { %v6437_v41 = vpop.f32.mrb[23].mxu1 }
 0x301   : > { %v9890_v42 = vpop.f32.mrb[24].mxu1 }
 0x302   : > { %v6440_v50 = vpop.f32.mrb[25].mxu1 }
 0x305   : > { %v9892_v1 = vpop.f32.mrb[26].mxu1 }
 0x306   : > { %v6443_v52 = vpop.f32.mrb[27].mxu1 }
 0x307   : > { %v7196_v52 = vadd.f32 %v7195_v25, %v9874_v14  ;;  %v7213_v14 = vld [vmem:[%s8655_s6 + $0x50] sm:$0xff] }
 0x309   : > { %v9894_v56 = vpop.f32.mrb[28].mxu1 }
 0x30a   : > { %v6446_v60 = vpop.f32.mrb[29].mxu1 }
 0x30d   : > { %v9896_v62 = vpop.f32.mrb[30].mxu1 }
 0x30e   : > { %v6449_v30 = vpop.f32.mrb[31].mxu1 }
 0x311   : > { %v9898_v31 = vpop.f32.mrb[32].mxu1 }
 0x312   : > { %v6452_v32 = vpop.f32.mrb[33].mxu1 }
 0x315   : > { %v9900_v33 = vpop.f32.mrb[34].mxu1 }
 0x316   : > { %v6455_v34 = vpop.f32.mrb[35].mxu1 }
 0x317   : > { %v7202_v34 = vadd.f32 %v7201_v59, %v9881_v20  ;;  %v7219_v20 = vld [vmem:[%s8655_s6 + $0x58] sm:$0xff] }
 0x318   : > { %v7220_v54 = vadd.f32 %v7219_v20, %v9888_v40  ;;  %v7237_v40 = vld [vmem:[%s8655_s6 + $0x70] sm:$0xff] }
 0x319   : > { %v9902_v35 = vpop.f32.mrb[36].mxu1 }
 0x31a   : > { %v6458_v36 = vpop.f32.mrb[37].mxu1 }
 0x31d   : > { %v9904_v37 = vpop.f32.mrb[38].mxu1 }
 0x31e   : > { %v6461_v38 = vpop.f32.mrb[39].mxu1 }
 0x321   : > { %v9907_v3 = vpop.f32.mrb[40].mxu1  ;;  %v9909_v7 = vpop.f32.mrb[84].mxu0 }
 0x322   : > { %v6464_v11 = vpop.f32.mrb[41].mxu1  ;;  %v7024_v15 = vpop.f32.mrb[85].mxu0 }
 0x323   : > { %v7208_v11 = vadd.f32 %v7207_v4, %v9884_v24  ;;  %v7225_v24 = vld [vmem:[%s8655_s6 + $0x60] sm:$0xff] }
 0x325   : > { %v4910_v46 = vpop.f32.mrb[0].mxu0 }
 0x326   : > { %v7157_v47 = vadd.f32 %v7154_v43, %v4910_v46  ;;  %v7029_v48 = vpop.f32.mrb[1].mxu0  ;;  %v7214_v46 = vadd.f32 %v7213_v14, %v9886_v28  ;;  %v7231_v28 = vld [vmem:[%s8655_s6 + $0x68] sm:$0xff] }
 0x328   : > { %5155 = vst [vmem:[%s8655_s6] sm:$0xff] %v7157_v47 }
 0x329   : > { %v4915_v58 = vpop.f32.mrb[2].mxu0 }
 0x32a   : > { %v7163_v5 = vadd.f32 %v7160_v51, %v4915_v58  ;;  %v7032_v9 = vpop.f32.mrb[3].mxu0 }
 0x32c   : > { %5156 = vst [vmem:[%s8655_s6 + $0x8] sm:$0xff] %v7163_v5 }
 0x32d   : > { %v4920_v45 = vpop.f32.mrb[4].mxu0 }
 0x32e   : > { %v7169_v21 = vadd.f32 %v7166_v13, %v4920_v45  ;;  %v7035_v23 = vpop.f32.mrb[5].mxu0  ;;  %v7226_v13 = vadd.f32 %v7225_v24, %v9890_v42  ;;  %v7243_v42 = vld [vmem:[%s8655_s6 + $0x78] sm:$0xff] }
 0x32f   : > { %v7232_v23 = vadd.f32 %v7231_v28, %v9892_v1  ;;  %v7249_v1 = vld [vmem:[%s8655_s6 + $0x80] sm:$0xff] }
 0x330   : > { %5157 = vst [vmem:[%s8655_s6 + $0x10] sm:$0xff] %v7169_v21  ;;  %v7250_v17 = vadd.f32 %v7249_v1, %v9898_v31  ;;  %v7267_v31 = vld [vmem:[%s8655_s6 + $0x98] sm:$0xff] }
 0x331   : > { %v4925_v53 = vpop.f32.mrb[6].mxu0 }
 0x332   : > { %v7175_v57 = vadd.f32 %v7172_v27, %v4925_v53  ;;  %v7038_v61 = vpop.f32.mrb[7].mxu0 }
 0x334   : > { %5158 = vst [vmem:[%s8655_s6 + $0x18] sm:$0xff] %v7175_v57  ;;  %v7238_v57 = vadd.f32 %v7237_v40, %v9894_v56  ;;  %v7255_v56 = vld [vmem:[%s8655_s6 + $0x88] sm:$0xff]  ;;  %v7297_v40 = vld [vmem:[%s8655_s6 + $0xc0] sm:$0xff] }
 0x335   : > { %v4930_v2 = vpop.f32.mrb[8].mxu0 }
 0x336   : > { %v7181_v8 = vadd.f32 %v7178_v63, %v4930_v2  ;;  %v7041_v10 = vpop.f32.mrb[9].mxu0  ;;  %v7244_v2 = vadd.f32 %v7243_v42, %v9896_v62  ;;  %v7261_v62 = vld [vmem:[%s8655_s6 + $0x90] sm:$0xff] }
 0x338   : > { %5159 = vst [vmem:[%s8655_s6 + $0x20] sm:$0xff] %v7181_v8 }
 0x339   : > { %v4935_v16 = vpop.f32.mrb[10].mxu0 }
 0x33a   : > { %v7187_v18 = vadd.f32 %v7184_v12, %v4935_v16  ;;  %v7044_v22 = vpop.f32.mrb[11].mxu0 }
 0x33c   : > { %5160 = vst [vmem:[%s8655_s6 + $0x28] sm:$0xff] %v7187_v18 }
 0x33d   : > { %v4940_v29 = vpop.f32.mrb[12].mxu0 }
 0x33e   : > { %v7193_v41 = vadd.f32 %v7190_v26, %v4940_v29  ;;  %v7047_v50 = vpop.f32.mrb[13].mxu0  ;;  %v7256_v26 = vadd.f32 %v7255_v56, %v9900_v33  ;;  %v1905_v33 = vld [vmem:[%s8655_s6 + $0x140] sm:$0xf] }
 0x33f   : > { %v7262_v50 = vadd.f32 %v7261_v62, %v9902_v35 }
 0x340   : > { %5161 = vst [vmem:[%s8655_s6 + $0x30] sm:$0xff] %v7193_v41 }
 0x341   : > { %v4945_v60 = vpop.f32.mrb[14].mxu0 }
 0x342   : > { %v7199_v30 = vadd.f32 %v7196_v52, %v4945_v60  ;;  %v7050_v32 = vpop.f32.mrb[15].mxu0 }
 0x343   : > { %v7273_v32 = vld [vmem:[%s8655_s6 + $0xa0] sm:$0xff] }
 0x344   : > { %5162 = vst [vmem:[%s8655_s6 + $0x38] sm:$0xff] %v7199_v30  ;;  %v7268_v30 = vadd.f32 %v7267_v31, %v9904_v37 }
 0x345   : > { %v4950_v36 = vpop.f32.mrb[16].mxu0 }
 0x346   : > { %v7205_v38 = vadd.f32 %v7202_v34, %v4950_v36  ;;  %v7053_v39 = vpop.f32.mrb[17].mxu0 }
 0x348   : > { %5163 = vst [vmem:[%s8655_s6 + $0x40] sm:$0xff] %v7205_v38 }
 0x349   : > { %v4955_v15 = vpop.f32.mrb[18].mxu0 }
 0x34a   : > { %v7211_v43 = vadd.f32 %v7208_v11, %v4955_v15  ;;  %v7056_v44 = vpop.f32.mrb[19].mxu0  ;;  %v7274_v11 = vadd.f32 %v7273_v32, %v9907_v3  ;;  %v7279_v15 = vld [vmem:[%s8655_s6 + $0xa8] sm:$0xff] }
 0x34c   : > { %5164 = vst [vmem:[%s8655_s6 + $0x48] sm:$0xff] %v7211_v43 }
 0x34d   : > { %v4960_v47 = vpop.f32.mrb[20].mxu0 }
 0x34e   : > { %v7217_v48 = vadd.f32 %v7214_v46, %v4960_v47  ;;  %v7059_v51 = vpop.f32.mrb[21].mxu0 }
 0x350   : > { %5165 = vst [vmem:[%s8655_s6 + $0x50] sm:$0xff] %v7217_v48  ;;  %v7285_v48 = vld [vmem:[%s8655_s6 + $0xb0] sm:$0xff] }
 0x351   : > { %v4965_v58 = vpop.f32.mrb[22].mxu0 }
 0x352   : > { %v7223_v5 = vadd.f32 %v7220_v54, %v4965_v58  ;;  %v7062_v9 = vpop.f32.mrb[23].mxu0 }
 0x353   : > { %v7291_v9 = vld [vmem:[%s8655_s6 + $0xb8] sm:$0xff] }
 0x354   : > { %5166 = vst [vmem:[%s8655_s6 + $0x58] sm:$0xff] %v7223_v5 }
 0x355   : > { %v4970_v19 = vpop.f32.mrb[24].mxu0 }
 0x356   : > { %v7229_v45 = vadd.f32 %v7226_v13, %v4970_v19  ;;  %v7065_v21 = vpop.f32.mrb[25].mxu0 }
 0x358   : > { %5167 = vst [vmem:[%s8655_s6 + $0x60] sm:$0xff] %v7229_v45 }
 0x359   : > { %v4975_v27 = vpop.f32.mrb[26].mxu0 }
 0x35a   : > { %v7235_v49 = vadd.f32 %v7232_v23, %v4975_v27  ;;  %v7068_v53 = vpop.f32.mrb[27].mxu0 }
 0x35c   : > { %5168 = vst [vmem:[%s8655_s6 + $0x68] sm:$0xff] %v7235_v49 }
 0x35d   : > { %v4980_v61 = vpop.f32.mrb[28].mxu0 }
 0x35e   : > { %v7241_v63 = vadd.f32 %v7238_v57, %v4980_v61  ;;  %v7071_v0 = vpop.f32.mrb[29].mxu0 }
 0x360   : > { %5169 = vst [vmem:[%s8655_s6 + $0x70] sm:$0xff] %v7241_v63  ;;  %v7303_v63 = vld [vmem:[%s8655_s6 + $0xc8] sm:$0xff] }
 0x361   : > { %v4985_v8 = vpop.f32.mrb[30].mxu0 }
 0x362   : > { %v7247_v10 = vadd.f32 %v7244_v2, %v4985_v8  ;;  %v7074_v12 = vpop.f32.mrb[31].mxu0 }
 0x364   : > { %5170 = vst [vmem:[%s8655_s6 + $0x78] sm:$0xff] %v7247_v10 }
 0x365   : > { %v4990_v16 = vpop.f32.mrb[32].mxu0 }
 0x366   : > { %v7253_v18 = vadd.f32 %v7250_v17, %v4990_v16  ;;  %v7077_v22 = vpop.f32.mrb[33].mxu0  ;;  %v7309_v17 = vld [vmem:[%s8655_s6 + $0xd0] sm:$0xff] }
 0x368   : > { %5171 = vst [vmem:[%s8655_s6 + $0x80] sm:$0xff] %v7253_v18 }
 0x369   : > { %v4995_v25 = vpop.f32.mrb[34].mxu0 }
 0x36a   : > { %v7259_v29 = vadd.f32 %v7256_v26, %v4995_v25  ;;  %v7080_v41 = vpop.f32.mrb[35].mxu0  ;;  %v7315_v25 = vld [vmem:[%s8655_s6 + $0xd8] sm:$0xff] }
 0x36c   : > { %5172 = vst [vmem:[%s8655_s6 + $0x88] sm:$0xff] %v7259_v29 }
 0x36d   : > { %v5000_v52 = vpop.f32.mrb[36].mxu0 }
 0x36e   : > { %v7265_v59 = vadd.f32 %v7262_v50, %v5000_v52  ;;  %v7083_v60 = vpop.f32.mrb[37].mxu0 }
 0x36f   : > { %v7321_v60 = vld [vmem:[%s8655_s6 + $0xe0] sm:$0xff] }
 0x370   : > { %5173 = vst [vmem:[%s8655_s6 + $0x90] sm:$0xff] %v7265_v59 }
 0x371   : > { %v2300_v34 = vpop.f32.mrb[86].mxu1  ;;  %v5005_v4 = vpop.f32.mrb[38].mxu0 }
 0x372   : > { %v2344_v36 = vadd.f32 %v2300_v34, %v1905_v33  ;;  %v7271_v38 = vadd.f32 %v7268_v30, %v5005_v4  ;;  %v6524_v35 = vpop.f32.mrb[87].mxu1  ;;  %v7086_v39 = vpop.f32.mrb[39].mxu0 }
 0x374   : > { %2385 = vst [vmem:[%s8655_s6 + $0x140] sm:$0xf] %v2344_v36  ;;  %5174 = vst [vmem:[%s8655_s6 + $0x98] sm:$0xff] %v7271_v38  ;;  %v7327_v38 = vld [vmem:[%s8655_s6 + $0xe8] sm:$0xff] }
 0x375   : > { %v2767_v14 = vpop.f32.mrb[42].mxu1  ;;  %v5010_v37 = vpop.f32.mrb[40].mxu0 }
 0x376   : > { %v7277_v43 = vadd.f32 %v7274_v11, %v5010_v37  ;;  %v6592_v44 = vpop.f32.mrb[43].mxu1  ;;  %v7089_v46 = vpop.f32.mrb[41].mxu0  ;;  %v7280_v20 = vadd.f32 %v7279_v15, %v2767_v14 }
 0x378   : > { %5175 = vst [vmem:[%s8655_s6 + $0xa0] sm:$0xff] %v7277_v43  ;;  %v7333_v43 = vld [vmem:[%s8655_s6 + $0xf0] sm:$0xff] }
 0x379   : > { %v2772_v47 = vpop.f32.mrb[44].mxu1  ;;  %v5015_v51 = vpop.f32.mrb[42].mxu0 }
 0x37a   : > { %v7283_v54 = vadd.f32 %v7280_v20, %v5015_v51  ;;  %v6595_v24 = vpop.f32.mrb[45].mxu1  ;;  %v7092_v3 = vpop.f32.mrb[43].mxu0  ;;  %v7286_v58 = vadd.f32 %v7285_v48, %v2772_v47 }
 0x37c   : > { %5176 = vst [vmem:[%s8655_s6 + $0xa8] sm:$0xff] %v7283_v54  ;;  %v7339_v54 = vld [vmem:[%s8655_s6 + $0xf8] sm:$0xff] }
 0x37d   : > { %v2777_v5 = vpop.f32.mrb[46].mxu1  ;;  %v5020_v13 = vpop.f32.mrb[44].mxu0 }
 0x37e   : > { %v7289_v28 = vadd.f32 %v7286_v58, %v5020_v13  ;;  %v6598_v19 = vpop.f32.mrb[47].mxu1  ;;  %v7095_v45 = vpop.f32.mrb[45].mxu0  ;;  %v7292_v21 = vadd.f32 %v7291_v9, %v2777_v5 }
 0x380   : > { %5177 = vst [vmem:[%s8655_s6 + $0xb0] sm:$0xff] %v7289_v28  ;;  %v7345_v28 = vld [vmem:[%s8655_s6 + $0x100] sm:$0xff] }
 0x381   : > { %v2782_v23 = vpop.f32.mrb[48].mxu1  ;;  %v5025_v27 = vpop.f32.mrb[46].mxu0 }
 0x382   : > { %v7295_v49 = vadd.f32 %v7292_v21, %v5025_v27  ;;  %v6601_v53 = vpop.f32.mrb[49].mxu1  ;;  %v7098_v57 = vpop.f32.mrb[47].mxu0  ;;  %v7298_v42 = vadd.f32 %v7297_v40, %v2782_v23 }
 0x384   : > { %5178 = vst [vmem:[%s8655_s6 + $0xb8] sm:$0xff] %v7295_v49  ;;  %v7351_v49 = vld [vmem:[%s8655_s6 + $0x108] sm:$0xff] }
 0x385   : > { %v2787_v61 = vpop.f32.mrb[50].mxu1  ;;  %v5030_v0 = vpop.f32.mrb[48].mxu0 }
 0x386   : > { %v7301_v2 = vadd.f32 %v7298_v42, %v5030_v0  ;;  %v6604_v1 = vpop.f32.mrb[51].mxu1  ;;  %v7101_v8 = vpop.f32.mrb[49].mxu0  ;;  %v7304_v10 = vadd.f32 %v7303_v63, %v2787_v61 }
 0x388   : > { %5179 = vst [vmem:[%s8655_s6 + $0xc0] sm:$0xff] %v7301_v2  ;;  %v7357_v2 = vld [vmem:[%s8655_s6 + $0x110] sm:$0xff] }
 0x389   : > { %v2792_v12 = vpop.f32.mrb[52].mxu1  ;;  %v5035_v56 = vpop.f32.mrb[50].mxu0 }
 0x38a   : > { %v7307_v16 = vadd.f32 %v7304_v10, %v5035_v56  ;;  %v6607_v18 = vpop.f32.mrb[53].mxu1  ;;  %v7104_v22 = vpop.f32.mrb[51].mxu0  ;;  %v7310_v26 = vadd.f32 %v7309_v17, %v2792_v12 }
 0x38c   : > { %5180 = vst [vmem:[%s8655_s6 + $0xc8] sm:$0xff] %v7307_v16  ;;  %v7363_v16 = vld [vmem:[%s8655_s6 + $0x118] sm:$0xff] }
 0x38d   : > { %v2797_v62 = vpop.f32.mrb[54].mxu1  ;;  %v5040_v29 = vpop.f32.mrb[52].mxu0 }
 0x38e   : > { %v7313_v41 = vadd.f32 %v7310_v26, %v5040_v29  ;;  %v6610_v50 = vpop.f32.mrb[55].mxu1  ;;  %v7107_v31 = vpop.f32.mrb[53].mxu0  ;;  %v7316_v52 = vadd.f32 %v7315_v25, %v2797_v62 }
 0x390   : > { %5181 = vst [vmem:[%s8655_s6 + $0xd0] sm:$0xff] %v7313_v41  ;;  %v7369_v41 = vld [vmem:[%s8655_s6 + $0x120] sm:$0xff] }
 0x391   : > { %v2802_v59 = vpop.f32.mrb[56].mxu1  ;;  %v5045_v30 = vpop.f32.mrb[54].mxu0 }
 0x392   : > { %v7319_v32 = vadd.f32 %v7316_v52, %v5045_v30  ;;  %v6613_v33 = vpop.f32.mrb[57].mxu1  ;;  %v7110_v34 = vpop.f32.mrb[55].mxu0  ;;  %v7322_v4 = vadd.f32 %v7321_v60, %v2802_v59 }
 0x394   : > { %5182 = vst [vmem:[%s8655_s6 + $0xd8] sm:$0xff] %v7319_v32  ;;  %v7375_v32 = vld [vmem:[%s8655_s6 + $0x128] sm:$0xff] }
 0x395   : > { %v2807_v36 = vpop.f32.mrb[58].mxu1  ;;  %v5050_v35 = vpop.f32.mrb[56].mxu0 }
 0x396   : > { %v7325_v39 = vadd.f32 %v7322_v4, %v5050_v35  ;;  %v6616_v11 = vpop.f32.mrb[59].mxu1  ;;  %v7113_v14 = vpop.f32.mrb[57].mxu0  ;;  %v7328_v15 = vadd.f32 %v7327_v38, %v2807_v36 }
 0x398   : > { %5183 = vst [vmem:[%s8655_s6 + $0xe0] sm:$0xff] %v7325_v39  ;;  %v7381_v39 = vld [vmem:[%s8655_s6 + $0x130] sm:$0xff] }
 0x399   : > { %v2812_v37 = vpop.f32.mrb[60].mxu1  ;;  %v5055_v44 = vpop.f32.mrb[58].mxu0 }
 0x39a   : > { %v7331_v46 = vadd.f32 %v7328_v15, %v5055_v44  ;;  %v6619_v20 = vpop.f32.mrb[61].mxu1  ;;  %v7116_v47 = vpop.f32.mrb[59].mxu0  ;;  %v7334_v48 = vadd.f32 %v7333_v43, %v2812_v37 }
 0x39c   : > { %5184 = vst [vmem:[%s8655_s6 + $0xe8] sm:$0xff] %v7331_v46  ;;  %v7387_v46 = vld [vmem:[%s8655_s6 + $0x138] sm:$0xff] }
 0x39d   : > { %v2817_v51 = vpop.f32.mrb[62].mxu1  ;;  %v5060_v24 = vpop.f32.mrb[60].mxu0 }
 0x39e   : > { %v7337_v3 = vadd.f32 %v7334_v48, %v5060_v24  ;;  %v6622_v58 = vpop.f32.mrb[63].mxu1  ;;  %v7119_v5 = vpop.f32.mrb[61].mxu0  ;;  %v7340_v9 = vadd.f32 %v7339_v54, %v2817_v51  ;;  %v2467_v24 = vld [vmem:[%s8655_s6 + $0x140] sm:$0xf] }
 0x3a0   : > { %5185 = vst [vmem:[%s8655_s6 + $0xf0] sm:$0xff] %v7337_v3 }
 0x3a1   : > { %v2822_v13 = vpop.f32.mrb[64].mxu1  ;;  %v5065_v19 = vpop.f32.mrb[62].mxu0 }
 0x3a2   : > { %v7343_v45 = vadd.f32 %v7340_v9, %v5065_v19  ;;  %v6625_v21 = vpop.f32.mrb[65].mxu1  ;;  %v7122_v23 = vpop.f32.mrb[63].mxu0  ;;  %v7346_v40 = vadd.f32 %v7345_v28, %v2822_v13 }
 0x3a4   : > { %5186 = vst [vmem:[%s8655_s6 + $0xf8] sm:$0xff] %v7343_v45 }
 0x3a5   : > { %v2827_v27 = vpop.f32.mrb[66].mxu1  ;;  %v5070_v53 = vpop.f32.mrb[64].mxu0 }
 0x3a6   : > { %v7349_v57 = vadd.f32 %v7346_v40, %v5070_v53  ;;  %v6628_v42 = vpop.f32.mrb[67].mxu1  ;;  %v7125_v61 = vpop.f32.mrb[65].mxu0  ;;  %v7352_v63 = vadd.f32 %v7351_v49, %v2827_v27 }
 0x3a8   : > { %5187 = vst [vmem:[%s8655_s6 + $0x100] sm:$0xff] %v7349_v57 }
 0x3a9   : > { %v2832_v0 = vpop.f32.mrb[68].mxu1  ;;  %v5075_v1 = vpop.f32.mrb[66].mxu0 }
 0x3aa   : > { %v7355_v8 = vadd.f32 %v7352_v63, %v5075_v1  ;;  %v6631_v10 = vpop.f32.mrb[69].mxu1  ;;  %v7128_v12 = vpop.f32.mrb[67].mxu0  ;;  %v7358_v17 = vadd.f32 %v7357_v2, %v2832_v0 }
 0x3ac   : > { %5188 = vst [vmem:[%s8655_s6 + $0x108] sm:$0xff] %v7355_v8 }
 0x3ad   : > { %v2837_v56 = vpop.f32.mrb[70].mxu1  ;;  %v5080_v18 = vpop.f32.mrb[68].mxu0 }
 0x3ae   : > { %v7361_v22 = vadd.f32 %v7358_v17, %v5080_v18  ;;  %v6634_v26 = vpop.f32.mrb[71].mxu1  ;;  %v7131_v62 = vpop.f32.mrb[69].mxu0  ;;  %v7364_v25 = vadd.f32 %v7363_v16, %v2837_v56 }
 0x3b0   : > { %5189 = vst [vmem:[%s8655_s6 + $0x110] sm:$0xff] %v7361_v22 }
 0x3b1   : > { %v2842_v29 = vpop.f32.mrb[72].mxu1  ;;  %v5085_v50 = vpop.f32.mrb[70].mxu0 }
 0x3b2   : > { %v7367_v31 = vadd.f32 %v7364_v25, %v5085_v50  ;;  %v6637_v52 = vpop.f32.mrb[73].mxu1  ;;  %v7134_v59 = vpop.f32.mrb[71].mxu0  ;;  %v7370_v60 = vadd.f32 %v7369_v41, %v2842_v29 }
 0x3b4   : > { %5190 = vst [vmem:[%s8655_s6 + $0x118] sm:$0xff] %v7367_v31 }
 0x3b5   : > { %v2847_v30 = vpop.f32.mrb[74].mxu1  ;;  %v5090_v33 = vpop.f32.mrb[72].mxu0 }
 0x3b6   : > { %v7373_v34 = vadd.f32 %v7370_v60, %v5090_v33  ;;  %v6640_v4 = vpop.f32.mrb[75].mxu1  ;;  %v7137_v36 = vpop.f32.mrb[73].mxu0  ;;  %v7376_v38 = vadd.f32 %v7375_v32, %v2847_v30 }
 0x3b8   : > { %5191 = vst [vmem:[%s8655_s6 + $0x120] sm:$0xff] %v7373_v34 }
 0x3b9   : > { %v2852_v35 = vpop.f32.mrb[76].mxu1  ;;  %v5095_v11 = vpop.f32.mrb[74].mxu0 }
 0x3ba   : > { %v7379_v14 = vadd.f32 %v7376_v38, %v5095_v11  ;;  %v6643_v15 = vpop.f32.mrb[77].mxu1  ;;  %v7140_v37 = vpop.f32.mrb[75].mxu0  ;;  %v7382_v43 = vadd.f32 %v7381_v39, %v2852_v35 }
 0x3bc   : > { %5192 = vst [vmem:[%s8655_s6 + $0x128] sm:$0xff] %v7379_v14 }
 0x3bd   : > { %v2857_v44 = vpop.f32.mrb[78].mxu1  ;;  %v5100_v20 = vpop.f32.mrb[76].mxu0 }
 0x3be   : > { %v7385_v47 = vadd.f32 %v7382_v43, %v5100_v20  ;;  %v6646_v48 = vpop.f32.mrb[79].mxu1  ;;  %v7143_v51 = vpop.f32.mrb[77].mxu0  ;;  %v7388_v54 = vadd.f32 %v7387_v46, %v2857_v44 }
 0x3c0   : > { %5193 = vst [vmem:[%s8655_s6 + $0x130] sm:$0xff] %v7385_v47 }
 0x3c1   : > { %v2862_v3 = vpop.f32.mrb[88].mxu1  ;;  %v5105_v58 = vpop.f32.mrb[78].mxu0 }
 0x3c2   : > { %v2906_v5 = vadd.f32 %v2862_v3, %v2467_v24  ;;  %v7391_v9 = vadd.f32 %v7388_v54, %v5105_v58  ;;  %v6649_v13 = vpop.f32.mrb[89].mxu1  ;;  %v7146_v28 = vpop.f32.mrb[79].mxu0 }
 0x3c4   : > { %2947 = vst [vmem:[%s8655_s6 + $0x140] sm:$0xf] %v2906_v5  ;;  %5194 = vst [vmem:[%s8655_s6 + $0x138] sm:$0xff] %v7391_v9 }
 0x3c5   : > { %v5110_v19 = vpop.f32.mrb[86].mxu0 }
 0x3c6   : > { %v7149_v45 = vpop.f32.mrb[87].mxu0 }
 0x3cb   : > { %v3029_v21 = vld [vmem:[%s8655_s6 + $0x140] sm:$0xf] }
 0x3cc   : > { %v3468_v23 = vadd.f32 %v9274_v6, %v3029_v21 }
 0x3ce   : > { %3509 = vst [vmem:[%s8655_s6 + $0x140] sm:$0xf] %v3468_v23 }
 0x3d5   : > { %v3591_v40 = vld [vmem:[%s8655_s6 + $0x140] sm:$0xf] }
 0x3d6   : > { %v4030_v27 = vadd.f32 %v9631_v55, %v3591_v40 }
 0x3d8   : > { %4071 = vst [vmem:[%s8655_s6 + $0x140] sm:$0xf] %v4030_v27 }
 0x3df   : > { %v4153_v49 = vld [vmem:[%s8655_s6 + $0x140] sm:$0xf] }
 0x3e0   : > { %v4592_v53 = vadd.f32 %v9909_v7, %v4153_v49 }
 0x3e2   : > { %4633 = vst [vmem:[%s8655_s6 + $0x140] sm:$0xf] %v4592_v53 }
 0x3e9   : > { %v4715_v57 = vld [vmem:[%s8655_s6 + $0x140] sm:$0xf] }
 0x3ea   : > { %v5154_v42 = vadd.f32 %v5110_v19, %v4715_v57 }
 0x3ec   : > { %5195 = vst [vmem:[%s8655_s6 + $0x140] sm:$0xf] %v5154_v42 }
 0x3ed PF: > { %s13_s12 = sadd.s32 1, %s7971_s12  }
 0x3ee   : > { %p10_p4 = scmp.ge.s32.totalorder %s13_s12, 4  }
 0x3f0   :  { %12 = sbr.rel (!%p10_p4) target bundleno = 1 (0x1), region = 70 }

// kernel: deform_conv2d_forward.3
= control target key start
LH: loop header
LB: loop body
LE: loop exit
PB: predicated region body
PF: predicated region fallthrough
CT: control target
= control target key end

     0   :  { %s3750_s15 = smov 0   ;;  %s3752_s16 = smov 0   ;;  %s4396_s0 = inlined_call_operand.vmem [shape: bf16[2,4,256,36], index: 0, kind: input, shape index: {}]   ;;  %s4397_s1 = inlined_call_operand.vmem [shape: f32[2,4,256,9], index: 1, kind: input, shape index: {}]   ;;  %s4398_s2 = inlined_call_operand.vmem [shape: f32[9,36], index: 2, kind: input, shape index: {}]   ;;  %s4399_s3 = inlined_call_operand.vmem [shape: bf16[36,128], index: 3, kind: input, shape index: {}]   ;;  %s4400_s4 = inlined_call_operand.vmem [shape: f32[2,256,128], index: 4, kind: output, shape index: {}]  }
   0x1   :  { %s3754_s17 = smov 0  }
   0x2 LB: > { %s26_s18 = sadd.s32 1, %s3718_s16  ;;  %p2570_p0 = scmp.ge.s32.totalorder %s3722_s17, 1  ;;  %s3722_s17 = sphi %s3754_s17, %s14_s17   ;;  %s3718_s16 = sphi %s3752_s16, %s4408_s16   ;;  %s3714_s15 = sphi %s3750_s15, %s4407_s15  }
   0x3   : > { %p28_p1 = scmp.ge.s32.totalorder %s26_s18, 2  ;;  %p200_p2 = scmp.lt.s32.totalorder %s3722_s17, 3 }
   0x5   : > { %s4410_s18 = smov (%p28_p1, %s26_s18), 0  ;;  %p201_p3 = pnand %p2570_p0, %p200_p2 }
   0x7   : > { %204 = sbr.rel (%p201_p3) target bundleno = 612 (0x264), region = 36 }
   0xe   : > { %v306_v0 = vld [vmem:[%s4398_s2] sm:$0xff]  ;;  %v307_v1 = vld [vmem:[%s4398_s2 + $0x8] sm:$0x1]  ;;  %vm405_vm0 = vcmask 1040384   ;;  %p244_p4 = scmp.lt.s32.totalorder %s3714_s15, 1  ;;  %vm3724_vm1 = vmmov 1  }
   0xf   : > { %v3774_v2 = vpack.c.bf16 %v307_v1, %v306_v0  ;;  %vm3776_vm2 = vmpackc.low %vm405_vm0, %vm3724_vm1  ;;  %vm308_vm3 = vcmask 72704   ;;  %vm2264_vm4 = vcmask 1041408   ;;  %vm2215_vm5 = vcmask 293888  }
  0x10   : > { %s4412_s15 = smov (!%p244_p4, %s3714_s15), 1 }
  0x11   : > { %3669 = vmatprep.subr.msk.bf16.mxu1 %vm3776_vm2, %v3774_v2  ;;  %3647 = vmatprep.subr.msk.bf16.mxu0 %vm3776_vm2, %v3774_v2  ;;  %s2923_s23 = sshll.u32 %s4412_s15, 10  ;;  %s2922_s7 = sshll.u32 %s4412_s15, 9 }
  0x12   : > { %3670 = vmatpush3.bf16.msk.msra.mxu1 %vm3776_vm2, %v3774_v2  ;;  %3650 = vmatpush3.bf16.msk.msra.mxu0 %vm3776_vm2, %v3774_v2  ;;  %s3798_s26 = scalar_lea.vmem %s4397_s1, %s2923_s23  ;;  %s4127_s10 = scalar_lea.vmem %s4396_s0, %s2922_s7 }
  0x13   : > { %3653 = vmatprep.subr.msk.bf16.mxu1 %vm3776_vm2, %v3774_v2  ;;  %3659 = vmatprep.subr.msk.bf16.mxu0 %vm3776_vm2, %v3774_v2  ;;  %v290_v4 = vld [vmem:[%s3798_s26 + $0x80] sm:$0xff]  ;;  %v291_v5 = vld [vmem:[%s3798_s26 + $0x88] sm:$0xff]  ;;  %v292_v8 = vld [vmem:[%s3798_s26 + $0x90] sm:$0xff]  ;;  %s2924_s11 = sshll.u32 %s4412_s15, 8 }
  0x14   : > { %v274_v6 = vld [vmem:[%s3798_s26] sm:$0xff]  ;;  %3427 = vmatprep.mubr.msk.f32.mxu1 %vm308_vm3, %v290_v4  ;;  %v275_v7 = vld [vmem:[%s3798_s26 + $0x8] sm:$0xff]  ;;  %v276_v9 = vld [vmem:[%s3798_s26 + $0x10] sm:$0xff]  ;;  %s4353_s14 = scalar_lea.vmem %s4400_s4, %s2924_s11 }
  0x15   : > { %3403 = vmatprep.mubr.msk.f32.mxu0 %vm308_vm3, %v274_v6  ;;  %3428 = vmatmul.mubr.msk.f32.vlgmr.msra.gmra.mrb[0].mxu1 %vm308_vm3, %v291_v5  ;;  %v293_v10 = vld [vmem:[%s3798_s26 + $0x98] sm:$0xff]  ;;  %v294_v12 = vld [vmem:[%s3798_s26 + $0xa0] sm:$0xff]  ;;  %v295_v14 = vld [vmem:[%s3798_s26 + $0xa8] sm:$0xff] }
  0x16   : > { %3404 = vmatmul.mubr.msk.f32.vlgmr.msra.gmra.mrb[0].mxu0 %vm308_vm3, %v275_v7  ;;  %3656 = vmatpush3.bf16.msk.msra.mxu1 %vm3776_vm2, %v3774_v2  ;;  %v277_v11 = vld [vmem:[%s3798_s26 + $0x18] sm:$0xff]  ;;  %v278_v13 = vld [vmem:[%s3798_s26 + $0x20] sm:$0xff]  ;;  %v279_v15 = vld [vmem:[%s3798_s26 + $0x28] sm:$0xff] }
  0x17   : > { %3430 = vmatprep.mubr.msk.f32.mxu1 %vm308_vm3, %v292_v8  ;;  %3406 = vmatprep.mubr.msk.f32.mxu0 %vm308_vm3, %v276_v9  ;;  %v296_v16 = vld [vmem:[%s3798_s26 + $0xb0] sm:$0xff]  ;;  %v297_v18 = vld [vmem:[%s3798_s26 + $0xb8] sm:$0xff]  ;;  %v298_v20 = vld [vmem:[%s3798_s26 + $0xc0] sm:$0xff] }
  0x18   : > { %3662 = vmatpush3.bf16.msk.msra.mxu0 %vm3776_vm2, %v3774_v2  ;;  %3665 = vmatprep.subr.msk.bf16.mxu1 %vm3776_vm2, %v3774_v2  ;;  %v280_v17 = vld [vmem:[%s3798_s26 + $0x30] sm:$0xff]  ;;  %v281_v19 = vld [vmem:[%s3798_s26 + $0x38] sm:$0xff]  ;;  %v282_v21 = vld [vmem:[%s3798_s26 + $0x40] sm:$0xff] }
  0x19   : > { %3431 = vmatmul.mubr.msk.f32.gmra.mrb[2].mxu1 %vm308_vm3, %v293_v10  ;;  %v299_v22 = vld [vmem:[%s3798_s26 + $0xc8] sm:$0xff]  ;;  %v300_v24 = vld [vmem:[%s3798_s26 + $0xd0] sm:$0xff]  ;;  %v301_v26 = vld [vmem:[%s3798_s26 + $0xd8] sm:$0xff] }
  0x1a   : > { %3407 = vmatmul.mubr.msk.f32.gmra.mrb[2].mxu0 %vm308_vm3, %v277_v11  ;;  %3433 = vmatprep.mubr.msk.f32.mxu1 %vm308_vm3, %v294_v12  ;;  %v283_v23 = vld [vmem:[%s3798_s26 + $0x48] sm:$0xff]  ;;  %v284_v25 = vld [vmem:[%s3798_s26 + $0x50] sm:$0xff]  ;;  %v285_v27 = vld [vmem:[%s3798_s26 + $0x58] sm:$0xff] }
  0x1b   : > { %3409 = vmatprep.mubr.msk.f32.mxu0 %vm308_vm3, %v278_v13  ;;  %v302_v28 = vld [vmem:[%s3798_s26 + $0xe0] sm:$0xff]  ;;  %v303_v30 = vld [vmem:[%s3798_s26 + $0xe8] sm:$0xff]  ;;  %v304_v32 = vld [vmem:[%s3798_s26 + $0xf0] sm:$0xff] }
  0x1c   : > { %v286_v29 = vld [vmem:[%s3798_s26 + $0x60] sm:$0xff]  ;;  %v287_v31 = vld [vmem:[%s3798_s26 + $0x68] sm:$0xff]  ;;  %v288_v33 = vld [vmem:[%s3798_s26 + $0x70] sm:$0xff] }
  0x1d   : > { %3434 = vmatmul.mubr.msk.f32.gmra.mrb[4].mxu1 %vm308_vm3, %v295_v14  ;;  %v305_v34 = vld [vmem:[%s3798_s26 + $0xf8] sm:$0xff]  ;;  %v2610_v36 = vld [vmem:[%s3798_s26 + $0x100] sm:$0xff]  ;;  %v2611_v38 = vld [vmem:[%s3798_s26 + $0x108] sm:$0xff] }
  0x1e   : > { %3410 = vmatmul.mubr.msk.f32.gmra.mrb[4].mxu0 %vm308_vm3, %v279_v15  ;;  %3436 = vmatprep.mubr.msk.f32.mxu1 %vm308_vm3, %v296_v16  ;;  %v289_v35 = vld [vmem:[%s3798_s26 + $0x78] sm:$0xff]  ;;  %v2707_v37 = vld [vmem:[%s3798_s26 + $0x200] sm:$0xff]  ;;  %v2708_v39 = vld [vmem:[%s3798_s26 + $0x208] sm:$0xff] }
  0x1f   : > { %3412 = vmatprep.mubr.msk.f32.mxu0 %vm308_vm3, %v280_v17  ;;  %v2612_v40 = vld [vmem:[%s3798_s26 + $0x110] sm:$0xff]  ;;  %v2613_v42 = vld [vmem:[%s3798_s26 + $0x118] sm:$0xff]  ;;  %v2614_v44 = vld [vmem:[%s3798_s26 + $0x120] sm:$0xff] }
  0x20   : > { %v2709_v41 = vld [vmem:[%s3798_s26 + $0x210] sm:$0xff]  ;;  %v2710_v43 = vld [vmem:[%s3798_s26 + $0x218] sm:$0xff]  ;;  %v2711_v45 = vld [vmem:[%s3798_s26 + $0x220] sm:$0xff] }
  0x21   : > { %3437 = vmatmul.mubr.msk.f32.gmra.mrb[6].mxu1 %vm308_vm3, %v297_v18  ;;  %v2615_v46 = vld [vmem:[%s3798_s26 + $0x128] sm:$0xff]  ;;  %v2616_v48 = vld [vmem:[%s3798_s26 + $0x130] sm:$0xff]  ;;  %v2617_v50 = vld [vmem:[%s3798_s26 + $0x138] sm:$0xff] }
  0x22   : > { %3413 = vmatmul.mubr.msk.f32.gmra.mrb[6].mxu0 %vm308_vm3, %v281_v19  ;;  %3439 = vmatprep.mubr.msk.f32.mxu1 %vm308_vm3, %v298_v20  ;;  %v2712_v47 = vld [vmem:[%s3798_s26 + $0x228] sm:$0xff]  ;;  %v2713_v49 = vld [vmem:[%s3798_s26 + $0x230] sm:$0xff]  ;;  %v2714_v51 = vld [vmem:[%s3798_s26 + $0x238] sm:$0xff] }
  0x23   : > { %3415 = vmatprep.mubr.msk.f32.mxu0 %vm308_vm3, %v282_v21  ;;  %v2618_v52 = vld [vmem:[%s3798_s26 + $0x140] sm:$0xff]  ;;  %v2619_v54 = vld [vmem:[%s3798_s26 + $0x148] sm:$0xff]  ;;  %v2620_v56 = vld [vmem:[%s3798_s26 + $0x150] sm:$0xff] }
  0x24   : > { %v2715_v53 = vld [vmem:[%s3798_s26 + $0x240] sm:$0xff]  ;;  %v2716_v55 = vld [vmem:[%s3798_s26 + $0x248] sm:$0xff]  ;;  %v2717_v57 = vld [vmem:[%s3798_s26 + $0x250] sm:$0xff] }
  0x25   : > { %3440 = vmatmul.mubr.msk.f32.gmra.mrb[8].mxu1 %vm308_vm3, %v299_v22  ;;  %v2621_v58 = vld [vmem:[%s3798_s26 + $0x158] sm:$0xff]  ;;  %v2622_v60 = vld [vmem:[%s3798_s26 + $0x160] sm:$0xff]  ;;  %v2623_v62 = vld [vmem:[%s3798_s26 + $0x168] sm:$0xff] }
  0x26   : > { %3416 = vmatmul.mubr.msk.f32.gmra.mrb[8].mxu0 %vm308_vm3, %v283_v23  ;;  %3442 = vmatprep.mubr.msk.f32.mxu1 %vm308_vm3, %v300_v24  ;;  %v2718_v59 = vld [vmem:[%s3798_s26 + $0x258] sm:$0xff]  ;;  %v2719_v61 = vld [vmem:[%s3798_s26 + $0x260] sm:$0xff]  ;;  %v2720_v63 = vld [vmem:[%s3798_s26 + $0x268] sm:$0xff] }
  0x27   : > { %3418 = vmatprep.mubr.msk.f32.mxu0 %vm308_vm3, %v284_v25  ;;  %v2624_v0 = vld [vmem:[%s3798_s26 + $0x170] sm:$0xff]  ;;  %v2722_v3 = vld [vmem:[%s3798_s26 + $0x278] sm:$0xff]  ;;  %v2626_v4 = vld [vmem:[%s3798_s26 + $0x180] sm:$0xff] }
  0x28   : > { %v2721_v1 = vld [vmem:[%s3798_s26 + $0x270] sm:$0xff]  ;;  %v2723_v5 = vld [vmem:[%s3798_s26 + $0x280] sm:$0xff]  ;;  %v2627_v6 = vld [vmem:[%s3798_s26 + $0x188] sm:$0xff] }
  0x29   : > { %3443 = vmatmul.mubr.msk.f32.gmra.mrb[10].mxu1 %vm308_vm3, %v301_v26  ;;  %v2724_v7 = vld [vmem:[%s3798_s26 + $0x288] sm:$0xff]  ;;  %v2628_v8 = vld [vmem:[%s3798_s26 + $0x190] sm:$0xff]  ;;  %v2629_v10 = vld [vmem:[%s3798_s26 + $0x198] sm:$0xff] }
  0x2a   : > { %3419 = vmatmul.mubr.msk.f32.gmra.mrb[10].mxu0 %vm308_vm3, %v285_v27  ;;  %3445 = vmatprep.mubr.msk.f32.mxu1 %vm308_vm3, %v302_v28  ;;  %v2725_v9 = vld [vmem:[%s3798_s26 + $0x290] sm:$0xff]  ;;  %v2726_v11 = vld [vmem:[%s3798_s26 + $0x298] sm:$0xff]  ;;  %v2630_v12 = vld [vmem:[%s3798_s26 + $0x1a0] sm:$0xff] }
  0x2b   : > { %3421 = vmatprep.mubr.msk.f32.mxu0 %vm308_vm3, %v286_v29  ;;  %v2727_v13 = vld [vmem:[%s3798_s26 + $0x2a0] sm:$0xff]  ;;  %v2631_v14 = vld [vmem:[%s3798_s26 + $0x1a8] sm:$0xff]  ;;  %v2632_v16 = vld [vmem:[%s3798_s26 + $0x1b0] sm:$0xff] }
  0x2c   : > { %v2728_v15 = vld [vmem:[%s3798_s26 + $0x2a8] sm:$0xff]  ;;  %v2729_v17 = vld [vmem:[%s3798_s26 + $0x2b0] sm:$0xff]  ;;  %v2633_v18 = vld [vmem:[%s3798_s26 + $0x1b8] sm:$0xff] }
  0x2d   : > { %3446 = vmatmul.mubr.msk.f32.gmra.mrb[12].mxu1 %vm308_vm3, %v303_v30  ;;  %v2730_v19 = vld [vmem:[%s3798_s26 + $0x2b8] sm:$0xff]  ;;  %v2634_v20 = vld [vmem:[%s3798_s26 + $0x1c0] sm:$0xff]  ;;  %v2635_v22 = vld [vmem:[%s3798_s26 + $0x1c8] sm:$0xff] }
  0x2e   : > { %3422 = vmatmul.mubr.msk.f32.gmra.mrb[12].mxu0 %vm308_vm3, %v287_v31  ;;  %3448 = vmatprep.mubr.msk.f32.mxu1 %vm308_vm3, %v304_v32  ;;  %v2731_v21 = vld [vmem:[%s3798_s26 + $0x2c0] sm:$0xff]  ;;  %v2732_v23 = vld [vmem:[%s3798_s26 + $0x2c8] sm:$0xff]  ;;  %v2636_v24 = vld [vmem:[%s3798_s26 + $0x1d0] sm:$0xff] }
  0x2f   : > { %3424 = vmatprep.mubr.msk.f32.mxu0 %vm308_vm3, %v288_v33  ;;  %v2733_v25 = vld [vmem:[%s3798_s26 + $0x2d0] sm:$0xff]  ;;  %v2637_v26 = vld [vmem:[%s3798_s26 + $0x1d8] sm:$0xff]  ;;  %v2638_v28 = vld [vmem:[%s3798_s26 + $0x1e0] sm:$0xff] }
  0x30   : > { %v2734_v27 = vld [vmem:[%s3798_s26 + $0x2d8] sm:$0xff]  ;;  %v2735_v29 = vld [vmem:[%s3798_s26 + $0x2e0] sm:$0xff]  ;;  %v2639_v30 = vld [vmem:[%s3798_s26 + $0x1e8] sm:$0xff] }
  0x31   : > { %3449 = vmatmul.mubr.msk.f32.gmra.mrb[14].mxu1 %vm308_vm3, %v305_v34  ;;  %v2736_v31 = vld [vmem:[%s3798_s26 + $0x2e8] sm:$0xff]  ;;  %v2640_v32 = vld [vmem:[%s3798_s26 + $0x1f0] sm:$0xff]  ;;  %v2641_v34 = vld [vmem:[%s3798_s26 + $0x1f8] sm:$0xff] }
  0x32   : > { %3425 = vmatmul.mubr.msk.f32.gmra.mrb[14].mxu0 %vm308_vm3, %v289_v35  ;;  %3455 = vmatprep.mubr.msk.f32.mxu1 %vm308_vm3, %v2610_v36  ;;  %v2737_v33 = vld [vmem:[%s3798_s26 + $0x2f0] sm:$0xff]  ;;  %v2738_v35 = vld [vmem:[%s3798_s26 + $0x2f8] sm:$0xff]  ;;  %v2804_v36 = vld [vmem:[%s3798_s26 + $0x300] sm:$0xff] }
  0x33   : > { %3507 = vmatprep.mubr.msk.f32.mxu0 %vm308_vm3, %v2707_v37  ;;  %v2805_v37 = vld [vmem:[%s3798_s26 + $0x308] sm:$0xff] }
  0x35   : > { %3456 = vmatmul.mubr.msk.f32.vlgmr.msra.gmra.mrb[16].mxu1 %vm308_vm3, %v2611_v38  ;;  %v2806_v38 = vld [vmem:[%s3798_s26 + $0x310] sm:$0xff] }
  0x36   : > { %3508 = vmatmul.mubr.msk.f32.vlgmr.msra.gmra.mrb[16].mxu0 %vm308_vm3, %v2708_v39  ;;  %3668 = vmatpush3.bf16.msk.msra.mxu1 %vm3776_vm2, %v3774_v2  ;;  %v2625_v2 = vld [vmem:[%s3798_s26 + $0x178] sm:$0xff] }
  0x37   : > { %3458 = vmatprep.mubr.msk.f32.mxu1 %vm308_vm3, %v2612_v40  ;;  %3510 = vmatprep.mubr.msk.f32.mxu0 %vm308_vm3, %v2709_v41  ;;  %v2807_v39 = vld [vmem:[%s3798_s26 + $0x318] sm:$0xff]  ;;  %v2808_v40 = vld [vmem:[%s3798_s26 + $0x320] sm:$0xff]  ;;  %v2809_v41 = vld [vmem:[%s3798_s26 + $0x328] sm:$0xff] }
  0x39   : > { %3459 = vmatmul.mubr.msk.f32.gmra.mrb[18].mxu1 %vm308_vm3, %v2613_v42  ;;  %v2810_v42 = vld [vmem:[%s3798_s26 + $0x330] sm:$0xff] }
  0x3a   : > { %3511 = vmatmul.mubr.msk.f32.gmra.mrb[18].mxu0 %vm308_vm3, %v2710_v43  ;;  %3461 = vmatprep.mubr.msk.f32.mxu1 %vm308_vm3, %v2614_v44  ;;  %v2811_v43 = vld [vmem:[%s3798_s26 + $0x338] sm:$0xff]  ;;  %v2812_v44 = vld [vmem:[%s3798_s26 + $0x340] sm:$0xff] }
  0x3b   : > { %3513 = vmatprep.mubr.msk.f32.mxu0 %vm308_vm3, %v2711_v45  ;;  %v2813_v45 = vld [vmem:[%s3798_s26 + $0x348] sm:$0xff] }
  0x3d   : > { %3462 = vmatmul.mubr.msk.f32.gmra.mrb[20].mxu1 %vm308_vm3, %v2615_v46  ;;  %v2814_v46 = vld [vmem:[%s3798_s26 + $0x350] sm:$0xff] }
  0x3e   : > { %3514 = vmatmul.mubr.msk.f32.gmra.mrb[20].mxu0 %vm308_vm3, %v2712_v47  ;;  %3464 = vmatprep.mubr.msk.f32.mxu1 %vm308_vm3, %v2616_v48  ;;  %v2815_v47 = vld [vmem:[%s3798_s26 + $0x358] sm:$0xff]  ;;  %v2816_v48 = vld [vmem:[%s3798_s26 + $0x360] sm:$0xff] }
  0x3f   : > { %3516 = vmatprep.mubr.msk.f32.mxu0 %vm308_vm3, %v2713_v49  ;;  %v2817_v49 = vld [vmem:[%s3798_s26 + $0x368] sm:$0xff] }
  0x41   : > { %3465 = vmatmul.mubr.msk.f32.gmra.mrb[22].mxu1 %vm308_vm3, %v2617_v50  ;;  %v2818_v50 = vld [vmem:[%s3798_s26 + $0x370] sm:$0xff] }
  0x42   : > { %3517 = vmatmul.mubr.msk.f32.gmra.mrb[22].mxu0 %vm308_vm3, %v2714_v51  ;;  %3467 = vmatprep.mubr.msk.f32.mxu1 %vm308_vm3, %v2618_v52  ;;  %v2819_v51 = vld [vmem:[%s3798_s26 + $0x378] sm:$0xff]  ;;  %v2820_v52 = vld [vmem:[%s3798_s26 + $0x380] sm:$0xff] }
  0x43   : > { %3519 = vmatprep.mubr.msk.f32.mxu0 %vm308_vm3, %v2715_v53  ;;  %v2821_v53 = vld [vmem:[%s3798_s26 + $0x388] sm:$0xff] }
  0x45   : > { %3468 = vmatmul.mubr.msk.f32.gmra.mrb[24].mxu1 %vm308_vm3, %v2619_v54  ;;  %v2822_v54 = vld [vmem:[%s3798_s26 + $0x390] sm:$0xff] }
  0x46   : > { %3520 = vmatmul.mubr.msk.f32.gmra.mrb[24].mxu0 %vm308_vm3, %v2716_v55  ;;  %3470 = vmatprep.mubr.msk.f32.mxu1 %vm308_vm3, %v2620_v56  ;;  %v2823_v55 = vld [vmem:[%s3798_s26 + $0x398] sm:$0xff]  ;;  %v3697_v56 = vld [vmem:[%s4399_s3] sm:$0xff]  }
  0x47   : > { %3522 = vmatprep.mubr.msk.f32.mxu0 %vm308_vm3, %v2717_v57  ;;  %v2824_v57 = vld [vmem:[%s3798_s26 + $0x3a0] sm:$0xff]  ;;  %3607 = vmatprep.subr.bf16.mxu0 %v3697_v56 }
  0x48   : > { %3608 = vmatpush3.bf16.msra.mxu0 %v3697_v56  ;;  %v3182_v56 = vld [vmem:[%s4127_s10 + $0x10] sm:$0xff]  }
  0x49   : > { %3471 = vmatmul.mubr.msk.f32.gmra.mrb[26].mxu1 %vm308_vm3, %v2621_v58  ;;  %v2825_v58 = vld [vmem:[%s3798_s26 + $0x3a8] sm:$0xff] }
  0x4a   : > { %3523 = vmatmul.mubr.msk.f32.gmra.mrb[26].mxu0 %vm308_vm3, %v2718_v59  ;;  %3473 = vmatprep.mubr.msk.f32.mxu1 %vm308_vm3, %v2622_v60  ;;  %v2826_v59 = vld [vmem:[%s3798_s26 + $0x3b0] sm:$0xff]  ;;  %v2827_v60 = vld [vmem:[%s3798_s26 + $0x3b8] sm:$0xff] }
  0x4b   : > { %3525 = vmatprep.mubr.msk.f32.mxu0 %vm308_vm3, %v2719_v61  ;;  %v2828_v61 = vld [vmem:[%s3798_s26 + $0x3c0] sm:$0xff] }
  0x4d   : > { %3474 = vmatmul.mubr.msk.f32.gmra.mrb[28].mxu1 %vm308_vm3, %v2623_v62  ;;  %v2829_v62 = vld [vmem:[%s3798_s26 + $0x3c8] sm:$0xff] }
  0x4e   : > { %3526 = vmatmul.mubr.msk.f32.gmra.mrb[28].mxu0 %vm308_vm3, %v2720_v63  ;;  %3476 = vmatprep.mubr.msk.f32.mxu1 %vm308_vm3, %v2624_v0  ;;  %v2830_v63 = vld [vmem:[%s3798_s26 + $0x3d0] sm:$0xff]  ;;  %v2831_v0 = vld [vmem:[%s3798_s26 + $0x3d8] sm:$0xff] }
  0x4f   : > { %3528 = vmatprep.mubr.msk.f32.mxu0 %vm308_vm3, %v2721_v1  ;;  %v2832_v1 = vld [vmem:[%s3798_s26 + $0x3e0] sm:$0xff] }
  0x51   : > { %3477 = vmatmul.mubr.msk.f32.gmra.mrb[30].mxu1 %vm308_vm3, %v2625_v2  ;;  %v2833_v2 = vld [vmem:[%s3798_s26 + $0x3e8] sm:$0xff] }
  0x52   : > { %3529 = vmatmul.mubr.msk.f32.gmra.mrb[30].mxu0 %vm308_vm3, %v2722_v3  ;;  %3479 = vmatprep.mubr.msk.f32.mxu1 %vm308_vm3, %v2626_v4  ;;  %v2834_v3 = vld [vmem:[%s3798_s26 + $0x3f0] sm:$0xff]  ;;  %v3698_v4 = vld [vmem:[%s4399_s3 + $0x8] sm:$0xff]  }
  0x53   : > { %3531 = vmatprep.mubr.msk.f32.mxu0 %vm308_vm3, %v2723_v5  ;;  %v2835_v5 = vld [vmem:[%s3798_s26 + $0x3f8] sm:$0xff]  ;;  %3609 = vmatprep.subr.bf16.mxu0 %v3698_v4 }
  0x54   : > { %3610 = vmatpush3.bf16.msra.mxu0 %v3698_v4 }
  0x55   : > { %3480 = vmatmul.mubr.msk.f32.gmra.mrb[32].mxu1 %vm308_vm3, %v2627_v6  ;;  %v3699_v6 = vld [vmem:[%s4399_s3 + $0x10] ss:$0 sps:$4 sm:$0x33]  }
  0x56   : > { %3532 = vmatmul.mubr.msk.f32.gmra.mrb[32].mxu0 %vm308_vm3, %v2724_v7  ;;  %3482 = vmatprep.mubr.msk.f32.mxu1 %vm308_vm3, %v2628_v8  ;;  %v2266_v7 = vsel %vm2264_vm4, %v3699_v6, 0 }
  0x57   : > { %3534 = vmatprep.mubr.msk.f32.mxu0 %vm308_vm3, %v2725_v9  ;;  %3671 = vmatprep.subr.msk.bf16.mxu0 %vm2264_vm4, %v3699_v6  ;;  %v3214_v6 = vld [vmem:[%s4127_s10 + $0x110] sm:$0xff]  }
  0x58   : > { %3612 = vmatpush3.bf16.msra.mxu0 %v2266_v7 }
  0x59   : > { %3483 = vmatmul.mubr.msk.f32.gmra.mrb[34].mxu1 %vm308_vm3, %v2629_v10 }
  0x5a   : > { %3535 = vmatmul.mubr.msk.f32.gmra.mrb[34].mxu0 %vm308_vm3, %v2726_v11  ;;  %3485 = vmatprep.mubr.msk.f32.mxu1 %vm308_vm3, %v2630_v12 }
  0x5b   : > { %3537 = vmatprep.mubr.msk.f32.mxu0 %vm308_vm3, %v2727_v13 }
  0x5d   : > { %3486 = vmatmul.mubr.msk.f32.gmra.mrb[36].mxu1 %vm308_vm3, %v2631_v14 }
  0x5e   : > { %3538 = vmatmul.mubr.msk.f32.gmra.mrb[36].mxu0 %vm308_vm3, %v2728_v15  ;;  %3488 = vmatprep.mubr.msk.f32.mxu1 %vm308_vm3, %v2632_v16 }
  0x5f   : > { %3540 = vmatprep.mubr.msk.f32.mxu0 %vm308_vm3, %v2729_v17 }
  0x61   : > { %3489 = vmatmul.mubr.msk.f32.gmra.mrb[38].mxu1 %vm308_vm3, %v2633_v18 }
  0x62   : > { %3541 = vmatmul.mubr.msk.f32.gmra.mrb[38].mxu0 %vm308_vm3, %v2730_v19  ;;  %3491 = vmatprep.mubr.msk.f32.mxu1 %vm308_vm3, %v2634_v20 }
  0x63   : > { %3543 = vmatprep.mubr.msk.f32.mxu0 %vm308_vm3, %v2731_v21 }
  0x65   : > { %3492 = vmatmul.mubr.msk.f32.gmra.mrb[40].mxu1 %vm308_vm3, %v2635_v22 }
  0x66   : > { %3544 = vmatmul.mubr.msk.f32.gmra.mrb[40].mxu0 %vm308_vm3, %v2732_v23  ;;  %3494 = vmatprep.mubr.msk.f32.mxu1 %vm308_vm3, %v2636_v24 }
  0x67   : > { %3546 = vmatprep.mubr.msk.f32.mxu0 %vm308_vm3, %v2733_v25 }
  0x69   : > { %3495 = vmatmul.mubr.msk.f32.gmra.mrb[42].mxu1 %vm308_vm3, %v2637_v26 }
  0x6a   : > { %3547 = vmatmul.mubr.msk.f32.gmra.mrb[42].mxu0 %vm308_vm3, %v2734_v27  ;;  %3497 = vmatprep.mubr.msk.f32.mxu1 %vm308_vm3, %v2638_v28 }
  0x6b   : > { %3549 = vmatprep.mubr.msk.f32.mxu0 %vm308_vm3, %v2735_v29 }
  0x6d   : > { %3498 = vmatmul.mubr.msk.f32.gmra.mrb[44].mxu1 %vm308_vm3, %v2639_v30 }
  0x6e   : > { %3550 = vmatmul.mubr.msk.f32.gmra.mrb[44].mxu0 %vm308_vm3, %v2736_v31  ;;  %3500 = vmatprep.mubr.msk.f32.mxu1 %vm308_vm3, %v2640_v32  ;;  %v2926_v32 = vld [vmem:[%s4127_s10] sm:$0xff]  }
  0x6f   : > { %3552 = vmatprep.mubr.msk.f32.mxu0 %vm308_vm3, %v2737_v33 }
  0x71   : > { %3501 = vmatmul.mubr.msk.f32.gmra.mrb[46].mxu1 %vm308_vm3, %v2641_v34 }
  0x72   : > { %3553 = vmatmul.mubr.msk.f32.gmra.mrb[46].mxu0 %vm308_vm3, %v2738_v35  ;;  %3559 = vmatprep.mubr.msk.f32.mxu1 %vm308_vm3, %v2804_v36 }
  0x75   : > { %3560 = vmatmul.mubr.msk.f32.vlgmr.msra.gmra.mrb[48].mxu1 %vm308_vm3, %v2805_v37  ;;  %v3196_v37 = vld [vmem:[%s4127_s10 + $0x80] sm:$0xff]  }
  0x76   : > { %3562 = vmatprep.mubr.msk.f32.mxu1 %vm308_vm3, %v2806_v38  ;;  %v3212_v38 = vld [vmem:[%s4127_s10 + $0x100] sm:$0xff]  }
  0x79   : > { %3563 = vmatmul.mubr.msk.f32.gmra.mrb[50].mxu1 %vm308_vm3, %v2807_v39  ;;  %v2928_v39 = vunpack.c.h.bf16 %v2926_v32 }
  0x7a   : > { %3565 = vmatprep.mubr.msk.f32.mxu1 %vm308_vm3, %v2808_v40  ;;  %v2927_v40 = vunpack.c.l.bf16 %v2926_v32 }
  0x7d   : > { %3566 = vmatmul.mubr.msk.f32.gmra.mrb[52].mxu1 %vm308_vm3, %v2809_v41  ;;  %v3181_v41 = vld [vmem:[%s4127_s10 + $0x8] sm:$0xff]  }
  0x7e   : > { %3568 = vmatprep.mubr.msk.f32.mxu1 %vm308_vm3, %v2810_v42 }
  0x81   : > { %3569 = vmatmul.mubr.msk.f32.gmra.mrb[54].mxu1 %vm308_vm3, %v2811_v43 }
  0x82   : > { %3571 = vmatprep.mubr.msk.f32.mxu1 %vm308_vm3, %v2812_v44 }
  0x85   : > { %3572 = vmatmul.mubr.msk.f32.gmra.mrb[56].mxu1 %vm308_vm3, %v2813_v45  ;;  %v2992_v45 = vunpack.c.h.bf16 %v3196_v37 }
  0x86   : > { %3574 = vmatprep.mubr.msk.f32.mxu1 %vm308_vm3, %v2814_v46 }
  0x89   : > { %3575 = vmatmul.mubr.msk.f32.gmra.mrb[58].mxu1 %vm308_vm3, %v2815_v47  ;;  %v3056_v47 = vunpack.c.h.bf16 %v3212_v38 }
  0x8a   : > { %3577 = vmatprep.mubr.msk.f32.mxu1 %vm308_vm3, %v2816_v48  ;;  %v2991_v48 = vunpack.c.l.bf16 %v3196_v37 }
  0x8d   : > { %3578 = vmatmul.mubr.msk.f32.gmra.mrb[60].mxu1 %vm308_vm3, %v2817_v49  ;;  %v3055_v49 = vunpack.c.l.bf16 %v3212_v38  ;;  %v3183_v38 = vld [vmem:[%s4127_s10 + $0x18] sm:$0xff]  }
  0x8e   : > { %3580 = vmatprep.mubr.msk.f32.mxu1 %vm308_vm3, %v2818_v50  ;;  %v3197_v50 = vld [vmem:[%s4127_s10 + $0x88] sm:$0xff]  }
  0x8f   : > { %v2995_v4 = vunpack.c.l.bf16 %v3197_v50 }
  0x91   : > { %3581 = vmatmul.mubr.msk.f32.gmra.mrb[62].mxu1 %vm308_vm3, %v2819_v51  ;;  %v3213_v51 = vld [vmem:[%s4127_s10 + $0x108] sm:$0xff]  }
  0x92   : > { %3583 = vmatprep.mubr.msk.f32.mxu1 %vm308_vm3, %v2820_v52 }
  0x95   : > { %3584 = vmatmul.mubr.msk.f32.gmra.mrb[64].mxu1 %vm308_vm3, %v2821_v53  ;;  %v2932_v53 = vunpack.c.h.bf16 %v3181_v41 }
  0x96   : > { %3586 = vmatprep.mubr.msk.f32.mxu1 %vm308_vm3, %v2822_v54 }
  0x99   : > { %3587 = vmatmul.mubr.msk.f32.gmra.mrb[66].mxu1 %vm308_vm3, %v2823_v55  ;;  %v2931_v55 = vunpack.c.l.bf16 %v3181_v41 }
  0x9a   : > { %3589 = vmatprep.mubr.msk.f32.mxu1 %vm308_vm3, %v2824_v57 }
  0x9d   : > { %3590 = vmatmul.mubr.msk.f32.gmra.mrb[68].mxu1 %vm308_vm3, %v2825_v58 }
  0x9e   : > { %3592 = vmatprep.mubr.msk.f32.mxu1 %vm308_vm3, %v2826_v59 }
  0xa1   : > { %3593 = vmatmul.mubr.msk.f32.gmra.mrb[70].mxu1 %vm308_vm3, %v2827_v60 }
  0xa2   : > { %3595 = vmatprep.mubr.msk.f32.mxu1 %vm308_vm3, %v2828_v61 }
  0xa5   : > { %3596 = vmatmul.mubr.msk.f32.gmra.mrb[72].mxu1 %vm308_vm3, %v2829_v62 }
  0xa6   : > { %3598 = vmatprep.mubr.msk.f32.mxu1 %vm308_vm3, %v2830_v63  ;;  %v2996_v63 = vunpack.c.h.bf16 %v3197_v50 }
  0xa9   : > { %3599 = vmatmul.mubr.msk.f32.gmra.mrb[74].mxu1 %vm308_vm3, %v2831_v0  ;;  %v3060_v0 = vunpack.c.h.bf16 %v3213_v51 }
  0xaa   : > { %3601 = vmatprep.mubr.msk.f32.mxu1 %vm308_vm3, %v2832_v1  ;;  %v3198_v1 = vld [vmem:[%s4127_s10 + $0x90] sm:$0xff]  }
  0xad   : > { %3602 = vmatmul.mubr.msk.f32.gmra.mrb[76].mxu1 %vm308_vm3, %v2833_v2 }
  0xae   : > { %3604 = vmatprep.mubr.msk.f32.mxu1 %vm308_vm3, %v2834_v3 }
  0xb1   : > { %3605 = vmatmul.mubr.msk.f32.gmra.mrb[78].mxu1 %vm308_vm3, %v2835_v5  ;;  %v3059_v5 = vunpack.c.l.bf16 %v3213_v51 }
  0xe8   : > { %v4083_v8 = vpop.f32.mrb[0].mxu1 }
  0xe9   : > { %v3405_v9 = vpop.f32.mrb[0].mxu0  ;;  %v4085_v10 = vpop.f32.mrb[1].mxu1 }
  0xea   : > { %v475_v11 = vpop.f32.mrb[1].mxu0  ;;  %v699_v52 = vmul.f32 %v3405_v9, %v2928_v39  ;;  %v2936_v9 = vunpack.c.h.bf16 %v3182_v56 }
  0xeb   : > { %v698_v54 = vmul.f32 %v2927_v40, %v475_v11  ;;  %v2935_v11 = vunpack.c.l.bf16 %v3182_v56 }
  0xec   : > { %v4087_v12 = vpop.f32.mrb[2].mxu1 }
  0xed   : > { %v3408_v13 = vpop.f32.mrb[2].mxu0  ;;  %v4089_v14 = vpop.f32.mrb[3].mxu1 }
  0xee   : > { %v485_v15 = vpop.f32.mrb[3].mxu0  ;;  %v701_v7 = vmul.f32 %v3408_v13, %v2932_v53  ;;  %v3064_v13 = vunpack.c.h.bf16 %v3214_v6  ;;  %v3199_v53 = vld [vmem:[%s4127_s10 + $0x98] sm:$0xff]  }
  0xef   : > { %v700_v37 = vmul.f32 %v2931_v55, %v485_v15  ;;  %v3063_v55 = vunpack.c.l.bf16 %v3214_v6 }
  0xf0   : > { %v4091_v16 = vpop.f32.mrb[4].mxu1 }
  0xf1   : > { %v4093_v17 = vpop.f32.mrb[4].mxu0  ;;  %v4095_v18 = vpop.f32.mrb[5].mxu1 }
  0xf2   : > { %v4097_v19 = vpop.f32.mrb[5].mxu0  ;;  %v703_v56 = vmul.f32 %v4093_v17, %v2936_v9 }
  0xf4   : > { %v4099_v20 = vpop.f32.mrb[6].mxu1 }
  0xf5   : > { %v4101_v21 = vpop.f32.mrb[6].mxu0  ;;  %v4103_v22 = vpop.f32.mrb[7].mxu1 }
  0xf6   : > { %v4105_v23 = vpop.f32.mrb[7].mxu0 }
  0xf8   : > { %v4107_v24 = vpop.f32.mrb[8].mxu1 }
  0xf9   : > { %v4109_v25 = vpop.f32.mrb[8].mxu0  ;;  %v4111_v26 = vpop.f32.mrb[9].mxu1 }
  0xfa   : > { %v4113_v27 = vpop.f32.mrb[9].mxu0 }
  0xfc   : > { %v4116_v28 = vpop.f32.mrb[10].mxu1 }
  0xfd   : > { %v4118_v29 = vpop.f32.mrb[10].mxu0  ;;  %v4120_v30 = vpop.f32.mrb[11].mxu1 }
  0xfe   : > { %v4122_v31 = vpop.f32.mrb[11].mxu0 }
 0x100   : > { %v4130_v33 = vpop.f32.mrb[12].mxu1 }
 0x101   : > { %v4132_v34 = vpop.f32.mrb[12].mxu0  ;;  %v4134_v35 = vpop.f32.mrb[13].mxu1 }
 0x102   : > { %v4136_v36 = vpop.f32.mrb[13].mxu0 }
 0x104   : > { %v4141_v42 = vpop.f32.mrb[14].mxu1 }
 0x105   : > { %v4143_v43 = vpop.f32.mrb[14].mxu0  ;;  %v4145_v44 = vpop.f32.mrb[15].mxu1 }
 0x106   : > { %v4147_v46 = vpop.f32.mrb[15].mxu0 }
 0x108   : > { %v3457_v57 = vpop.f32.mrb[16].mxu1 }
 0x109   : > { %v3509_v58 = vpop.f32.mrb[16].mxu0  ;;  %v1150_v59 = vmul.f32 %v3457_v57, %v2992_v45  ;;  %v925_v60 = vpop.f32.mrb[17].mxu1  ;;  %v3000_v45 = vunpack.c.h.bf16 %v3198_v1 }
 0x10a   : > { %v1633_v61 = vmul.f32 %v3509_v58, %v3056_v47  ;;  %v1408_v62 = vpop.f32.mrb[17].mxu0  ;;  %v1149_v2 = vmul.f32 %v2991_v48, %v925_v60  ;;  %v2999_v47 = vunpack.c.l.bf16 %v3198_v1  ;;  %v2939_v60 = vunpack.c.l.bf16 %v3183_v38 }
 0x10b   : > { %v1632_v3 = vmul.f32 %v3055_v49, %v1408_v62  ;;  %v1182_v32 = vadd.f32 %v1150_v59, %v699_v52  ;;  %v2940_v59 = vunpack.c.h.bf16 %v3183_v38  ;;  %v702_v62 = vmul.f32 %v2935_v11, %v4097_v19 }
 0x10c   : > { %v1181_v39 = vadd.f32 %v1149_v2, %v698_v54  ;;  %v3460_v40 = vpop.f32.mrb[18].mxu1  ;;  %v3215_v54 = vld [vmem:[%s4127_s10 + $0x118] sm:$0xff]  }
 0x10d   : > { %v3512_v41 = vpop.f32.mrb[18].mxu0  ;;  %v4155_v57 = vadd.f32 %v1633_v61, %v1182_v32  ;;  %v1152_v48 = vmul.f32 %v3460_v40, %v2996_v63  ;;  %v935_v49 = vpop.f32.mrb[19].mxu1  ;;  %v3184_v63 = vld [vmem:[%s4127_s10 + $0x20] sm:$0xff]   ;;  %v3004_v32 = vunpack.c.h.bf16 %v3199_v53  ;;  %v3068_v9 = vunpack.c.h.bf16 %v3215_v54 }
 0x10e   : > { %v1635_v50 = vmul.f32 %v3512_v41, %v3060_v0  ;;  %v1418_v51 = vpop.f32.mrb[19].mxu0  ;;  %v4158_v58 = vadd.f32 %v1632_v3, %v1181_v39  ;;  %v1151_v52 = vmul.f32 %v2995_v4, %v935_v49  ;;  %v3003_v3 = vunpack.c.l.bf16 %v3199_v53  ;;  %v3200_v40 = vld [vmem:[%s4127_s10 + $0xa0] sm:$0xff]  }
 0x10f   : > { %v1634_v15 = vmul.f32 %v3059_v5, %v1418_v51  ;;  %v1184_v61 = vadd.f32 %v1152_v48, %v701_v7  ;;  %v3067_v11 = vunpack.c.l.bf16 %v3215_v54  ;;  %v705_v41 = vmul.f32 %v4101_v21, %v2940_v59  ;;  %v3185_v51 = vld [vmem:[%s4127_s10 + $0x28] sm:$0xff]  }
 0x110   : > { %v1183_v1 = vadd.f32 %v1151_v52, %v700_v37  ;;  %v3463_v0 = vpop.f32.mrb[20].mxu1  ;;  %v3216_v37 = vld [vmem:[%s4127_s10 + $0x120] sm:$0xff]   ;;  %v2944_v48 = vunpack.c.h.bf16 %v3184_v63  ;;  %v2943_v49 = vunpack.c.l.bf16 %v3184_v63 }
 0x111   : > { %v3515_v2 = vpop.f32.mrb[20].mxu0  ;;  %v4164_v39 = vadd.f32 %v1635_v50, %v1184_v61  ;;  %v1154_v4 = vmul.f32 %v3463_v0, %v3000_v45  ;;  %v945_v5 = vpop.f32.mrb[21].mxu1  ;;  %v704_v45 = vmul.f32 %v2939_v60, %v4105_v23  ;;  %v3008_v61 = vunpack.c.h.bf16 %v3200_v40  ;;  %v3201_v0 = vld [vmem:[%s4127_s10 + $0xa8] sm:$0xff]  }
 0x112   : > { %v1637_v6 = vmul.f32 %v3515_v2, %v3064_v13  ;;  %v1428_v17 = vpop.f32.mrb[21].mxu0  ;;  %v4167_v38 = vadd.f32 %v1634_v15, %v1183_v1  ;;  %v1153_v7 = vmul.f32 %v2999_v47, %v945_v5  ;;  %v3007_v15 = vunpack.c.l.bf16 %v3200_v40 }
 0x113   : > { %v1636_v19 = vmul.f32 %v3063_v55, %v1428_v17  ;;  %v1186_v50 = vadd.f32 %v1154_v4, %v703_v56  ;;  %v3072_v59 = vunpack.c.h.bf16 %v3216_v37  ;;  %v3071_v60 = vunpack.c.l.bf16 %v3216_v37  ;;  %v3186_v17 = vld [vmem:[%s4127_s10 + $0x30] sm:$0xff]  }
 0x114   : > { %v1185_v53 = vadd.f32 %v1153_v7, %v702_v62  ;;  %v3466_v13 = vpop.f32.mrb[22].mxu1  ;;  %v3217_v62 = vld [vmem:[%s4127_s10 + $0x128] sm:$0xff]   ;;  %v707_v2 = vmul.f32 %v4109_v25, %v2944_v48  ;;  %v2948_v4 = vunpack.c.h.bf16 %v3185_v51  ;;  %v2947_v5 = vunpack.c.l.bf16 %v3185_v51 }
 0x115   : > { %v3518_v52 = vpop.f32.mrb[22].mxu0  ;;  %v4173_v1 = vadd.f32 %v1637_v6, %v1186_v50  ;;  %v1156_v47 = vmul.f32 %v3466_v13, %v3004_v32  ;;  %v955_v55 = vpop.f32.mrb[23].mxu1  ;;  %v706_v32 = vmul.f32 %v2943_v49, %v4113_v27  ;;  %v3012_v50 = vunpack.c.h.bf16 %v3201_v0  ;;  %v3202_v13 = vld [vmem:[%s4127_s10 + $0xb0] sm:$0xff]  }
 0x116   : > { %v1639_v54 = vmul.f32 %v3518_v52, %v3068_v9  ;;  %v1438_v21 = vpop.f32.mrb[23].mxu0  ;;  %v4176_v63 = vadd.f32 %v1636_v19, %v1185_v53  ;;  %v1155_v56 = vmul.f32 %v3003_v3, %v955_v55  ;;  %v3011_v19 = vunpack.c.l.bf16 %v3201_v0 }
 0x117   : > { %v1638_v23 = vmul.f32 %v3067_v11, %v1438_v21  ;;  %v1188_v6 = vadd.f32 %v1156_v47, %v705_v41  ;;  %v3076_v48 = vunpack.c.h.bf16 %v3217_v62  ;;  %v3075_v49 = vunpack.c.l.bf16 %v3217_v62  ;;  %v3187_v21 = vld [vmem:[%s4127_s10 + $0x38] sm:$0xff]  }
 0x118   : > { %v1187_v40 = vadd.f32 %v1155_v56, %v704_v45  ;;  %v3469_v9 = vpop.f32.mrb[24].mxu1  ;;  %v3218_v45 = vld [vmem:[%s4127_s10 + $0x130] sm:$0xff]   ;;  %v709_v52 = vmul.f32 %v4118_v29, %v2948_v4  ;;  %v2952_v47 = vunpack.c.h.bf16 %v3186_v17  ;;  %v2951_v55 = vunpack.c.l.bf16 %v3186_v17 }
 0x119   : > { %v3521_v7 = vpop.f32.mrb[24].mxu0  ;;  %v4182_v53 = vadd.f32 %v1639_v54, %v1188_v6  ;;  %v1158_v3 = vmul.f32 %v3469_v9, %v3008_v61  ;;  %v965_v11 = vpop.f32.mrb[25].mxu1  ;;  %v708_v61 = vmul.f32 %v2947_v5, %v4122_v31  ;;  %v3016_v6 = vunpack.c.h.bf16 %v3202_v13  ;;  %v3203_v9 = vld [vmem:[%s4127_s10 + $0xb8] sm:$0xff]  }
 0x11a   : > { %v1641_v37 = vmul.f32 %v3521_v7, %v3072_v59  ;;  %v1448_v25 = vpop.f32.mrb[25].mxu0  ;;  %v4185_v51 = vadd.f32 %v1638_v23, %v1187_v40  ;;  %v1157_v41 = vmul.f32 %v3007_v15, %v965_v11  ;;  %v3015_v23 = vunpack.c.l.bf16 %v3202_v13 }
 0x11b   : > { %v1640_v27 = vmul.f32 %v3071_v60, %v1448_v25  ;;  %v1190_v54 = vadd.f32 %v1158_v3, %v707_v2  ;;  %v3080_v4 = vunpack.c.h.bf16 %v3218_v45  ;;  %v3079_v5 = vunpack.c.l.bf16 %v3218_v45  ;;  %v3188_v25 = vld [vmem:[%s4127_s10 + $0x40] sm:$0xff]  }
 0x11c   : > { %v1189_v0 = vadd.f32 %v1157_v41, %v706_v32  ;;  %v3472_v59 = vpop.f32.mrb[26].mxu1  ;;  %v3219_v32 = vld [vmem:[%s4127_s10 + $0x138] sm:$0xff]   ;;  %v711_v7 = vmul.f32 %v4132_v34, %v2952_v47  ;;  %v2956_v3 = vunpack.c.h.bf16 %v3187_v21  ;;  %v2955_v11 = vunpack.c.l.bf16 %v3187_v21 }
 0x11d   : > { %v3524_v56 = vpop.f32.mrb[26].mxu0  ;;  %v4191_v40 = vadd.f32 %v1641_v37, %v1190_v54  ;;  %v1160_v15 = vmul.f32 %v3472_v59, %v3012_v50  ;;  %v975_v60 = vpop.f32.mrb[27].mxu1  ;;  %v710_v50 = vmul.f32 %v2951_v55, %v4136_v36  ;;  %v3020_v54 = vunpack.c.h.bf16 %v3203_v9  ;;  %v3204_v59 = vld [vmem:[%s4127_s10 + $0xc0] sm:$0xff]  }
 0x11e   : > { %v1643_v62 = vmul.f32 %v3524_v56, %v3076_v48  ;;  %v1458_v29 = vpop.f32.mrb[27].mxu0  ;;  %v4194_v17 = vadd.f32 %v1640_v27, %v1189_v0  ;;  %v1159_v2 = vmul.f32 %v3011_v19, %v975_v60  ;;  %v3019_v27 = vunpack.c.l.bf16 %v3203_v9 }
 0x11f   : > { %v1642_v31 = vmul.f32 %v3075_v49, %v1458_v29  ;;  %v1192_v37 = vadd.f32 %v1160_v15, %v709_v52  ;;  %v3084_v47 = vunpack.c.h.bf16 %v3219_v32  ;;  %v3083_v55 = vunpack.c.l.bf16 %v3219_v32  ;;  %v3189_v29 = vld [vmem:[%s4127_s10 + $0x48] sm:$0xff]  }
 0x120   : > { %v1191_v13 = vadd.f32 %v1159_v2, %v708_v61  ;;  %v3475_v48 = vpop.f32.mrb[28].mxu1  ;;  %v3220_v61 = vld [vmem:[%s4127_s10 + $0x140] sm:$0xff]   ;;  %v2960_v56 = vunpack.c.h.bf16 %v3188_v25  ;;  %v2959_v15 = vunpack.c.l.bf16 %v3188_v25  ;;  %v713_v60 = vmul.f32 %v4143_v43, %v2956_v3  ;;  %v3221_v43 = vld [vmem:[%s4127_s10 + $0x148] sm:$0xff]  }
 0x121   : > { %v3527_v41 = vpop.f32.mrb[28].mxu0  ;;  %v4200_v0 = vadd.f32 %v1643_v62, %v1192_v37  ;;  %v1162_v19 = vmul.f32 %v3475_v48, %v3016_v6  ;;  %v985_v49 = vpop.f32.mrb[29].mxu1  ;;  %v712_v6 = vmul.f32 %v2955_v11, %v4147_v46  ;;  %v3024_v37 = vunpack.c.h.bf16 %v3204_v59 }
 0x122   : > { %v1645_v45 = vmul.f32 %v3527_v41, %v3080_v4  ;;  %v1468_v34 = vpop.f32.mrb[29].mxu0  ;;  %v4203_v21 = vadd.f32 %v1642_v31, %v1191_v13  ;;  %v1161_v52 = vmul.f32 %v3015_v23, %v985_v49  ;;  %v3023_v31 = vunpack.c.l.bf16 %v3204_v59  ;;  %v3205_v13 = vld [vmem:[%s4127_s10 + $0xc8] sm:$0xff]   ;;  %v3190_v59 = vld [vmem:[%s4127_s10 + $0x50] sm:$0xff]  }
 0x123   : > { %v1644_v36 = vmul.f32 %v3079_v5, %v1468_v34  ;;  %v1194_v62 = vadd.f32 %v1162_v19, %v711_v7  ;;  %v3088_v41 = vunpack.c.h.bf16 %v3220_v61  ;;  %v3087_v11 = vunpack.c.l.bf16 %v3220_v61 }
 0x124   : > { %v1193_v4 = vadd.f32 %v1161_v52, %v710_v50  ;;  %v3478_v9 = vpop.f32.mrb[30].mxu1  ;;  %v2964_v50 = vunpack.c.h.bf16 %v3189_v29  ;;  %v2963_v19 = vunpack.c.l.bf16 %v3189_v29  ;;  %v3028_v34 = vunpack.c.h.bf16 %v3205_v13 }
 0x125   : > { %v3530_v2 = vpop.f32.mrb[30].mxu0  ;;  %v4210_v23 = vadd.f32 %v1645_v45, %v1194_v62  ;;  %v1164_v5 = vmul.f32 %v3478_v9, %v3020_v54  ;;  %v995_v32 = vpop.f32.mrb[31].mxu1  ;;  %v3027_v62 = vunpack.c.l.bf16 %v3205_v13  ;;  %v3091_v9 = vunpack.c.l.bf16 %v3221_v43 }
 0x126   : > { %v1647_v48 = vmul.f32 %v3530_v2, %v3084_v47  ;;  %v1478_v25 = vpop.f32.mrb[31].mxu0  ;;  %v4213_v7 = vadd.f32 %v1644_v36, %v1193_v4  ;;  %v1163_v3 = vmul.f32 %v3019_v27, %v995_v32  ;;  %v3092_v47 = vunpack.c.h.bf16 %v3221_v43  ;;  %v3206_v2 = vld [vmem:[%s4127_s10 + $0xd0] sm:$0xff]  }
 0x127   : > { %v1646_v46 = vmul.f32 %v3083_v55, %v1478_v25  ;;  %v1196_v49 = vadd.f32 %v1164_v5, %v713_v60  ;;  %v715_v36 = vmul.f32 %v4083_v8, %v2960_v56  ;;  %v3222_v60 = vld [vmem:[%s4127_s10 + $0x150] sm:$0xff]   ;;  %v714_v5 = vmul.f32 %v2959_v15, %v4085_v10  ;;  %v3191_v8 = vld [vmem:[%s4127_s10 + $0x58] sm:$0xff]  }
 0x128   : > { %4403 = vst [vmem:[#allocation2_spill] sm:$0xff] %v4213_v7  ;;  %v1195_v45 = vadd.f32 %v1163_v3, %v712_v6  ;;  %v3481_v52 = vpop.f32.mrb[32].mxu1  ;;  %v2968_v25 = vunpack.c.h.bf16 %v3190_v59  ;;  %v2967_v43 = vunpack.c.l.bf16 %v3190_v59  ;;  %v3032_v7 = vunpack.c.h.bf16 %v3206_v2 }
 0x129   : > { %v3533_v54 = vpop.f32.mrb[32].mxu0  ;;  %v4218_v4 = vadd.f32 %v1647_v48, %v1196_v49  ;;  %v1166_v27 = vmul.f32 %v3481_v52, %v3024_v37  ;;  %v1005_v55 = vpop.f32.mrb[33].mxu1  ;;  %v3031_v49 = vunpack.c.l.bf16 %v3206_v2  ;;  %v3095_v52 = vunpack.c.l.bf16 %v3222_v60 }
 0x12a   : > { %v1649_v61 = vmul.f32 %v3533_v54, %v3088_v41  ;;  %v1488_v29 = vpop.f32.mrb[33].mxu0  ;;  %v4222_v6 = vadd.f32 %v1646_v46, %v1195_v45  ;;  %v1165_v32 = vmul.f32 %v3023_v31, %v1005_v55  ;;  %v3096_v41 = vunpack.c.h.bf16 %v3222_v60  ;;  %v3207_v54 = vld [vmem:[%s4127_s10 + $0xd8] sm:$0xff]  }
 0x12b   : > { %v1648_v13 = vmul.f32 %v3087_v11, %v1488_v29  ;;  %v1198_v3 = vadd.f32 %v1166_v27, %v715_v36  ;;  %v717_v10 = vmul.f32 %v4087_v12, %v2964_v50  ;;  %v3223_v45 = vld [vmem:[%s4127_s10 + $0x158] sm:$0xff]   ;;  %v716_v36 = vmul.f32 %v2963_v19, %v4089_v14  ;;  %v3192_v12 = vld [vmem:[%s4127_s10 + $0x60] sm:$0xff]  }
 0x12c   : > { %v1197_v56 = vadd.f32 %v1165_v32, %v714_v5  ;;  %v3484_v48 = vpop.f32.mrb[34].mxu1  ;;  %v2972_v29 = vunpack.c.h.bf16 %v3191_v8  ;;  %v2971_v60 = vunpack.c.l.bf16 %v3191_v8  ;;  %v3036_v32 = vunpack.c.h.bf16 %v3207_v54 }
 0x12d   : > { %v3536_v37 = vpop.f32.mrb[34].mxu0  ;;  %v4227_v15 = vadd.f32 %v1649_v61, %v1198_v3  ;;  %v1168_v31 = vmul.f32 %v3484_v48, %v3028_v34  ;;  %v1015_v46 = vpop.f32.mrb[35].mxu1  ;;  %v3035_v3 = vunpack.c.l.bf16 %v3207_v54  ;;  %v3099_v48 = vunpack.c.l.bf16 %v3223_v45 }
 0x12e   : > { %v1651_v11 = vmul.f32 %v3536_v37, %v3092_v47  ;;  %v1498_v59 = vpop.f32.mrb[35].mxu0  ;;  %v4231_v27 = vadd.f32 %v1648_v13, %v1197_v56  ;;  %v1167_v55 = vmul.f32 %v3027_v62, %v1015_v46  ;;  %v3100_v47 = vunpack.c.h.bf16 %v3223_v45  ;;  %v3208_v37 = vld [vmem:[%s4127_s10 + $0xe0] sm:$0xff]  }
 0x12f   : > { %v1650_v2 = vmul.f32 %v3091_v9, %v1498_v59  ;;  %v1200_v5 = vadd.f32 %v1168_v31, %v717_v10  ;;  %v719_v14 = vmul.f32 %v4091_v16, %v2968_v25  ;;  %v3224_v56 = vld [vmem:[%s4127_s10 + $0x160] sm:$0xff]   ;;  %v718_v10 = vmul.f32 %v2967_v43, %v4095_v18  ;;  %v3193_v16 = vld [vmem:[%s4127_s10 + $0x68] sm:$0xff]  }
 0x130   : > { %v1199_v50 = vadd.f32 %v1167_v55, %v716_v36  ;;  %v3487_v61 = vpop.f32.mrb[36].mxu1  ;;  %v2976_v59 = vunpack.c.h.bf16 %v3192_v12  ;;  %v2975_v45 = vunpack.c.l.bf16 %v3192_v12  ;;  %v3040_v55 = vunpack.c.h.bf16 %v3208_v37 }
 0x131   : > { %v3539_v34 = vpop.f32.mrb[36].mxu0  ;;  %v4236_v19 = vadd.f32 %v1651_v11, %v1200_v5  ;;  %v1170_v62 = vmul.f32 %v3487_v61, %v3032_v7  ;;  %v1025_v9 = vpop.f32.mrb[37].mxu1  ;;  %v3039_v5 = vunpack.c.l.bf16 %v3208_v37  ;;  %v3103_v61 = vunpack.c.l.bf16 %v3224_v56 }
 0x132   : > { %v1653_v13 = vmul.f32 %v3539_v34, %v3096_v41  ;;  %v1508_v8 = vpop.f32.mrb[37].mxu0  ;;  %v4240_v31 = vadd.f32 %v1650_v2, %v1199_v50  ;;  %v1169_v46 = vmul.f32 %v3031_v49, %v1025_v9  ;;  %v3104_v41 = vunpack.c.h.bf16 %v3224_v56  ;;  %v3209_v34 = vld [vmem:[%s4127_s10 + $0xe8] sm:$0xff]  }
 0x133   : > { %v1652_v54 = vmul.f32 %v3095_v52, %v1508_v8  ;;  %v1202_v36 = vadd.f32 %v1170_v62, %v719_v14  ;;  %v721_v18 = vmul.f32 %v4099_v20, %v2972_v29  ;;  %v3225_v50 = vld [vmem:[%s4127_s10 + $0x168] sm:$0xff]   ;;  %v720_v14 = vmul.f32 %v2971_v60, %v4103_v22  ;;  %v3194_v20 = vld [vmem:[%s4127_s10 + $0x70] sm:$0xff]  }
 0x134   : > { %v1201_v25 = vadd.f32 %v1169_v46, %v718_v10  ;;  %v3490_v11 = vpop.f32.mrb[38].mxu1  ;;  %v2980_v8 = vunpack.c.h.bf16 %v3193_v16  ;;  %v2979_v56 = vunpack.c.l.bf16 %v3193_v16  ;;  %v3044_v46 = vunpack.c.h.bf16 %v3209_v34 }
 0x135   : > { %v3542_v7 = vpop.f32.mrb[38].mxu0  ;;  %v4245_v43 = vadd.f32 %v1653_v13, %v1202_v36  ;;  %v1172_v49 = vmul.f32 %v3490_v11, %v3036_v32  ;;  %v1035_v52 = vpop.f32.mrb[39].mxu1  ;;  %v3043_v36 = vunpack.c.l.bf16 %v3209_v34  ;;  %v3107_v11 = vunpack.c.l.bf16 %v3225_v50 }
 0x136   : > { %v1655_v2 = vmul.f32 %v3542_v7, %v3100_v47  ;;  %v1518_v12 = vpop.f32.mrb[39].mxu0  ;;  %v4249_v62 = vadd.f32 %v1652_v54, %v1201_v25  ;;  %v1171_v9 = vmul.f32 %v3035_v3, %v1035_v52  ;;  %v3108_v47 = vunpack.c.h.bf16 %v3225_v50  ;;  %v3210_v7 = vld [vmem:[%s4127_s10 + $0xf0] sm:$0xff]  }
 0x137   : > { %v1654_v37 = vmul.f32 %v3099_v48, %v1518_v12  ;;  %v1204_v10 = vadd.f32 %v1172_v49, %v721_v18  ;;  %v723_v22 = vmul.f32 %v4107_v24, %v2976_v59  ;;  %v3226_v25 = vld [vmem:[%s4127_s10 + $0x170] sm:$0xff]   ;;  %v722_v18 = vmul.f32 %v2975_v45, %v4111_v26  ;;  %v3195_v24 = vld [vmem:[%s4127_s10 + $0x78] sm:$0xff]  }
 0x138   : > { %v1203_v29 = vadd.f32 %v1171_v9, %v720_v14  ;;  %v3493_v13 = vpop.f32.mrb[40].mxu1  ;;  %v2984_v12 = vunpack.c.h.bf16 %v3194_v20  ;;  %v2983_v50 = vunpack.c.l.bf16 %v3194_v20  ;;  %v3048_v9 = vunpack.c.h.bf16 %v3210_v7  ;;  %v3227_v20 = vld [vmem:[%s4127_s10 + $0x178] sm:$0xff]  }
 0x139   : > { %v3545_v32 = vpop.f32.mrb[40].mxu0  ;;  %v4254_v60 = vadd.f32 %v1655_v2, %v1204_v10  ;;  %v1174_v3 = vmul.f32 %v3493_v13, %v3040_v55  ;;  %v1045_v48 = vpop.f32.mrb[41].mxu1  ;;  %v3047_v10 = vunpack.c.l.bf16 %v3210_v7  ;;  %v3111_v13 = vunpack.c.l.bf16 %v3226_v25 }
 0x13a   : > { %v1657_v54 = vmul.f32 %v3545_v32, %v3104_v41  ;;  %v1528_v16 = vpop.f32.mrb[41].mxu0  ;;  %v4258_v49 = vadd.f32 %v1654_v37, %v1203_v29  ;;  %v1173_v52 = vmul.f32 %v3039_v5, %v1045_v48  ;;  %v3112_v41 = vunpack.c.h.bf16 %v3226_v25  ;;  %v3211_v32 = vld [vmem:[%s4127_s10 + $0xf8] sm:$0xff]  }
 0x13b   : > { %4404 = vst [vmem:[#allocation3_spill] sm:$0xff] %v4254_v60  ;;  %v1656_v34 = vmul.f32 %v3103_v61, %v1528_v16  ;;  %v1206_v14 = vadd.f32 %v1174_v3, %v723_v22  ;;  %v725_v60 = vmul.f32 %v4116_v28, %v2980_v8  ;;  %v724_v29 = vmul.f32 %v2979_v56, %v4120_v30 }
 0x13c   : > { %v1205_v59 = vadd.f32 %v1173_v52, %v722_v18  ;;  %v3496_v2 = vpop.f32.mrb[42].mxu1  ;;  %v2988_v16 = vunpack.c.h.bf16 %v3195_v24  ;;  %v2987_v7 = vunpack.c.l.bf16 %v3195_v24  ;;  %v3052_v18 = vunpack.c.h.bf16 %v3211_v32 }
 0x13d   : > { %v3548_v55 = vpop.f32.mrb[42].mxu0  ;;  %v4263_v26 = vadd.f32 %v1657_v54, %v1206_v14  ;;  %v1176_v45 = vmul.f32 %v3496_v2, %v3044_v46  ;;  %v1055_v5 = vpop.f32.mrb[43].mxu1  ;;  %v3051_v54 = vunpack.c.l.bf16 %v3211_v32  ;;  %v3116_v46 = vunpack.c.h.bf16 %v3227_v20 }
 0x13e   : > { %v1659_v61 = vmul.f32 %v3548_v55, %v3108_v47  ;;  %v1538_v37 = vpop.f32.mrb[43].mxu0  ;;  %v4267_v22 = vadd.f32 %v1656_v34, %v1205_v59  ;;  %v1175_v3 = vmul.f32 %v3043_v36, %v1055_v5  ;;  %v3115_v14 = vunpack.c.l.bf16 %v3227_v20 }
 0x13f   : > { %v1658_v48 = vmul.f32 %v3107_v11, %v1538_v37  ;;  %v1208_v25 = vadd.f32 %v1176_v45, %v725_v60  ;;  %v727_v47 = vmul.f32 %v4130_v33, %v2984_v12  ;;  %v3228_v11 = vld [vmem:[%s4127_s10 + $0x180] sm:$0xff]   ;;  %v726_v59 = vmul.f32 %v2983_v50, %v4134_v35 }
 0x140   : > { %v1207_v52 = vadd.f32 %v1175_v3, %v724_v29  ;;  %v3499_v28 = vpop.f32.mrb[44].mxu1  ;;  %v3120_v20 = vunpack.c.h.bf16 %v3228_v11  ;;  %v3119_v33 = vunpack.c.l.bf16 %v3228_v11  ;;  %v729_v12 = vmul.f32 %v4141_v42, %v2988_v16 }
 0x141   : > { %v3551_v8 = vpop.f32.mrb[44].mxu0  ;;  %v4270_v2 = vadd.f32 %v1659_v61, %v1208_v25  ;;  %v1178_v30 = vmul.f32 %v3499_v28, %v3048_v9  ;;  %v1065_v56 = vpop.f32.mrb[45].mxu1  ;;  %v728_v35 = vmul.f32 %v2987_v7, %v4145_v44 }
 0x142   : > { %v1661_v34 = vmul.f32 %v3551_v8, %v3112_v41  ;;  %v1548_v36 = vpop.f32.mrb[45].mxu0  ;;  %v4274_v24 = vadd.f32 %v1658_v48, %v1207_v52  ;;  %v1177_v60 = vmul.f32 %v3047_v10, %v1065_v56  ;;  %v3229_v48 = vld [vmem:[%s4127_s10 + $0x188] sm:$0xff]   ;;  %v3230_v56 = vld [vmem:[%s4127_s10 + $0x190] sm:$0xff]  }
 0x143   : > { %v1660_v55 = vmul.f32 %v3111_v13, %v1548_v36  ;;  %v1210_v45 = vadd.f32 %v1178_v30, %v727_v47  ;;  %v3123_v30 = vunpack.c.l.bf16 %v3229_v48  ;;  %v3128_v36 = vunpack.c.h.bf16 %v3230_v56 }
 0x144   : > { %v1209_v32 = vadd.f32 %v1177_v60, %v726_v59  ;;  %v3502_v5 = vpop.f32.mrb[46].mxu1  ;;  %v3127_v60 = vunpack.c.l.bf16 %v3230_v56  ;;  %v3234_v56 = vld [vmem:[%s4127_s10 + $0x1b0] sm:$0xff]  }
 0x145   : > { %v3554_v37 = vpop.f32.mrb[46].mxu0  ;;  %v4277_v9 = vadd.f32 %v1661_v34, %v1210_v45  ;;  %v1180_v41 = vmul.f32 %v3502_v5, %v3052_v18  ;;  %v1075_v61 = vpop.f32.mrb[47].mxu1  ;;  %v3124_v18 = vunpack.c.h.bf16 %v3229_v48 }
 0x146   : > { %v1663_v29 = vmul.f32 %v3554_v37, %v3116_v46  ;;  %v1558_v3 = vpop.f32.mrb[47].mxu0  ;;  %v4280_v50 = vadd.f32 %v1660_v55, %v1209_v32  ;;  %v1179_v10 = vmul.f32 %v3051_v54, %v1075_v61  ;;  %v3231_v55 = vld [vmem:[%s4127_s10 + $0x198] sm:$0xff]  }
 0x147   : > { %v1662_v13 = vmul.f32 %v3115_v14, %v1558_v3  ;;  %v1212_v25 = vadd.f32 %v1180_v41, %v729_v12  ;;  %v3131_v12 = vunpack.c.l.bf16 %v3231_v55  ;;  %v3232_v41 = vld [vmem:[%s4127_s10 + $0x1a0] sm:$0xff]  }
 0x148   : > { %v1211_v52 = vadd.f32 %v1179_v10, %v728_v35  ;;  %v3561_v28 = vpop.f32.mrb[48].mxu1  ;;  %v3136_v35 = vunpack.c.h.bf16 %v3232_v41  ;;  %v3135_v48 = vunpack.c.l.bf16 %v3232_v41 }
 0x149   : > { %v4283_v8 = vadd.f32 %v1663_v29, %v1212_v25  ;;  %v2116_v42 = vmul.f32 %v3561_v28, %v3120_v20  ;;  %v1891_v16 = vpop.f32.mrb[49].mxu1  ;;  %v3233_v25 = vld [vmem:[%s4127_s10 + $0x1a8] sm:$0xff]  }
 0x14a   : > { %v4285_v47 = vadd.f32 %v1662_v13, %v1211_v52  ;;  %v2115_v46 = vmul.f32 %v3119_v33, %v1891_v16  ;;  %v3140_v16 = vunpack.c.h.bf16 %v3233_v25 }
 0x14b   : > { %v2148_v44 = vadd.f32 %v2116_v42, %v4155_v57 }
 0x14c   : > { %v2147_v7 = vadd.f32 %v2115_v46, %v4158_v58  ;;  %v3564_v54 = vpop.f32.mrb[50].mxu1  ;;  %v3132_v58 = vunpack.c.h.bf16 %v3231_v55 }
 0x14d   : > { %v2118_v14 = vmul.f32 %v3564_v54, %v3124_v18  ;;  %v1901_v34 = vpop.f32.mrb[51].mxu1 }
 0x14e   : > { %v2179_v11 = vpack.c.bf16 %v2148_v44, %v2147_v7  ;;  %v2117_v59 = vmul.f32 %v3123_v30, %v1901_v34  ;;  %v3139_v30 = vunpack.c.l.bf16 %v3233_v25 }
 0x14f   : > { %v2150_v45 = vadd.f32 %v2118_v14, %v4164_v39  ;;  %v3144_v14 = vunpack.c.h.bf16 %v3234_v56 }
 0x150   : > { %v2149_v32 = vadd.f32 %v2117_v59, %v4167_v38  ;;  %v3567_v5 = vpop.f32.mrb[52].mxu1  ;;  %3613 = vmatprep.mubr.msk.bf16.mxu0 %vm2215_vm5, %v2179_v11  ;;  %v3143_v11 = vunpack.c.l.bf16 %v3234_v56  ;;  %v3235_v59 = vld [vmem:[%s4127_s10 + $0x1b8] sm:$0xff]  }
 0x151   : > { %v2120_v57 = vmul.f32 %v3567_v5, %v3128_v36  ;;  %v1911_v37 = vpop.f32.mrb[53].mxu1 }
 0x152   : > { %v2180_v20 = vpack.c.bf16 %v2150_v45, %v2149_v32  ;;  %v2119_v33 = vmul.f32 %v3127_v60, %v1911_v37  ;;  %v3148_v32 = vunpack.c.h.bf16 %v3235_v59  ;;  %v3147_v37 = vunpack.c.l.bf16 %v3235_v59  ;;  %v3240_v59 = vld [vmem:[%s4127_s10 + $0x1e0] sm:$0xff]  }
 0x153   : > { %v2152_v61 = vadd.f32 %v2120_v57, %v4173_v1 }
 0x154   : > { %v2151_v29 = vadd.f32 %v2119_v33, %v4176_v63  ;;  %v3570_v3 = vpop.f32.mrb[54].mxu1  ;;  %3614 = vmatmul.mubr.msk.bf16.vlgmr.msra.gmra.mrb[48].mxu0 %vm2215_vm5, %v2180_v20  ;;  %v4405_v33 = vld [vmem:[#allocation2_spill] sm:$0xff] }
 0x155   : > { %v2122_v39 = vmul.f32 %v3570_v3, %v3132_v58  ;;  %v1921_v38 = vpop.f32.mrb[55].mxu1  ;;  %v3236_v58 = vld [vmem:[%s4127_s10 + $0x1c0] sm:$0xff]  }
 0x156   : > { %v2181_v10 = vpack.c.bf16 %v2152_v61, %v2151_v29  ;;  %v2121_v13 = vmul.f32 %v3131_v12, %v1921_v38  ;;  %v3152_v61 = vunpack.c.h.bf16 %v3236_v58  ;;  %v3237_v38 = vld [vmem:[%s4127_s10 + $0x1c8] sm:$0xff]  }
 0x157   : > { %v2154_v52 = vadd.f32 %v2122_v39, %v4182_v53  ;;  %v3151_v39 = vunpack.c.l.bf16 %v3236_v58  ;;  %v3156_v25 = vunpack.c.h.bf16 %v3237_v38 }
 0x158   : > { %v2153_v28 = vadd.f32 %v2121_v13, %v4185_v51  ;;  %v3573_v42 = vpop.f32.mrb[56].mxu1  ;;  %3617 = vmatprep.mubr.msk.bf16.mxu0 %vm2215_vm5, %v2181_v10 }
 0x159   : > { %v2124_v1 = vmul.f32 %v3573_v42, %v3136_v35  ;;  %v1931_v63 = vpop.f32.mrb[57].mxu1  ;;  %v3155_v42 = vunpack.c.l.bf16 %v3237_v38 }
 0x15a   : > { %v2182_v18 = vpack.c.bf16 %v2154_v52, %v2153_v28  ;;  %v2123_v46 = vmul.f32 %v3135_v48, %v1931_v63 }
 0x15b   : > { %v2156_v44 = vadd.f32 %v2124_v1, %v4191_v40  ;;  %v3238_v1 = vld [vmem:[%s4127_s10 + $0x1d0] sm:$0xff]  }
 0x15c   : > { %v2155_v7 = vadd.f32 %v2123_v46, %v4194_v17  ;;  %v3576_v54 = vpop.f32.mrb[58].mxu1  ;;  %3618 = vmatmul.mubr.msk.bf16.gmra.mrb[52].mxu0 %vm2215_vm5, %v2182_v18  ;;  %v3160_v46 = vunpack.c.h.bf16 %v3238_v1 }
 0x15d   : > { %v2126_v53 = vmul.f32 %v3576_v54, %v3140_v16  ;;  %v1941_v51 = vpop.f32.mrb[59].mxu1 }
 0x15e   : > { %v2183_v34 = vpack.c.bf16 %v2156_v44, %v2155_v7  ;;  %v2125_v36 = vmul.f32 %v3139_v30, %v1941_v51  ;;  %v3159_v44 = vunpack.c.l.bf16 %v3238_v1  ;;  %v3239_v7 = vld [vmem:[%s4127_s10 + $0x1d8] sm:$0xff]  }
 0x15f   : > { %v2158_v60 = vadd.f32 %v2126_v53, %v4200_v0 }
 0x160   : > { %v2157_v55 = vadd.f32 %v2125_v36, %v4203_v21  ;;  %v3579_v45 = vpop.f32.mrb[60].mxu1  ;;  %3621 = vmatprep.mubr.msk.bf16.mxu0 %vm2215_vm5, %v2183_v34 }
 0x161   : > { %v2128_v40 = vmul.f32 %v3579_v45, %v3144_v14  ;;  %v1951_v17 = vpop.f32.mrb[61].mxu1  ;;  %v3164_v14 = vunpack.c.h.bf16 %v3239_v7 }
 0x162   : > { %v2184_v5 = vpack.c.bf16 %v2158_v60, %v2157_v55  ;;  %v2127_v57 = vmul.f32 %v3143_v11, %v1951_v17  ;;  %v3163_v11 = vunpack.c.l.bf16 %v3239_v7 }
 0x163   : > { %v2160_v20 = vadd.f32 %v2128_v40, %v4210_v23  ;;  %v3168_v40 = vunpack.c.h.bf16 %v3240_v59 }
 0x164   : > { %v2159_v12 = vadd.f32 %v2127_v57, %v4405_v33  ;;  %v3582_v41 = vpop.f32.mrb[62].mxu1  ;;  %3622 = vmatmul.mubr.msk.bf16.gmra.mrb[56].mxu0 %vm2215_vm5, %v2184_v5  ;;  %v3167_v5 = vunpack.c.l.bf16 %v3240_v59  ;;  %v3241_v57 = vld [vmem:[%s4127_s10 + $0x1e8] sm:$0xff]  }
 0x165   : > { %v2130_v0 = vmul.f32 %v3582_v41, %v3148_v32  ;;  %v1961_v21 = vpop.f32.mrb[63].mxu1 }
 0x166   : > { %v2185_v29 = vpack.c.bf16 %v2160_v20, %v2159_v12  ;;  %v2129_v3 = vmul.f32 %v3147_v37, %v1961_v21  ;;  %v4406_v37 = vld [vmem:[#allocation3_spill] sm:$0xff]  ;;  %v3172_v12 = vunpack.c.h.bf16 %v3241_v57  ;;  %v3171_v21 = vunpack.c.l.bf16 %v3241_v57 }
 0x167   : > { %v2162_v35 = vadd.f32 %v2130_v0, %v4218_v4 }
 0x168   : > { %v2161_v10 = vadd.f32 %v2129_v3, %v4222_v6  ;;  %v3585_v13 = vpop.f32.mrb[64].mxu1  ;;  %3625 = vmatprep.mubr.msk.bf16.mxu0 %vm2215_vm5, %v2185_v29 }
 0x169   : > { %v2132_v23 = vmul.f32 %v3585_v13, %v3152_v61  ;;  %v1971_v48 = vpop.f32.mrb[65].mxu1  ;;  %v3242_v61 = vld [vmem:[%s4127_s10 + $0x1f0] sm:$0xff]  }
 0x16a   : > { %v2186_v52 = vpack.c.bf16 %v2162_v35, %v2161_v10  ;;  %v2131_v28 = vmul.f32 %v3151_v39, %v1971_v48  ;;  %v3176_v35 = vunpack.c.h.bf16 %v3242_v61  ;;  %v3243_v48 = vld [vmem:[%s4127_s10 + $0x1f8] sm:$0xff]  }
 0x16b   : > { %v2164_v63 = vadd.f32 %v2132_v23, %v4227_v15  ;;  %v3175_v23 = vunpack.c.l.bf16 %v3242_v61 }
 0x16c   : > { %v2163_v16 = vadd.f32 %v2131_v28, %v4231_v27  ;;  %v3588_v18 = vpop.f32.mrb[66].mxu1  ;;  %3626 = vmatmul.mubr.msk.bf16.gmra.mrb[60].mxu0 %vm2215_vm5, %v2186_v52 }
 0x16d   : > { %v2134_v4 = vmul.f32 %v3588_v18, %v3156_v25  ;;  %v1981_v6 = vpop.f32.mrb[67].mxu1 }
 0x16e   : > { %v2187_v30 = vpack.c.bf16 %v2164_v63, %v2163_v16  ;;  %v2133_v56 = vmul.f32 %v3155_v42, %v1981_v6  ;;  %v3179_v16 = vunpack.c.l.bf16 %v3243_v48 }
 0x16f   : > { %v2166_v54 = vadd.f32 %v2134_v4, %v4236_v19 }
 0x170   : > { %v2165_v53 = vadd.f32 %v2133_v56, %v4240_v31  ;;  %v3591_v51 = vpop.f32.mrb[68].mxu1  ;;  %3629 = vmatprep.mubr.msk.bf16.mxu0 %vm2215_vm5, %v2187_v30 }
 0x171   : > { %v2136_v15 = vmul.f32 %v3591_v51, %v3160_v46  ;;  %v1991_v27 = vpop.f32.mrb[69].mxu1 }
 0x172   : > { %v2188_v34 = vpack.c.bf16 %v2166_v54, %v2165_v53  ;;  %v2135_v36 = vmul.f32 %v3159_v44, %v1991_v27 }
 0x173   : > { %v2168_v60 = vadd.f32 %v2136_v15, %v4245_v43 }
 0x174   : > { %v2167_v55 = vadd.f32 %v2135_v36, %v4249_v62  ;;  %v3594_v45 = vpop.f32.mrb[70].mxu1  ;;  %3630 = vmatmul.mubr.msk.bf16.gmra.mrb[64].mxu0 %vm2215_vm5, %v2188_v34 }
 0x175   : > { %v2138_v19 = vmul.f32 %v3594_v45, %v3164_v14  ;;  %v2001_v31 = vpop.f32.mrb[71].mxu1 }
 0x176   : > { %v2189_v17 = vpack.c.bf16 %v2168_v60, %v2167_v55  ;;  %v2137_v32 = vmul.f32 %v3163_v11, %v2001_v31 }
 0x177   : > { %v2170_v58 = vadd.f32 %v2138_v19, %v4406_v37 }
 0x178   : > { %v2169_v20 = vadd.f32 %v2137_v32, %v4258_v49  ;;  %v3597_v33 = vpop.f32.mrb[72].mxu1  ;;  %3633 = vmatprep.mubr.msk.bf16.mxu0 %vm2215_vm5, %v2189_v17 }
 0x179   : > { %v2140_v43 = vmul.f32 %v3597_v33, %v3168_v40  ;;  %v2011_v62 = vpop.f32.mrb[73].mxu1 }
 0x17a   : > { %v2190_v41 = vpack.c.bf16 %v2170_v58, %v2169_v20  ;;  %v2139_v0 = vmul.f32 %v3167_v5, %v2011_v62 }
 0x17b   : > { %v2172_v29 = vadd.f32 %v2140_v43, %v4263_v26 }
 0x17c   : > { %v2171_v3 = vadd.f32 %v2139_v0, %v4267_v22  ;;  %v3600_v39 = vpop.f32.mrb[74].mxu1  ;;  %3634 = vmatmul.mubr.msk.bf16.gmra.mrb[68].mxu0 %vm2215_vm5, %v2190_v41  ;;  %v3180_v22 = vunpack.c.h.bf16 %v3243_v48 }
 0x17d   : > { %v2142_v38 = vmul.f32 %v3600_v39, %v3172_v12  ;;  %v2021_v49 = vpop.f32.mrb[75].mxu1 }
 0x17e   : > { %v2191_v10 = vpack.c.bf16 %v2172_v29, %v2171_v3  ;;  %v2141_v13 = vmul.f32 %v3171_v21, %v2021_v49 }
 0x17f   : > { %v2174_v25 = vadd.f32 %v2142_v38, %v4270_v2 }
 0x180   : > { %v2173_v52 = vadd.f32 %v2141_v13, %v4274_v24  ;;  %v3603_v28 = vpop.f32.mrb[76].mxu1  ;;  %3637 = vmatprep.mubr.msk.bf16.mxu0 %vm2215_vm5, %v2191_v10 }
 0x181   : > { %v2144_v26 = vmul.f32 %v3603_v28, %v3176_v35  ;;  %v2031_v42 = vpop.f32.mrb[77].mxu1 }
 0x182   : > { %v2192_v1 = vpack.c.bf16 %v2174_v25, %v2173_v52  ;;  %v2143_v63 = vmul.f32 %v3175_v23, %v2031_v42 }
 0x183   : > { %v2176_v18 = vadd.f32 %v2144_v26, %v4277_v9 }
 0x184   : > { %v2175_v4 = vadd.f32 %v2143_v63, %v4280_v50  ;;  %v3606_v6 = vpop.f32.mrb[78].mxu1  ;;  %3638 = vmatmul.mubr.msk.bf16.gmra.mrb[72].mxu0 %vm2215_vm5, %v2192_v1 }
 0x185   : > { %v2146_v2 = vmul.f32 %v3606_v6, %v3180_v22  ;;  %v2041_v46 = vpop.f32.mrb[79].mxu1 }
 0x186   : > { %v2193_v24 = vpack.c.bf16 %v2176_v18, %v2175_v4  ;;  %v2145_v30 = vmul.f32 %v3179_v16, %v2041_v46 }
 0x187   : > { %v2178_v56 = vadd.f32 %v2146_v2, %v4283_v8 }
 0x188   : > { %v2177_v44 = vadd.f32 %v2145_v30, %v4285_v47  ;;  %3641 = vmatprep.mubr.msk.bf16.mxu0 %vm2215_vm5, %v2193_v24 }
 0x18a   : > { %v2194_v7 = vpack.c.bf16 %v2178_v56, %v2177_v44 }
 0x18c   : > { %3642 = vmatmul.mubr.msk.bf16.gmra.mrb[76].mxu0 %vm2215_vm5, %v2194_v7 }
 0x227   : > { %v3615_v9 = vpop.f32.mrb[48].mxu0 }
 0x228   : > { %2431 = vst [vmem:[%s4353_s14 + $0x10] sm:$0xff] %v3615_v9  ;;  %v2302_v50 = vpop.f32.mrb[49].mxu0 }
 0x229   : > { %2429 = vst [vmem:[%s4353_s14] sm:$0xff] %v2302_v50  ;;  %v3616_v8 = vpop.f32.mrb[50].mxu0 }
 0x22a   : > { %2432 = vst [vmem:[%s4353_s14 + $0x18] sm:$0xff] %v3616_v8  ;;  %v2305_v47 = vpop.f32.mrb[51].mxu0 }
 0x22b   : > { %2430 = vst [vmem:[%s4353_s14 + $0x8] sm:$0xff] %v2305_v47 }
 0x22f   : > { %v3619_v54 = vpop.f32.mrb[52].mxu0 }
 0x230   : > { %2435 = vst [vmem:[%s4353_s14 + $0x30] sm:$0xff] %v3619_v54  ;;  %v2318_v53 = vpop.f32.mrb[53].mxu0 }
 0x231   : > { %2433 = vst [vmem:[%s4353_s14 + $0x20] sm:$0xff] %v2318_v53  ;;  %v3620_v51 = vpop.f32.mrb[54].mxu0 }
 0x232   : > { %2436 = vst [vmem:[%s4353_s14 + $0x38] sm:$0xff] %v3620_v51  ;;  %v2321_v15 = vpop.f32.mrb[55].mxu0 }
 0x233   : > { %2434 = vst [vmem:[%s4353_s14 + $0x28] sm:$0xff] %v2321_v15 }
 0x237   : > { %v3623_v27 = vpop.f32.mrb[56].mxu0 }
 0x238   : > { %2439 = vst [vmem:[%s4353_s14 + $0x50] sm:$0xff] %v3623_v27  ;;  %v2334_v14 = vpop.f32.mrb[57].mxu0 }
 0x239   : > { %2437 = vst [vmem:[%s4353_s14 + $0x40] sm:$0xff] %v2334_v14  ;;  %v3624_v34 = vpop.f32.mrb[58].mxu0 }
 0x23a   : > { %2440 = vst [vmem:[%s4353_s14 + $0x58] sm:$0xff] %v3624_v34  ;;  %v2337_v36 = vpop.f32.mrb[59].mxu0 }
 0x23b   : > { %2438 = vst [vmem:[%s4353_s14 + $0x48] sm:$0xff] %v2337_v36 }
 0x23f   : > { %v3627_v11 = vpop.f32.mrb[60].mxu0 }
 0x240   : > { %2443 = vst [vmem:[%s4353_s14 + $0x70] sm:$0xff] %v3627_v11  ;;  %v2350_v59 = vpop.f32.mrb[61].mxu0 }
 0x241   : > { %2441 = vst [vmem:[%s4353_s14 + $0x60] sm:$0xff] %v2350_v59  ;;  %v3628_v60 = vpop.f32.mrb[62].mxu0 }
 0x242   : > { %2444 = vst [vmem:[%s4353_s14 + $0x78] sm:$0xff] %v3628_v60  ;;  %v2353_v55 = vpop.f32.mrb[63].mxu0 }
 0x243   : > { %2442 = vst [vmem:[%s4353_s14 + $0x68] sm:$0xff] %v2353_v55 }
 0x247   : > { %v3631_v45 = vpop.f32.mrb[64].mxu0 }
 0x248   : > { %2447 = vst [vmem:[%s4353_s14 + $0x90] sm:$0xff] %v3631_v45  ;;  %v2366_v19 = vpop.f32.mrb[65].mxu0 }
 0x249   : > { %2445 = vst [vmem:[%s4353_s14 + $0x80] sm:$0xff] %v2366_v19  ;;  %v3632_v31 = vpop.f32.mrb[66].mxu0 }
 0x24a   : > { %2448 = vst [vmem:[%s4353_s14 + $0x98] sm:$0xff] %v3632_v31  ;;  %v2369_v40 = vpop.f32.mrb[67].mxu0 }
 0x24b   : > { %2446 = vst [vmem:[%s4353_s14 + $0x88] sm:$0xff] %v2369_v40 }
 0x24f   : > { %v3635_v17 = vpop.f32.mrb[68].mxu0 }
 0x250   : > { %2451 = vst [vmem:[%s4353_s14 + $0xb0] sm:$0xff] %v3635_v17  ;;  %v2382_v32 = vpop.f32.mrb[69].mxu0 }
 0x251   : > { %2449 = vst [vmem:[%s4353_s14 + $0xa0] sm:$0xff] %v2382_v32  ;;  %v3636_v5 = vpop.f32.mrb[70].mxu0 }
 0x252   : > { %2452 = vst [vmem:[%s4353_s14 + $0xb8] sm:$0xff] %v3636_v5  ;;  %v2385_v57 = vpop.f32.mrb[71].mxu0 }
 0x253   : > { %2450 = vst [vmem:[%s4353_s14 + $0xa8] sm:$0xff] %v2385_v57 }
 0x257   : > { %v3639_v37 = vpop.f32.mrb[72].mxu0 }
 0x258   : > { %2455 = vst [vmem:[%s4353_s14 + $0xd0] sm:$0xff] %v3639_v37  ;;  %v2398_v58 = vpop.f32.mrb[73].mxu0 }
 0x259   : > { %2453 = vst [vmem:[%s4353_s14 + $0xc0] sm:$0xff] %v2398_v58  ;;  %v3640_v20 = vpop.f32.mrb[74].mxu0 }
 0x25a   : > { %2456 = vst [vmem:[%s4353_s14 + $0xd8] sm:$0xff] %v3640_v20  ;;  %v2401_v33 = vpop.f32.mrb[75].mxu0 }
 0x25b   : > { %2454 = vst [vmem:[%s4353_s14 + $0xc8] sm:$0xff] %v2401_v33 }
 0x25f   : > { %v3643_v43 = vpop.f32.mrb[76].mxu0 }
 0x260   : > { %2459 = vst [vmem:[%s4353_s14 + $0xf0] sm:$0xff] %v3643_v43  ;;  %v2414_v62 = vpop.f32.mrb[77].mxu0 }
 0x261   : > { %2457 = vst [vmem:[%s4353_s14 + $0xe0] sm:$0xff] %v2414_v62  ;;  %v3644_v12 = vpop.f32.mrb[78].mxu0 }
 0x262   : > { %2460 = vst [vmem:[%s4353_s14 + $0xf8] sm:$0xff] %v3644_v12  ;;  %v2417_v41 = vpop.f32.mrb[79].mxu0 }
 0x263   : > { %2458 = vst [vmem:[%s4353_s14 + $0xe8] sm:$0xff] %v2417_v41 }
 0x264 PF: > { %s14_s17 = sadd.s32 1, %s3722_s17   ;;  %s4407_s15 = smov %s3718_s16 }
 0x265   : > { %p11_p5 = scmp.ge.s32.totalorder %s14_s17, 4   ;;  %s4408_s16 = smov %s4410_s18 }
 0x267   :  { %13 = sbr.rel (!%p11_p5) target bundleno = 2 (0x2), region = 75 }

</bundles_post_ra>
